<compile_context>
chip_gen: v7x
topology: tpu7x:2x2x1
jax: 0.10.0
libtpu: 0.0.40
codegen_flags: <defaults>
</compile_context>

<pallas_src>
import functools

import jax
import jax.numpy as jnp
from jax import lax
from jax.experimental import pallas as pl
from jax.experimental.pallas import tpu as pltpu

_LN_EPS = 1e-5          # PyTorch nn.LayerNorm default eps
_MASK_NEG = -1.0e30     # additive mask value; exp() underflows to exactly 0.0 in f32
_GELU_C = 0.7978845608028654   # sqrt(2/pi)


def _gelu_tanh(x):
    # tanh-approx GELU (nn.GELU(approximate='tanh')); tanh runs on the EUP slot.
    # TODO(synk): switch back to exact-erf GELU if lax.erf lowering is needed bit-exactly.
    return 0.5 * x * (1.0 + jnp.tanh(_GELU_C * (x + 0.044715 * x * x * x)))


def _layernorm(x, gamma, beta):
    # One-pass LayerNorm: var = E[x^2] - mu^2 (single traversal of x).
    mu = jnp.mean(x, axis=-1, keepdims=True)
    ms = jnp.mean(x * x, axis=-1, keepdims=True)
    var = ms - mu * mu
    return (x - mu) * lax.rsqrt(var + _LN_EPS) * gamma + beta


# ---------------------------------------------------------------------------
# Fused kernel: per grid step, block = (batch_block*C*G, D) rows of one batch group.
#   SWAM multi-head attention (block-diag masked, all channels at once)
#   + residual, LayerNorm1, TWFF + residual, LayerNorm2,
#   VWFF (channel mixing) via kron-expanded weights + residual.
# Scale/alpha scalars are pre-folded into the weights on the host.
# ---------------------------------------------------------------------------
def _fused_layer_kernel(n_heads, d_k, n_scales, attn_head,
                        x_ref, mask_ref,
                        wq_ref, bq_ref, wk_ref, bk_ref, wv_ref, bv_ref,
                        wo_ref, bo_ref,
                        g1_ref, be1_ref, w1_ref, b1_ref, w2_ref, b2_ref,
                        g2_ref, be2_ref,
                        w1k_ref, b1k_ref, w2k_ref, b2k_ref,
                        out_ref, attn_ref):
    G = n_scales
    bf16 = jnp.bfloat16
    f32 = jnp.float32

    x = x_ref[0]                        # (R, D) f32, row r = (b_in_block*C + c)*G + g
    mask = mask_ref[...]                # (R, R) f32 additive block-diagonal mask
    x16 = x.astype(bf16)

    # QKV projections, bf16 MXU inputs / f32 accumulation.  Attention scale folded in wq/bq.
    q = jnp.dot(x16, wq_ref[...], preferred_element_type=f32) + bq_ref[...]
    k = jnp.dot(x16, wk_ref[...], preferred_element_type=f32) + bk_ref[...]
    v = jnp.dot(x16, wv_ref[...], preferred_element_type=f32) + bv_ref[...]

    # Multi-head attention.  One masked (R, R) score matmul per head covers every channel
    # (cross-channel logits get -1e30 -> exactly 0 weight).  Each head's context is
    # projected by its own W_O slice and accumulated into the residual: no concat, only
    # one (R, D) f32 accumulator stays live.  alpha1 folded into wo/bo.
    x1 = x + bo_ref[...]
    for h in range(n_heads):
        sl = slice(h * d_k, (h + 1) * d_k)
        qh = q[:, sl].astype(bf16)
        kh = k[:, sl].astype(bf16)
        vh = v[:, sl].astype(bf16)
        s = lax.dot_general(qh, kh, (((1,), (1,)), ((), ())),
                            preferred_element_type=f32) + mask
        e = jnp.exp(s - jnp.max(s, axis=-1, keepdims=True))         # unnormalized weights
        inv_l = pl.reciprocal(jnp.sum(e, axis=-1, keepdims=True), approx=True)
        if h == attn_head:
            # Only the (G, R) slice the module actually returns (channel 0 of the first
            # batch element in this block); host keeps step 0 and slices [:, :G].
            attn_ref[0] = e[:G, :] * inv_l[:G]
        # Deferred softmax normalization: normalize the (R, d_k) context, not the (R, R)
        # weight matrix.
        ctx_h = jnp.dot(e.astype(bf16), vh, preferred_element_type=f32) * inv_l
        x1 = x1 + jnp.dot(ctx_h.astype(bf16), wo_ref[h],
                          preferred_element_type=f32)

    x1 = _layernorm(x1, g1_ref[...], be1_ref[...])                   # norm1

    # TWFF (alpha2 folded into w2/b2)
    h1 = _gelu_tanh(jnp.dot(x1.astype(bf16), w1_ref[...],
                            preferred_element_type=f32) + b1_ref[...])
    x2 = x1 + jnp.dot(h1.astype(bf16), w2_ref[...],
                      preferred_element_type=f32) + b2_ref[...]
    x2 = _layernorm(x2, g2_ref[...], be2_ref[...])                   # norm2

    # VWFF: channel mixing on the (R, D) slab via kron(W, I_G)-expanded weights (built on
    # the host) -> two lane-dense 2D MXU matmuls, identical to the per-channel Linear.
    # alpha3 folded into w2k/b2k.
    y = jnp.dot(w1k_ref[...], x2.astype(bf16), preferred_element_type=f32) + b1k_ref[...]
    z = jnp.dot(w2k_ref[...], _gelu_tanh(y).astype(bf16),
                preferred_element_type=f32) + b2k_ref[...]
    out_ref[0] = x2 + z


# ---------------------------------------------------------------------------
# Wrapper
# ---------------------------------------------------------------------------
def enhanced_transformer_layer(x, params, *, n_heads, n_vars, attn_head=7, batch_block=1):
    BC, G, D = x.shape
    H = n_heads
    d_k = D // H
    C = n_vars
    B = BC // C
    assert B * C == BC
    assert H > attn_head, "module returns layer_attn[0, 7]; requires n_heads >= 8"
    assert B % batch_block == 0
    BB = batch_block
    R = BB * C * G                      # rows per grid step
    n_steps = B // BB

    bf16 = jnp.bfloat16
    f32 = jnp.float32

    # (B*C, G, D) -> (n_steps, R, D): row r = (b_in_block*C + c)*G + g within each step.
    xb = x.reshape(n_steps, R, D)

    # Additive block-diagonal mask: every (batch-in-block, channel) group of G rows only
    # attends to itself, so all channels' attentions run as one masked matmul.
    cid = jnp.arange(R, dtype=jnp.int32) // G
    mask = jnp.where(cid[:, None] == cid[None, :], 0.0, _MASK_NEG).astype(f32)

    # Fold scalars into weights on the host, cast matmul weights to bf16 (halves the
    # resident weight VMEM), keep biases / LN params in f32 (added to f32 accumulators).
    scale = jnp.float32(params["scale"])
    a1 = jnp.float32(params["alpha1"])
    a2 = jnp.float32(params["alpha2"])
    a3 = jnp.float32(params["alpha3"])

    wq = (params["wq"] * scale).astype(bf16)
    bq = params["bq"] * scale
    wk = params["wk"].astype(bf16)
    bk = params["bk"]
    wv = params["wv"].astype(bf16)
    bv = params["bv"]
    # W_O as (H, d_k, D): per-head slices indexed with a static leading index in-kernel.
    wo = (params["wo"] * a1).astype(bf16).reshape(H, d_k, D)
    bo = params["bo"] * a1
    w1 = params["w1"].astype(bf16)
    b1 = params["b1"]
    w2 = (params["w2"] * a2).astype(bf16)
    b2 = params["b2"] * a2
    g1, be1 = params["ln1_g"], params["ln1_b"]
    g2, be2 = params["ln2_g"], params["ln2_b"]

    # VWFF weights expanded with kron(I_BB, kron(W, I_G)); alpha3 folded into the second.
    eye_g = jnp.eye(G, dtype=f32)
    eye_bb = jnp.eye(BB, dtype=f32)
    ones_g = jnp.ones((G, 1), f32)
    w1k = jnp.kron(eye_bb, jnp.kron(params["w1v"], eye_g)).astype(bf16)
    b1k = jnp.tile(jnp.kron(params["b1v"], ones_g), (BB, 1))
    w2k = (jnp.kron(eye_bb, jnp.kron(params["w2v"], eye_g)) * a3).astype(bf16)
    b2k = jnp.tile(jnp.kron(params["b2v"], ones_g), (BB, 1)) * a3

    weights = [wq, bq, wk, bk, wv, bv, wo, bo,
               g1, be1, w1, b1, w2, b2, g2, be2,
               w1k, b1k, w2k, b2k]

    def const_block(w):
        zeros = (0,) * w.ndim
        return pl.BlockSpec(w.shape, lambda b, z=zeros: z)

    in_specs = ([pl.BlockSpec((1, R, D), lambda b: (b, 0, 0)),        # rows of batch group b
                 const_block(mask)]
                + [const_block(w) for w in weights])
    out_specs = [pl.BlockSpec((1, R, D), lambda b: (b, 0, 0)),
                 pl.BlockSpec((1, G, R), lambda b: (b, 0, 0))]
    out_shape = [jax.ShapeDtypeStruct((n_steps, R, D), f32),
                 jax.ShapeDtypeStruct((n_steps, G, R), f32)]

    # Per-generation VMEM budget: ~75% of this chip's VMEM, capped (v7x has 64 MiB/TC).
    try:
        vmem_cap = int(pltpu.get_tpu_info().vmem_capacity_bytes)
    except Exception:
        vmem_cap = 64 * 1024 * 1024
    vmem_limit = max(32 * 1024 * 1024, min(vmem_cap * 3 // 4, 100 * 1024 * 1024))

    out, attn = pl.pallas_call(
        functools.partial(_fused_layer_kernel, H, d_k, G, attn_head),
        grid=(n_steps,),
        in_specs=in_specs,
        out_specs=out_specs,
        out_shape=out_shape,
        input_output_aliases={0: 0},           # xb -> out (same shape/dtype)
        compiler_params=pltpu.CompilerParams(
            dimension_semantics=("parallel",),
            vmem_limit_bytes=vmem_limit),
    )(xb, mask, *weights)

    x_out = out.reshape(BC, G, D)
    attn_weights = [attn[0, :, :G]]            # == layer_attn[0, 7, :, :]
    return x_out, attn_weights


# ---------------------------------------------------------------------------
# Parameters and pure-JAX reference (mirrors the PyTorch module in eval mode)
# ---------------------------------------------------------------------------
def init_params(key, d_model, n_heads, n_vars, d_twff=None, d_vwff=None):
    """Deterministic synthetic parameters matching the module's shapes."""
    d_twff = d_twff or d_model
    d_vwff = d_vwff or 2 * n_vars
    keys = iter(jax.random.split(key, 32))

    def linear(n_in, n_out):
        # stored as (n_in, n_out) == transpose of torch Linear's (out, in); used as x @ W + b
        w = jax.random.normal(next(keys), (n_in, n_out), jnp.float32) * (n_in ** -0.5)
        b = jax.random.normal(next(keys), (1, n_out), jnp.float32) * 0.02
        return w, b

    p = {}
    p["wq"], p["bq"] = linear(d_model, d_model)
    p["wk"], p["bk"] = linear(d_model, d_model)
    p["wv"], p["bv"] = linear(d_model, d_model)
    p["wo"], p["bo"] = linear(d_model, d_model)          # to_out Linear
    p["ln1_g"] = jnp.ones((1, d_model), jnp.float32)     # PyTorch LayerNorm init
    p["ln1_b"] = jnp.zeros((1, d_model), jnp.float32)
    p["ln2_g"] = jnp.ones((1, d_model), jnp.float32)
    p["ln2_b"] = jnp.zeros((1, d_model), jnp.float32)
    p["w1"], p["b1"] = linear(d_model, d_twff)           # TWFF
    p["w2"], p["b2"] = linear(d_twff, d_model)
    # VWFF weights kept in torch (out, in) orientation; bias as a column vector.
    p["w1v"] = jax.random.normal(next(keys), (d_vwff, n_vars), jnp.float32) * (n_vars ** -0.5)
    p["b1v"] = jax.random.normal(next(keys), (d_vwff, 1), jnp.float32) * 0.02
    p["w2v"] = jax.random.normal(next(keys), (n_vars, d_vwff), jnp.float32) * (d_vwff ** -0.5)
    p["b2v"] = jax.random.normal(next(keys), (n_vars, 1), jnp.float32) * 0.02
    p["scale"] = float(d_model // n_heads) ** -0.5       # _ScaledDotProductAttention (lsa=False)
    # Non-unit residual weights so the host-side scalar folding is actually exercised.
    p["alpha1"] = 0.9
    p["alpha2"] = 1.1
    p["alpha3"] = 0.7
    return p


def _reference_forward(x, params, *, n_heads, n_vars):
    """Pure-JAX transcription of the PyTorch forward (eval mode), f32 HIGHEST matmuls."""
    HI = lax.Precision.HIGHEST
    mm = lambda a, b: jnp.matmul(a, b, precision=HI)
    BC, G, D = x.shape
    H, dk = n_heads, D // n_heads
    C = n_vars
    B = BC // C

    def ln(v, g, b):
        mu = jnp.mean(v, axis=-1, keepdims=True)
        var = jnp.mean((v - mu) ** 2, axis=-1, keepdims=True)
        return (v - mu) / jnp.sqrt(var + _LN_EPS) * g + b

    gelu = lambda v: jax.nn.gelu(v, approximate=False)

    q = mm(x, params["wq"]) + params["bq"]
    k = mm(x, params["wk"]) + params["bk"]
    v = mm(x, params["wv"]) + params["bv"]
    qh = q.reshape(BC, G, H, dk).transpose(0, 2, 1, 3)
    kh = k.reshape(BC, G, H, dk).transpose(0, 2, 1, 3)
    vh = v.reshape(BC, G, H, dk).transpose(0, 2, 1, 3)
    s = jnp.einsum("bhid,bhjd->bhij", qh, kh, precision=HI) * params["scale"]
    a = jax.nn.softmax(s, axis=-1)
    o = jnp.einsum("bhij,bhjd->bhid", a, vh, precision=HI).transpose(0, 2, 1, 3).reshape(BC, G, D)

    x1 = x + params["alpha1"] * (mm(o, params["wo"]) + params["bo"])
    x1 = ln(x1, params["ln1_g"], params["ln1_b"])
    h1 = gelu(mm(x1, params["w1"]) + params["b1"])
    x2 = x1 + params["alpha2"] * (mm(h1, params["w2"]) + params["b2"])
    x2 = ln(x2, params["ln2_g"], params["ln2_b"])

    xr = x2.reshape(B, C, G, D)
    xp = xr.transpose(0, 3, 2, 1)                                   # (B, D, G, C)
    y = jnp.einsum("bdgc,jc->bdgj", xp, params["w1v"], precision=HI) + params["b1v"][:, 0]
    z = jnp.einsum("bdgj,cj->bdgc", gelu(y), params["w2v"], precision=HI) + params["b2v"][:, 0]
    out = xr + params["alpha3"] * z.transpose(0, 3, 2, 1)
    return out.reshape(BC, G, D), a[0, 7]


if __name__ == "__main__":
    # Small shapes consistent with forward: x is (B*C, G, D)
    B, C, G = 2, 4, 8        # batch, n_vars, n_scales
    D, H = 32, 8             # d_model, n_heads  (n_heads >= 8 so layer_attn[0, 7] is valid)

    key = jax.random.PRNGKey(0)
    kx, kp = jax.random.split(key)
    x = jax.random.normal(kx, (B * C, G, D), dtype=jnp.float32)
    params = init_params(kp, d_model=D, n_heads=H, n_vars=C)

    out, attn_weights = enhanced_transformer_layer(x, params, n_heads=H, n_vars=C)
    out = jax.block_until_ready(out)
    attn0 = jax.block_until_ready(attn_weights[0])

    assert out.shape == (B * C, G, D)
    assert attn0.shape == (G, G)

    # Correctness check against the pure-JAX f32 reference (kernel matmuls run in bf16
    # with f32 accumulation and GELU is the tanh approximation, hence the 2e-2 tolerance).
    ref_out, ref_attn = _reference_forward(x, params, n_heads=H, n_vars=C)
    assert jnp.allclose(out, ref_out, rtol=2e-2, atol=2e-2), "output mismatch vs reference"
    assert jnp.allclose(attn0, ref_attn, rtol=2e-2, atol=2e-2), "attention mismatch vs reference"

    # Batch-grouped variant (batch_block=2): bigger masked score tiles per grid step,
    # the knob to fill the 256x256 MXU on v6e/v7x at production sizes.
    out2, attn_w2 = enhanced_transformer_layer(x, params, n_heads=H, n_vars=C, batch_block=2)
    out2 = jax.block_until_ready(out2)
    assert jnp.allclose(out2, ref_out, rtol=2e-2, atol=2e-2), "batch_block=2 output mismatch"
    assert jnp.allclose(attn_w2[0], ref_attn, rtol=2e-2, atol=2e-2), "batch_block=2 attn mismatch"

    print("KERNEL_OK")
</pallas_src>

<mosaic_0001>
module attributes {stable_mosaic.version = 11 : i64} {
  func.func @_fused_layer_kernel(%arg0: i32, %arg1: memref<1x32x32xf32, #tpu.memory_space<vmem>>, %arg2: memref<32x32xf32, #tpu.memory_space<vmem>>, %arg3: memref<32x32xbf16, #tpu.memory_space<vmem>>, %arg4: memref<1x32xf32, #tpu.memory_space<vmem>>, %arg5: memref<32x32xbf16, #tpu.memory_space<vmem>>, %arg6: memref<1x32xf32, #tpu.memory_space<vmem>>, %arg7: memref<32x32xbf16, #tpu.memory_space<vmem>>, %arg8: memref<1x32xf32, #tpu.memory_space<vmem>>, %arg9: memref<8x4x32xbf16, #tpu.memory_space<vmem>>, %arg10: memref<1x32xf32, #tpu.memory_space<vmem>>, %arg11: memref<1x32xf32, #tpu.memory_space<vmem>>, %arg12: memref<1x32xf32, #tpu.memory_space<vmem>>, %arg13: memref<32x32xbf16, #tpu.memory_space<vmem>>, %arg14: memref<1x32xf32, #tpu.memory_space<vmem>>, %arg15: memref<32x32xbf16, #tpu.memory_space<vmem>>, %arg16: memref<1x32xf32, #tpu.memory_space<vmem>>, %arg17: memref<1x32xf32, #tpu.memory_space<vmem>>, %arg18: memref<1x32xf32, #tpu.memory_space<vmem>>, %arg19: memref<64x32xbf16, #tpu.memory_space<vmem>>, %arg20: memref<64x1xf32, #tpu.memory_space<vmem>>, %arg21: memref<32x64xbf16, #tpu.memory_space<vmem>>, %arg22: memref<32x1xf32, #tpu.memory_space<vmem>>, %arg23: memref<1x32x32xf32, #tpu.memory_space<vmem>>, %arg24: memref<1x8x32xf32, #tpu.memory_space<vmem>>) attributes {dimension_semantics = [#tpu.dimension_semantics<parallel>], iteration_bounds = array<i64: 2>, scalar_prefetch = 0 : i64, scratch_operands = 0 : i64, tpu.core_type = #tpu.core_type<tc>, window_params = [{transform_indices = @transform_0, window_bounds = array<i64: 1, 32, 32>}, {pipeline_mode = #tpu.pipeline_mode<synchronous>, transform_indices = @transform_1, window_bounds = array<i64: 32, 32>}, {pipeline_mode = #tpu.pipeline_mode<synchronous>, transform_indices = @transform_2, window_bounds = array<i64: 32, 32>}, {pipeline_mode = #tpu.pipeline_mode<synchronous>, transform_indices = @transform_3, window_bounds = array<i64: 1, 32>}, {pipeline_mode = #tpu.pipeline_mode<synchronous>, transform_indices = @transform_4, window_bounds = array<i64: 32, 32>}, {pipeline_mode = #tpu.pipeline_mode<synchronous>, transform_indices = @transform_5, window_bounds = array<i64: 1, 32>}, {pipeline_mode = #tpu.pipeline_mode<synchronous>, transform_indices = @transform_6, window_bounds = array<i64: 32, 32>}, {pipeline_mode = #tpu.pipeline_mode<synchronous>, transform_indices = @transform_7, window_bounds = array<i64: 1, 32>}, {pipeline_mode = #tpu.pipeline_mode<synchronous>, transform_indices = @transform_8, window_bounds = array<i64: 8, 4, 32>}, {pipeline_mode = #tpu.pipeline_mode<synchronous>, transform_indices = @transform_9, window_bounds = array<i64: 1, 32>}, {pipeline_mode = #tpu.pipeline_mode<synchronous>, transform_indices = @transform_10, window_bounds = array<i64: 1, 32>}, {pipeline_mode = #tpu.pipeline_mode<synchronous>, transform_indices = @transform_11, window_bounds = array<i64: 1, 32>}, {pipeline_mode = #tpu.pipeline_mode<synchronous>, transform_indices = @transform_12, window_bounds = array<i64: 32, 32>}, {pipeline_mode = #tpu.pipeline_mode<synchronous>, transform_indices = @transform_13, window_bounds = array<i64: 1, 32>}, {pipeline_mode = #tpu.pipeline_mode<synchronous>, transform_indices = @transform_14, window_bounds = array<i64: 32, 32>}, {pipeline_mode = #tpu.pipeline_mode<synchronous>, transform_indices = @transform_15, window_bounds = array<i64: 1, 32>}, {pipeline_mode = #tpu.pipeline_mode<synchronous>, transform_indices = @transform_16, window_bounds = array<i64: 1, 32>}, {pipeline_mode = #tpu.pipeline_mode<synchronous>, transform_indices = @transform_17, window_bounds = array<i64: 1, 32>}, {pipeline_mode = #tpu.pipeline_mode<synchronous>, transform_indices = @transform_18, window_bounds = array<i64: 64, 32>}, {pipeline_mode = #tpu.pipeline_mode<synchronous>, transform_indices = @transform_19, window_bounds = array<i64: 64, 1>}, {pipeline_mode = #tpu.pipeline_mode<synchronous>, transform_indices = @transform_20, window_bounds = array<i64: 32, 64>}, {pipeline_mode = #tpu.pipeline_mode<synchronous>, transform_indices = @transform_21, window_bounds = array<i64: 32, 1>}, {transform_indices = @transform_22, window_bounds = array<i64: 1, 32, 32>}, {transform_indices = @transform_23, window_bounds = array<i64: 1, 8, 32>}]} {
    %c0 = arith.constant 0 : index
    %c0_0 = arith.constant 0 : index
    %c0_1 = arith.constant 0 : index
    %0 = vector.load %arg1[%c0, %c0_0, %c0_1] : memref<1x32x32xf32, #tpu.memory_space<vmem>>, vector<1x32x32xf32>
    %1 = vector.shape_cast %0 : vector<1x32x32xf32> to vector<32x32xf32>
    %c0_2 = arith.constant 0 : index
    %c0_3 = arith.constant 0 : index
    %2 = vector.load %arg2[%c0_2, %c0_3] : memref<32x32xf32, #tpu.memory_space<vmem>>, vector<32x32xf32>
    %3 = arith.truncf %1 : vector<32x32xf32> to vector<32x32xbf16>
    %c0_4 = arith.constant 0 : index
    %c0_5 = arith.constant 0 : index
    %4 = vector.load %arg3[%c0_4, %c0_5] : memref<32x32xbf16, #tpu.memory_space<vmem>>, vector<32x32xbf16>
    %cst = arith.constant dense<0.000000e+00> : vector<32x32xf32>
    %5 = tpu.matmul %3, %4, %cst {dimension_numbers = #tpu.dot_dimension_numbers<[1], [0], [0], [1], [0, 0, 1, 1], [], []>} : vector<32x32xbf16>, vector<32x32xbf16>, vector<32x32xf32> -> vector<32x32xf32>
    %c0_6 = arith.constant 0 : index
    %c0_7 = arith.constant 0 : index
    %6 = vector.load %arg4[%c0_6, %c0_7] : memref<1x32xf32, #tpu.memory_space<vmem>>, vector<1x32xf32>
    %7 = vector.broadcast %6 : vector<1x32xf32> to vector<32x32xf32>
    %8 = arith.addf %5, %7 : vector<32x32xf32>
    %c0_8 = arith.constant 0 : index
    %c0_9 = arith.constant 0 : index
    %9 = vector.load %arg5[%c0_8, %c0_9] : memref<32x32xbf16, #tpu.memory_space<vmem>>, vector<32x32xbf16>
    %cst_10 = arith.constant dense<0.000000e+00> : vector<32x32xf32>
    %10 = tpu.matmul %3, %9, %cst_10 {dimension_numbers = #tpu.dot_dimension_numbers<[1], [0], [0], [1], [0, 0, 1, 1], [], []>} : vector<32x32xbf16>, vector<32x32xbf16>, vector<32x32xf32> -> vector<32x32xf32>
    %c0_11 = arith.constant 0 : index
    %c0_12 = arith.constant 0 : index
    %11 = vector.load %arg6[%c0_11, %c0_12] : memref<1x32xf32, #tpu.memory_space<vmem>>, vector<1x32xf32>
    %12 = vector.broadcast %11 : vector<1x32xf32> to vector<32x32xf32>
    %13 = arith.addf %10, %12 : vector<32x32xf32>
    %c0_13 = arith.constant 0 : index
    %c0_14 = arith.constant 0 : index
    %14 = vector.load %arg7[%c0_13, %c0_14] : memref<32x32xbf16, #tpu.memory_space<vmem>>, vector<32x32xbf16>
    %cst_15 = arith.constant dense<0.000000e+00> : vector<32x32xf32>
    %15 = tpu.matmul %3, %14, %cst_15 {dimension_numbers = #tpu.dot_dimension_numbers<[1], [0], [0], [1], [0, 0, 1, 1], [], []>} : vector<32x32xbf16>, vector<32x32xbf16>, vector<32x32xf32> -> vector<32x32xf32>
    %c0_16 = arith.constant 0 : index
    %c0_17 = arith.constant 0 : index
    %16 = vector.load %arg8[%c0_16, %c0_17] : memref<1x32xf32, #tpu.memory_space<vmem>>, vector<1x32xf32>
    %17 = vector.broadcast %16 : vector<1x32xf32> to vector<32x32xf32>
    %18 = arith.addf %15, %17 : vector<32x32xf32>
    %c0_18 = arith.constant 0 : index
    %c0_19 = arith.constant 0 : index
    %19 = vector.load %arg10[%c0_18, %c0_19] : memref<1x32xf32, #tpu.memory_space<vmem>>, vector<1x32xf32>
    %20 = vector.broadcast %19 : vector<1x32xf32> to vector<32x32xf32>
    %21 = arith.addf %1, %20 : vector<32x32xf32>
    %22 = vector.extract_strided_slice %8 {offsets = [0, 0], sizes = [32, 4], strides = [1, 1]} : vector<32x32xf32> to vector<32x4xf32>
    %23 = arith.truncf %22 : vector<32x4xf32> to vector<32x4xbf16>
    %24 = vector.extract_strided_slice %13 {offsets = [0, 0], sizes = [32, 4], strides = [1, 1]} : vector<32x32xf32> to vector<32x4xf32>
    %25 = arith.truncf %24 : vector<32x4xf32> to vector<32x4xbf16>
    %26 = vector.extract_strided_slice %18 {offsets = [0, 0], sizes = [32, 4], strides = [1, 1]} : vector<32x32xf32> to vector<32x4xf32>
    %27 = arith.truncf %26 : vector<32x4xf32> to vector<32x4xbf16>
    %cst_20 = arith.constant dense<0.000000e+00> : vector<32x32xf32>
    %28 = tpu.matmul %23, %25, %cst_20 {dimension_numbers = #tpu.dot_dimension_numbers<[1], [1], [0], [0], [0, 0, 1, 0], [], []>} : vector<32x4xbf16>, vector<32x4xbf16>, vector<32x32xf32> -> vector<32x32xf32>
    %29 = arith.addf %28, %2 : vector<32x32xf32>
    %cst_21 = arith.constant dense<0xFF800000> : vector<32xf32>
    %30 = vector.multi_reduction <maximumf>, %29, %cst_21 [1] : vector<32x32xf32> to vector<32xf32>
    %31 = vector.shape_cast %30 : vector<32xf32> to vector<32x1xf32>
    %32 = vector.broadcast %31 : vector<32x1xf32> to vector<32x32xf32>
    %33 = arith.subf %29, %32 : vector<32x32xf32>
    %34 = math.exp %33 : vector<32x32xf32>
    %cst_22 = arith.constant dense<0.000000e+00> : vector<32xf32>
    %35 = vector.multi_reduction <add>, %34, %cst_22 [1] : vector<32x32xf32> to vector<32xf32>
    %36 = vector.shape_cast %35 : vector<32xf32> to vector<32x1xf32>
    %37 = tpu.reciprocal %36 {approx = true} : vector<32x1xf32> -> vector<32x1xf32>
    %38 = arith.truncf %34 : vector<32x32xf32> to vector<32x32xbf16>
    %cst_23 = arith.constant dense<0.000000e+00> : vector<32x4xf32>
    %39 = tpu.matmul %38, %27, %cst_23 {dimension_numbers = #tpu.dot_dimension_numbers<[1], [0], [0], [1], [0, 0, 1, 1], [], []>} : vector<32x32xbf16>, vector<32x4xbf16>, vector<32x4xf32> -> vector<32x4xf32>
    %40 = vector.broadcast %37 : vector<32x1xf32> to vector<32x4xf32>
    %41 = arith.mulf %39, %40 : vector<32x4xf32>
    %42 = arith.truncf %41 : vector<32x4xf32> to vector<32x4xbf16>
    %c0_24 = arith.constant 0 : index
    %c0_25 = arith.constant 0 : index
    %c0_26 = arith.constant 0 : index
    %43 = vector.load %arg9[%c0_24, %c0_25, %c0_26] : memref<8x4x32xbf16, #tpu.memory_space<vmem>>, vector<1x4x32xbf16>
    %44 = vector.shape_cast %43 : vector<1x4x32xbf16> to vector<4x32xbf16>
    %cst_27 = arith.constant dense<0.000000e+00> : vector<32x32xf32>
    %45 = tpu.matmul %42, %44, %cst_27 {dimension_numbers = #tpu.dot_dimension_numbers<[1], [0], [0], [1], [0, 0, 1, 1], [], []>} : vector<32x4xbf16>, vector<4x32xbf16>, vector<32x32xf32> -> vector<32x32xf32>
    %46 = arith.addf %21, %45 : vector<32x32xf32>
    %47 = vector.extract_strided_slice %8 {offsets = [0, 4], sizes = [32, 4], strides = [1, 1]} : vector<32x32xf32> to vector<32x4xf32>
    %48 = arith.truncf %47 : vector<32x4xf32> to vector<32x4xbf16>
    %49 = vector.extract_strided_slice %13 {offsets = [0, 4], sizes = [32, 4], strides = [1, 1]} : vector<32x32xf32> to vector<32x4xf32>
    %50 = arith.truncf %49 : vector<32x4xf32> to vector<32x4xbf16>
    %51 = vector.extract_strided_slice %18 {offsets = [0, 4], sizes = [32, 4], strides = [1, 1]} : vector<32x32xf32> to vector<32x4xf32>
    %52 = arith.truncf %51 : vector<32x4xf32> to vector<32x4xbf16>
    %cst_28 = arith.constant dense<0.000000e+00> : vector<32x32xf32>
    %53 = tpu.matmul %48, %50, %cst_28 {dimension_numbers = #tpu.dot_dimension_numbers<[1], [1], [0], [0], [0, 0, 1, 0], [], []>} : vector<32x4xbf16>, vector<32x4xbf16>, vector<32x32xf32> -> vector<32x32xf32>
    %54 = arith.addf %53, %2 : vector<32x32xf32>
    %cst_29 = arith.constant dense<0xFF800000> : vector<32xf32>
    %55 = vector.multi_reduction <maximumf>, %54, %cst_29 [1] : vector<32x32xf32> to vector<32xf32>
    %56 = vector.shape_cast %55 : vector<32xf32> to vector<32x1xf32>
    %57 = vector.broadcast %56 : vector<32x1xf32> to vector<32x32xf32>
    %58 = arith.subf %54, %57 : vector<32x32xf32>
    %59 = math.exp %58 : vector<32x32xf32>
    %cst_30 = arith.constant dense<0.000000e+00> : vector<32xf32>
    %60 = vector.multi_reduction <add>, %59, %cst_30 [1] : vector<32x32xf32> to vector<32xf32>
    %61 = vector.shape_cast %60 : vector<32xf32> to vector<32x1xf32>
    %62 = tpu.reciprocal %61 {approx = true} : vector<32x1xf32> -> vector<32x1xf32>
    %63 = arith.truncf %59 : vector<32x32xf32> to vector<32x32xbf16>
    %cst_31 = arith.constant dense<0.000000e+00> : vector<32x4xf32>
    %64 = tpu.matmul %63, %52, %cst_31 {dimension_numbers = #tpu.dot_dimension_numbers<[1], [0], [0], [1], [0, 0, 1, 1], [], []>} : vector<32x32xbf16>, vector<32x4xbf16>, vector<32x4xf32> -> vector<32x4xf32>
    %65 = vector.broadcast %62 : vector<32x1xf32> to vector<32x4xf32>
    %66 = arith.mulf %64, %65 : vector<32x4xf32>
    %67 = arith.truncf %66 : vector<32x4xf32> to vector<32x4xbf16>
    %c1 = arith.constant 1 : index
    %c0_32 = arith.constant 0 : index
    %c0_33 = arith.constant 0 : index
    %68 = vector.load %arg9[%c1, %c0_32, %c0_33] : memref<8x4x32xbf16, #tpu.memory_space<vmem>>, vector<1x4x32xbf16>
    %69 = vector.shape_cast %68 : vector<1x4x32xbf16> to vector<4x32xbf16>
    %cst_34 = arith.constant dense<0.000000e+00> : vector<32x32xf32>
    %70 = tpu.matmul %67, %69, %cst_34 {dimension_numbers = #tpu.dot_dimension_numbers<[1], [0], [0], [1], [0, 0, 1, 1], [], []>} : vector<32x4xbf16>, vector<4x32xbf16>, vector<32x32xf32> -> vector<32x32xf32>
    %71 = arith.addf %46, %70 : vector<32x32xf32>
    %72 = vector.extract_strided_slice %8 {offsets = [0, 8], sizes = [32, 4], strides = [1, 1]} : vector<32x32xf32> to vector<32x4xf32>
    %73 = arith.truncf %72 : vector<32x4xf32> to vector<32x4xbf16>
    %74 = vector.extract_strided_slice %13 {offsets = [0, 8], sizes = [32, 4], strides = [1, 1]} : vector<32x32xf32> to vector<32x4xf32>
    %75 = arith.truncf %74 : vector<32x4xf32> to vector<32x4xbf16>
    %76 = vector.extract_strided_slice %18 {offsets = [0, 8], sizes = [32, 4], strides = [1, 1]} : vector<32x32xf32> to vector<32x4xf32>
    %77 = arith.truncf %76 : vector<32x4xf32> to vector<32x4xbf16>
    %cst_35 = arith.constant dense<0.000000e+00> : vector<32x32xf32>
    %78 = tpu.matmul %73, %75, %cst_35 {dimension_numbers = #tpu.dot_dimension_numbers<[1], [1], [0], [0], [0, 0, 1, 0], [], []>} : vector<32x4xbf16>, vector<32x4xbf16>, vector<32x32xf32> -> vector<32x32xf32>
    %79 = arith.addf %78, %2 : vector<32x32xf32>
    %cst_36 = arith.constant dense<0xFF800000> : vector<32xf32>
    %80 = vector.multi_reduction <maximumf>, %79, %cst_36 [1] : vector<32x32xf32> to vector<32xf32>
    %81 = vector.shape_cast %80 : vector<32xf32> to vector<32x1xf32>
    %82 = vector.broadcast %81 : vector<32x1xf32> to vector<32x32xf32>
    %83 = arith.subf %79, %82 : vector<32x32xf32>
    %84 = math.exp %83 : vector<32x32xf32>
    %cst_37 = arith.constant dense<0.000000e+00> : vector<32xf32>
    %85 = vector.multi_reduction <add>, %84, %cst_37 [1] : vector<32x32xf32> to vector<32xf32>
    %86 = vector.shape_cast %85 : vector<32xf32> to vector<32x1xf32>
    %87 = tpu.reciprocal %86 {approx = true} : vector<32x1xf32> -> vector<32x1xf32>
    %88 = arith.truncf %84 : vector<32x32xf32> to vector<32x32xbf16>
    %cst_38 = arith.constant dense<0.000000e+00> : vector<32x4xf32>
    %89 = tpu.matmul %88, %77, %cst_38 {dimension_numbers = #tpu.dot_dimension_numbers<[1], [0], [0], [1], [0, 0, 1, 1], [], []>} : vector<32x32xbf16>, vector<32x4xbf16>, vector<32x4xf32> -> vector<32x4xf32>
    %90 = vector.broadcast %87 : vector<32x1xf32> to vector<32x4xf32>
    %91 = arith.mulf %89, %90 : vector<32x4xf32>
    %92 = arith.truncf %91 : vector<32x4xf32> to vector<32x4xbf16>
    %c2 = arith.constant 2 : index
    %c0_39 = arith.constant 0 : index
    %c0_40 = arith.constant 0 : index
    %93 = vector.load %arg9[%c2, %c0_39, %c0_40] : memref<8x4x32xbf16, #tpu.memory_space<vmem>>, vector<1x4x32xbf16>
    %94 = vector.shape_cast %93 : vector<1x4x32xbf16> to vector<4x32xbf16>
    %cst_41 = arith.constant dense<0.000000e+00> : vector<32x32xf32>
    %95 = tpu.matmul %92, %94, %cst_41 {dimension_numbers = #tpu.dot_dimension_numbers<[1], [0], [0], [1], [0, 0, 1, 1], [], []>} : vector<32x4xbf16>, vector<4x32xbf16>, vector<32x32xf32> -> vector<32x32xf32>
    %96 = arith.addf %71, %95 : vector<32x32xf32>
    %97 = vector.extract_strided_slice %8 {offsets = [0, 12], sizes = [32, 4], strides = [1, 1]} : vector<32x32xf32> to vector<32x4xf32>
    %98 = arith.truncf %97 : vector<32x4xf32> to vector<32x4xbf16>
    %99 = vector.extract_strided_slice %13 {offsets = [0, 12], sizes = [32, 4], strides = [1, 1]} : vector<32x32xf32> to vector<32x4xf32>
    %100 = arith.truncf %99 : vector<32x4xf32> to vector<32x4xbf16>
    %101 = vector.extract_strided_slice %18 {offsets = [0, 12], sizes = [32, 4], strides = [1, 1]} : vector<32x32xf32> to vector<32x4xf32>
    %102 = arith.truncf %101 : vector<32x4xf32> to vector<32x4xbf16>
    %cst_42 = arith.constant dense<0.000000e+00> : vector<32x32xf32>
    %103 = tpu.matmul %98, %100, %cst_42 {dimension_numbers = #tpu.dot_dimension_numbers<[1], [1], [0], [0], [0, 0, 1, 0], [], []>} : vector<32x4xbf16>, vector<32x4xbf16>, vector<32x32xf32> -> vector<32x32xf32>
    %104 = arith.addf %103, %2 : vector<32x32xf32>
    %cst_43 = arith.constant dense<0xFF800000> : vector<32xf32>
    %105 = vector.multi_reduction <maximumf>, %104, %cst_43 [1] : vector<32x32xf32> to vector<32xf32>
    %106 = vector.shape_cast %105 : vector<32xf32> to vector<32x1xf32>
    %107 = vector.broadcast %106 : vector<32x1xf32> to vector<32x32xf32>
    %108 = arith.subf %104, %107 : vector<32x32xf32>
    %109 = math.exp %108 : vector<32x32xf32>
    %cst_44 = arith.constant dense<0.000000e+00> : vector<32xf32>
    %110 = vector.multi_reduction <add>, %109, %cst_44 [1] : vector<32x32xf32> to vector<32xf32>
    %111 = vector.shape_cast %110 : vector<32xf32> to vector<32x1xf32>
    %112 = tpu.reciprocal %111 {approx = true} : vector<32x1xf32> -> vector<32x1xf32>
    %113 = arith.truncf %109 : vector<32x32xf32> to vector<32x32xbf16>
    %cst_45 = arith.constant dense<0.000000e+00> : vector<32x4xf32>
    %114 = tpu.matmul %113, %102, %cst_45 {dimension_numbers = #tpu.dot_dimension_numbers<[1], [0], [0], [1], [0, 0, 1, 1], [], []>} : vector<32x32xbf16>, vector<32x4xbf16>, vector<32x4xf32> -> vector<32x4xf32>
    %115 = vector.broadcast %112 : vector<32x1xf32> to vector<32x4xf32>
    %116 = arith.mulf %114, %115 : vector<32x4xf32>
    %117 = arith.truncf %116 : vector<32x4xf32> to vector<32x4xbf16>
    %c3 = arith.constant 3 : index
    %c0_46 = arith.constant 0 : index
    %c0_47 = arith.constant 0 : index
    %118 = vector.load %arg9[%c3, %c0_46, %c0_47] : memref<8x4x32xbf16, #tpu.memory_space<vmem>>, vector<1x4x32xbf16>
    %119 = vector.shape_cast %118 : vector<1x4x32xbf16> to vector<4x32xbf16>
    %cst_48 = arith.constant dense<0.000000e+00> : vector<32x32xf32>
    %120 = tpu.matmul %117, %119, %cst_48 {dimension_numbers = #tpu.dot_dimension_numbers<[1], [0], [0], [1], [0, 0, 1, 1], [], []>} : vector<32x4xbf16>, vector<4x32xbf16>, vector<32x32xf32> -> vector<32x32xf32>
    %121 = arith.addf %96, %120 : vector<32x32xf32>
    %122 = vector.extract_strided_slice %8 {offsets = [0, 16], sizes = [32, 4], strides = [1, 1]} : vector<32x32xf32> to vector<32x4xf32>
    %123 = arith.truncf %122 : vector<32x4xf32> to vector<32x4xbf16>
    %124 = vector.extract_strided_slice %13 {offsets = [0, 16], sizes = [32, 4], strides = [1, 1]} : vector<32x32xf32> to vector<32x4xf32>
    %125 = arith.truncf %124 : vector<32x4xf32> to vector<32x4xbf16>
    %126 = vector.extract_strided_slice %18 {offsets = [0, 16], sizes = [32, 4], strides = [1, 1]} : vector<32x32xf32> to vector<32x4xf32>
    %127 = arith.truncf %126 : vector<32x4xf32> to vector<32x4xbf16>
    %cst_49 = arith.constant dense<0.000000e+00> : vector<32x32xf32>
    %128 = tpu.matmul %123, %125, %cst_49 {dimension_numbers = #tpu.dot_dimension_numbers<[1], [1], [0], [0], [0, 0, 1, 0], [], []>} : vector<32x4xbf16>, vector<32x4xbf16>, vector<32x32xf32> -> vector<32x32xf32>
    %129 = arith.addf %128, %2 : vector<32x32xf32>
    %cst_50 = arith.constant dense<0xFF800000> : vector<32xf32>
    %130 = vector.multi_reduction <maximumf>, %129, %cst_50 [1] : vector<32x32xf32> to vector<32xf32>
    %131 = vector.shape_cast %130 : vector<32xf32> to vector<32x1xf32>
    %132 = vector.broadcast %131 : vector<32x1xf32> to vector<32x32xf32>
    %133 = arith.subf %129, %132 : vector<32x32xf32>
    %134 = math.exp %133 : vector<32x32xf32>
    %cst_51 = arith.constant dense<0.000000e+00> : vector<32xf32>
    %135 = vector.multi_reduction <add>, %134, %cst_51 [1] : vector<32x32xf32> to vector<32xf32>
    %136 = vector.shape_cast %135 : vector<32xf32> to vector<32x1xf32>
    %137 = tpu.reciprocal %136 {approx = true} : vector<32x1xf32> -> vector<32x1xf32>
    %138 = arith.truncf %134 : vector<32x32xf32> to vector<32x32xbf16>
    %cst_52 = arith.constant dense<0.000000e+00> : vector<32x4xf32>
    %139 = tpu.matmul %138, %127, %cst_52 {dimension_numbers = #tpu.dot_dimension_numbers<[1], [0], [0], [1], [0, 0, 1, 1], [], []>} : vector<32x32xbf16>, vector<32x4xbf16>, vector<32x4xf32> -> vector<32x4xf32>
    %140 = vector.broadcast %137 : vector<32x1xf32> to vector<32x4xf32>
    %141 = arith.mulf %139, %140 : vector<32x4xf32>
    %142 = arith.truncf %141 : vector<32x4xf32> to vector<32x4xbf16>
    %c4 = arith.constant 4 : index
    %c0_53 = arith.constant 0 : index
    %c0_54 = arith.constant 0 : index
    %143 = vector.load %arg9[%c4, %c0_53, %c0_54] : memref<8x4x32xbf16, #tpu.memory_space<vmem>>, vector<1x4x32xbf16>
    %144 = vector.shape_cast %143 : vector<1x4x32xbf16> to vector<4x32xbf16>
    %cst_55 = arith.constant dense<0.000000e+00> : vector<32x32xf32>
    %145 = tpu.matmul %142, %144, %cst_55 {dimension_numbers = #tpu.dot_dimension_numbers<[1], [0], [0], [1], [0, 0, 1, 1], [], []>} : vector<32x4xbf16>, vector<4x32xbf16>, vector<32x32xf32> -> vector<32x32xf32>
    %146 = arith.addf %121, %145 : vector<32x32xf32>
    %147 = vector.extract_strided_slice %8 {offsets = [0, 20], sizes = [32, 4], strides = [1, 1]} : vector<32x32xf32> to vector<32x4xf32>
    %148 = arith.truncf %147 : vector<32x4xf32> to vector<32x4xbf16>
    %149 = vector.extract_strided_slice %13 {offsets = [0, 20], sizes = [32, 4], strides = [1, 1]} : vector<32x32xf32> to vector<32x4xf32>
    %150 = arith.truncf %149 : vector<32x4xf32> to vector<32x4xbf16>
    %151 = vector.extract_strided_slice %18 {offsets = [0, 20], sizes = [32, 4], strides = [1, 1]} : vector<32x32xf32> to vector<32x4xf32>
    %152 = arith.truncf %151 : vector<32x4xf32> to vector<32x4xbf16>
    %cst_56 = arith.constant dense<0.000000e+00> : vector<32x32xf32>
    %153 = tpu.matmul %148, %150, %cst_56 {dimension_numbers = #tpu.dot_dimension_numbers<[1], [1], [0], [0], [0, 0, 1, 0], [], []>} : vector<32x4xbf16>, vector<32x4xbf16>, vector<32x32xf32> -> vector<32x32xf32>
    %154 = arith.addf %153, %2 : vector<32x32xf32>
    %cst_57 = arith.constant dense<0xFF800000> : vector<32xf32>
    %155 = vector.multi_reduction <maximumf>, %154, %cst_57 [1] : vector<32x32xf32> to vector<32xf32>
    %156 = vector.shape_cast %155 : vector<32xf32> to vector<32x1xf32>
    %157 = vector.broadcast %156 : vector<32x1xf32> to vector<32x32xf32>
    %158 = arith.subf %154, %157 : vector<32x32xf32>
    %159 = math.exp %158 : vector<32x32xf32>
    %cst_58 = arith.constant dense<0.000000e+00> : vector<32xf32>
    %160 = vector.multi_reduction <add>, %159, %cst_58 [1] : vector<32x32xf32> to vector<32xf32>
    %161 = vector.shape_cast %160 : vector<32xf32> to vector<32x1xf32>
    %162 = tpu.reciprocal %161 {approx = true} : vector<32x1xf32> -> vector<32x1xf32>
    %163 = arith.truncf %159 : vector<32x32xf32> to vector<32x32xbf16>
    %cst_59 = arith.constant dense<0.000000e+00> : vector<32x4xf32>
    %164 = tpu.matmul %163, %152, %cst_59 {dimension_numbers = #tpu.dot_dimension_numbers<[1], [0], [0], [1], [0, 0, 1, 1], [], []>} : vector<32x32xbf16>, vector<32x4xbf16>, vector<32x4xf32> -> vector<32x4xf32>
    %165 = vector.broadcast %162 : vector<32x1xf32> to vector<32x4xf32>
    %166 = arith.mulf %164, %165 : vector<32x4xf32>
    %167 = arith.truncf %166 : vector<32x4xf32> to vector<32x4xbf16>
    %c5 = arith.constant 5 : index
    %c0_60 = arith.constant 0 : index
    %c0_61 = arith.constant 0 : index
    %168 = vector.load %arg9[%c5, %c0_60, %c0_61] : memref<8x4x32xbf16, #tpu.memory_space<vmem>>, vector<1x4x32xbf16>
    %169 = vector.shape_cast %168 : vector<1x4x32xbf16> to vector<4x32xbf16>
    %cst_62 = arith.constant dense<0.000000e+00> : vector<32x32xf32>
    %170 = tpu.matmul %167, %169, %cst_62 {dimension_numbers = #tpu.dot_dimension_numbers<[1], [0], [0], [1], [0, 0, 1, 1], [], []>} : vector<32x4xbf16>, vector<4x32xbf16>, vector<32x32xf32> -> vector<32x32xf32>
    %171 = arith.addf %146, %170 : vector<32x32xf32>
    %172 = vector.extract_strided_slice %8 {offsets = [0, 24], sizes = [32, 4], strides = [1, 1]} : vector<32x32xf32> to vector<32x4xf32>
    %173 = arith.truncf %172 : vector<32x4xf32> to vector<32x4xbf16>
    %174 = vector.extract_strided_slice %13 {offsets = [0, 24], sizes = [32, 4], strides = [1, 1]} : vector<32x32xf32> to vector<32x4xf32>
    %175 = arith.truncf %174 : vector<32x4xf32> to vector<32x4xbf16>
    %176 = vector.extract_strided_slice %18 {offsets = [0, 24], sizes = [32, 4], strides = [1, 1]} : vector<32x32xf32> to vector<32x4xf32>
    %177 = arith.truncf %176 : vector<32x4xf32> to vector<32x4xbf16>
    %cst_63 = arith.constant dense<0.000000e+00> : vector<32x32xf32>
    %178 = tpu.matmul %173, %175, %cst_63 {dimension_numbers = #tpu.dot_dimension_numbers<[1], [1], [0], [0], [0, 0, 1, 0], [], []>} : vector<32x4xbf16>, vector<32x4xbf16>, vector<32x32xf32> -> vector<32x32xf32>
    %179 = arith.addf %178, %2 : vector<32x32xf32>
    %cst_64 = arith.constant dense<0xFF800000> : vector<32xf32>
    %180 = vector.multi_reduction <maximumf>, %179, %cst_64 [1] : vector<32x32xf32> to vector<32xf32>
    %181 = vector.shape_cast %180 : vector<32xf32> to vector<32x1xf32>
    %182 = vector.broadcast %181 : vector<32x1xf32> to vector<32x32xf32>
    %183 = arith.subf %179, %182 : vector<32x32xf32>
    %184 = math.exp %183 : vector<32x32xf32>
    %cst_65 = arith.constant dense<0.000000e+00> : vector<32xf32>
    %185 = vector.multi_reduction <add>, %184, %cst_65 [1] : vector<32x32xf32> to vector<32xf32>
    %186 = vector.shape_cast %185 : vector<32xf32> to vector<32x1xf32>
    %187 = tpu.reciprocal %186 {approx = true} : vector<32x1xf32> -> vector<32x1xf32>
    %188 = arith.truncf %184 : vector<32x32xf32> to vector<32x32xbf16>
    %cst_66 = arith.constant dense<0.000000e+00> : vector<32x4xf32>
    %189 = tpu.matmul %188, %177, %cst_66 {dimension_numbers = #tpu.dot_dimension_numbers<[1], [0], [0], [1], [0, 0, 1, 1], [], []>} : vector<32x32xbf16>, vector<32x4xbf16>, vector<32x4xf32> -> vector<32x4xf32>
    %190 = vector.broadcast %187 : vector<32x1xf32> to vector<32x4xf32>
    %191 = arith.mulf %189, %190 : vector<32x4xf32>
    %192 = arith.truncf %191 : vector<32x4xf32> to vector<32x4xbf16>
    %c6 = arith.constant 6 : index
    %c0_67 = arith.constant 0 : index
    %c0_68 = arith.constant 0 : index
    %193 = vector.load %arg9[%c6, %c0_67, %c0_68] : memref<8x4x32xbf16, #tpu.memory_space<vmem>>, vector<1x4x32xbf16>
    %194 = vector.shape_cast %193 : vector<1x4x32xbf16> to vector<4x32xbf16>
    %cst_69 = arith.constant dense<0.000000e+00> : vector<32x32xf32>
    %195 = tpu.matmul %192, %194, %cst_69 {dimension_numbers = #tpu.dot_dimension_numbers<[1], [0], [0], [1], [0, 0, 1, 1], [], []>} : vector<32x4xbf16>, vector<4x32xbf16>, vector<32x32xf32> -> vector<32x32xf32>
    %196 = arith.addf %171, %195 : vector<32x32xf32>
    %197 = vector.extract_strided_slice %8 {offsets = [0, 28], sizes = [32, 4], strides = [1, 1]} : vector<32x32xf32> to vector<32x4xf32>
    %198 = arith.truncf %197 : vector<32x4xf32> to vector<32x4xbf16>
    %199 = vector.extract_strided_slice %13 {offsets = [0, 28], sizes = [32, 4], strides = [1, 1]} : vector<32x32xf32> to vector<32x4xf32>
    %200 = arith.truncf %199 : vector<32x4xf32> to vector<32x4xbf16>
    %201 = vector.extract_strided_slice %18 {offsets = [0, 28], sizes = [32, 4], strides = [1, 1]} : vector<32x32xf32> to vector<32x4xf32>
    %202 = arith.truncf %201 : vector<32x4xf32> to vector<32x4xbf16>
    %cst_70 = arith.constant dense<0.000000e+00> : vector<32x32xf32>
    %203 = tpu.matmul %198, %200, %cst_70 {dimension_numbers = #tpu.dot_dimension_numbers<[1], [1], [0], [0], [0, 0, 1, 0], [], []>} : vector<32x4xbf16>, vector<32x4xbf16>, vector<32x32xf32> -> vector<32x32xf32>
    %204 = arith.addf %203, %2 : vector<32x32xf32>
    %cst_71 = arith.constant dense<0xFF800000> : vector<32xf32>
    %205 = vector.multi_reduction <maximumf>, %204, %cst_71 [1] : vector<32x32xf32> to vector<32xf32>
    %206 = vector.shape_cast %205 : vector<32xf32> to vector<32x1xf32>
    %207 = vector.broadcast %206 : vector<32x1xf32> to vector<32x32xf32>
    %208 = arith.subf %204, %207 : vector<32x32xf32>
    %209 = math.exp %208 : vector<32x32xf32>
    %cst_72 = arith.constant dense<0.000000e+00> : vector<32xf32>
    %210 = vector.multi_reduction <add>, %209, %cst_72 [1] : vector<32x32xf32> to vector<32xf32>
    %211 = vector.shape_cast %210 : vector<32xf32> to vector<32x1xf32>
    %212 = tpu.reciprocal %211 {approx = true} : vector<32x1xf32> -> vector<32x1xf32>
    %213 = vector.extract_strided_slice %209 {offsets = [0, 0], sizes = [8, 32], strides = [1, 1]} : vector<32x32xf32> to vector<8x32xf32>
    %214 = vector.extract_strided_slice %212 {offsets = [0, 0], sizes = [8, 1], strides = [1, 1]} : vector<32x1xf32> to vector<8x1xf32>
    %215 = vector.broadcast %214 : vector<8x1xf32> to vector<8x32xf32>
    %216 = arith.mulf %213, %215 : vector<8x32xf32>
    %c0_73 = arith.constant 0 : index
    %c0_74 = arith.constant 0 : index
    %c0_75 = arith.constant 0 : index
    %217 = vector.load %arg24[%c0_73, %c0_74, %c0_75] : memref<1x8x32xf32, #tpu.memory_space<vmem>>, vector<1x8x32xf32>
    %218 = vector.shape_cast %217 : vector<1x8x32xf32> to vector<8x32xf32>
    %219 = vector.shape_cast %216 : vector<8x32xf32> to vector<1x8x32xf32>
    tpu.vector_store %arg24[%c0_73, %c0_74, %c0_75], %219 {strides = array<i32>} : memref<1x8x32xf32, #tpu.memory_space<vmem>>, vector<1x8x32xf32>,
    %220 = arith.truncf %209 : vector<32x32xf32> to vector<32x32xbf16>
    %cst_76 = arith.constant dense<0.000000e+00> : vector<32x4xf32>
    %221 = tpu.matmul %220, %202, %cst_76 {dimension_numbers = #tpu.dot_dimension_numbers<[1], [0], [0], [1], [0, 0, 1, 1], [], []>} : vector<32x32xbf16>, vector<32x4xbf16>, vector<32x4xf32> -> vector<32x4xf32>
    %222 = vector.broadcast %212 : vector<32x1xf32> to vector<32x4xf32>
    %223 = arith.mulf %221, %222 : vector<32x4xf32>
    %224 = arith.truncf %223 : vector<32x4xf32> to vector<32x4xbf16>
    %c7 = arith.constant 7 : index
    %c0_77 = arith.constant 0 : index
    %c0_78 = arith.constant 0 : index
    %225 = vector.load %arg9[%c7, %c0_77, %c0_78] : memref<8x4x32xbf16, #tpu.memory_space<vmem>>, vector<1x4x32xbf16>
    %226 = vector.shape_cast %225 : vector<1x4x32xbf16> to vector<4x32xbf16>
    %cst_79 = arith.constant dense<0.000000e+00> : vector<32x32xf32>
    %227 = tpu.matmul %224, %226, %cst_79 {dimension_numbers = #tpu.dot_dimension_numbers<[1], [0], [0], [1], [0, 0, 1, 1], [], []>} : vector<32x4xbf16>, vector<4x32xbf16>, vector<32x32xf32> -> vector<32x32xf32>
    %228 = arith.addf %196, %227 : vector<32x32xf32>
    %c0_80 = arith.constant 0 : index
    %c0_81 = arith.constant 0 : index
    %229 = vector.load %arg11[%c0_80, %c0_81] : memref<1x32xf32, #tpu.memory_space<vmem>>, vector<1x32xf32>
    %c0_82 = arith.constant 0 : index
    %c0_83 = arith.constant 0 : index
    %230 = vector.load %arg12[%c0_82, %c0_83] : memref<1x32xf32, #tpu.memory_space<vmem>>, vector<1x32xf32>
    %cst_84 = arith.constant dense<0.000000e+00> : vector<32xf32>
    %231 = vector.multi_reduction <add>, %228, %cst_84 [1] : vector<32x32xf32> to vector<32xf32>
    %232 = vector.shape_cast %231 : vector<32xf32> to vector<32x1xf32>
    %cst_85 = arith.constant 3.200000e+01 : f32
    %233 = vector.broadcast %cst_85 : f32 to vector<32x1xf32>
    %234 = arith.divf %232, %233 : vector<32x1xf32>
    %235 = arith.mulf %228, %228 : vector<32x32xf32>
    %cst_86 = arith.constant dense<0.000000e+00> : vector<32xf32>
    %236 = vector.multi_reduction <add>, %235, %cst_86 [1] : vector<32x32xf32> to vector<32xf32>
    %237 = vector.shape_cast %236 : vector<32xf32> to vector<32x1xf32>
    %cst_87 = arith.constant 3.200000e+01 : f32
    %238 = vector.broadcast %cst_87 : f32 to vector<32x1xf32>
    %239 = arith.divf %237, %238 : vector<32x1xf32>
    %240 = arith.mulf %234, %234 : vector<32x1xf32>
    %241 = arith.subf %239, %240 : vector<32x1xf32>
    %242 = vector.broadcast %234 : vector<32x1xf32> to vector<32x32xf32>
    %243 = arith.subf %228, %242 : vector<32x32xf32>
    %cst_88 = arith.constant 9.99999974E-6 : f32
    %244 = vector.broadcast %cst_88 : f32 to vector<32x1xf32>
    %245 = arith.addf %241, %244 : vector<32x1xf32>
    %246 = math.rsqrt %245 : vector<32x1xf32>
    %247 = vector.broadcast %246 : vector<32x1xf32> to vector<32x32xf32>
    %248 = arith.mulf %243, %247 : vector<32x32xf32>
    %249 = vector.broadcast %229 : vector<1x32xf32> to vector<32x32xf32>
    %250 = arith.mulf %248, %249 : vector<32x32xf32>
    %251 = vector.broadcast %230 : vector<1x32xf32> to vector<32x32xf32>
    %252 = arith.addf %250, %251 : vector<32x32xf32>
    %253 = arith.truncf %252 : vector<32x32xf32> to vector<32x32xbf16>
    %c0_89 = arith.constant 0 : index
    %c0_90 = arith.constant 0 : index
    %254 = vector.load %arg13[%c0_89, %c0_90] : memref<32x32xbf16, #tpu.memory_space<vmem>>, vector<32x32xbf16>
    %cst_91 = arith.constant dense<0.000000e+00> : vector<32x32xf32>
    %255 = tpu.matmul %253, %254, %cst_91 {dimension_numbers = #tpu.dot_dimension_numbers<[1], [0], [0], [1], [0, 0, 1, 1], [], []>} : vector<32x32xbf16>, vector<32x32xbf16>, vector<32x32xf32> -> vector<32x32xf32>
    %c0_92 = arith.constant 0 : index
    %c0_93 = arith.constant 0 : index
    %256 = vector.load %arg14[%c0_92, %c0_93] : memref<1x32xf32, #tpu.memory_space<vmem>>, vector<1x32xf32>
    %257 = vector.broadcast %256 : vector<1x32xf32> to vector<32x32xf32>
    %258 = arith.addf %255, %257 : vector<32x32xf32>
    %cst_94 = arith.constant 5.000000e-01 : f32
    %259 = vector.broadcast %cst_94 : f32 to vector<32x32xf32>
    %260 = arith.mulf %259, %258 : vector<32x32xf32>
    %cst_95 = arith.constant 4.471500e-02 : f32
    %261 = vector.broadcast %cst_95 : f32 to vector<32x32xf32>
    %262 = arith.mulf %261, %258 : vector<32x32xf32>
    %263 = arith.mulf %262, %258 : vector<32x32xf32>
    %264 = arith.mulf %263, %258 : vector<32x32xf32>
    %265 = arith.addf %258, %264 : vector<32x32xf32>
    %cst_96 = arith.constant 0.797884583 : f32
    %266 = vector.broadcast %cst_96 : f32 to vector<32x32xf32>
    %267 = arith.mulf %266, %265 : vector<32x32xf32>
    %268 = math.tanh %267 : vector<32x32xf32>
    %cst_97 = arith.constant 1.000000e+00 : f32
    %269 = vector.broadcast %cst_97 : f32 to vector<32x32xf32>
    %270 = arith.addf %269, %268 : vector<32x32xf32>
    %271 = arith.mulf %260, %270 : vector<32x32xf32>
    %272 = arith.truncf %271 : vector<32x32xf32> to vector<32x32xbf16>
    %c0_98 = arith.constant 0 : index
    %c0_99 = arith.constant 0 : index
    %273 = vector.load %arg15[%c0_98, %c0_99] : memref<32x32xbf16, #tpu.memory_space<vmem>>, vector<32x32xbf16>
    %cst_100 = arith.constant dense<0.000000e+00> : vector<32x32xf32>
    %274 = tpu.matmul %272, %273, %cst_100 {dimension_numbers = #tpu.dot_dimension_numbers<[1], [0], [0], [1], [0, 0, 1, 1], [], []>} : vector<32x32xbf16>, vector<32x32xbf16>, vector<32x32xf32> -> vector<32x32xf32>
    %275 = arith.addf %252, %274 : vector<32x32xf32>
    %c0_101 = arith.constant 0 : index
    %c0_102 = arith.constant 0 : index
    %276 = vector.load %arg16[%c0_101, %c0_102] : memref<1x32xf32, #tpu.memory_space<vmem>>, vector<1x32xf32>
    %277 = vector.broadcast %276 : vector<1x32xf32> to vector<32x32xf32>
    %278 = arith.addf %275, %277 : vector<32x32xf32>
    %c0_103 = arith.constant 0 : index
    %c0_104 = arith.constant 0 : index
    %279 = vector.load %arg17[%c0_103, %c0_104] : memref<1x32xf32, #tpu.memory_space<vmem>>, vector<1x32xf32>
    %c0_105 = arith.constant 0 : index
    %c0_106 = arith.constant 0 : index
    %280 = vector.load %arg18[%c0_105, %c0_106] : memref<1x32xf32, #tpu.memory_space<vmem>>, vector<1x32xf32>
    %cst_107 = arith.constant dense<0.000000e+00> : vector<32xf32>
    %281 = vector.multi_reduction <add>, %278, %cst_107 [1] : vector<32x32xf32> to vector<32xf32>
    %282 = vector.shape_cast %281 : vector<32xf32> to vector<32x1xf32>
    %cst_108 = arith.constant 3.200000e+01 : f32
    %283 = vector.broadcast %cst_108 : f32 to vector<32x1xf32>
    %284 = arith.divf %282, %283 : vector<32x1xf32>
    %285 = arith.mulf %278, %278 : vector<32x32xf32>
    %cst_109 = arith.constant dense<0.000000e+00> : vector<32xf32>
    %286 = vector.multi_reduction <add>, %285, %cst_109 [1] : vector<32x32xf32> to vector<32xf32>
    %287 = vector.shape_cast %286 : vector<32xf32> to vector<32x1xf32>
    %cst_110 = arith.constant 3.200000e+01 : f32
    %288 = vector.broadcast %cst_110 : f32 to vector<32x1xf32>
    %289 = arith.divf %287, %288 : vector<32x1xf32>
    %290 = arith.mulf %284, %284 : vector<32x1xf32>
    %291 = arith.subf %289, %290 : vector<32x1xf32>
    %292 = vector.broadcast %284 : vector<32x1xf32> to vector<32x32xf32>
    %293 = arith.subf %278, %292 : vector<32x32xf32>
    %cst_111 = arith.constant 9.99999974E-6 : f32
    %294 = vector.broadcast %cst_111 : f32 to vector<32x1xf32>
    %295 = arith.addf %291, %294 : vector<32x1xf32>
    %296 = math.rsqrt %295 : vector<32x1xf32>
    %297 = vector.broadcast %296 : vector<32x1xf32> to vector<32x32xf32>
    %298 = arith.mulf %293, %297 : vector<32x32xf32>
    %299 = vector.broadcast %279 : vector<1x32xf32> to vector<32x32xf32>
    %300 = arith.mulf %298, %299 : vector<32x32xf32>
    %301 = vector.broadcast %280 : vector<1x32xf32> to vector<32x32xf32>
    %302 = arith.addf %300, %301 : vector<32x32xf32>
    %c0_112 = arith.constant 0 : index
    %c0_113 = arith.constant 0 : index
    %303 = vector.load %arg19[%c0_112, %c0_113] : memref<64x32xbf16, #tpu.memory_space<vmem>>, vector<64x32xbf16>
    %304 = arith.truncf %302 : vector<32x32xf32> to vector<32x32xbf16>
    %cst_114 = arith.constant dense<0.000000e+00> : vector<64x32xf32>
    %305 = tpu.matmul %303, %304, %cst_114 {dimension_numbers = #tpu.dot_dimension_numbers<[1], [0], [0], [1], [0, 0, 1, 1], [], []>} : vector<64x32xbf16>, vector<32x32xbf16>, vector<64x32xf32> -> vector<64x32xf32>
    %c0_115 = arith.constant 0 : index
    %c0_116 = arith.constant 0 : index
    %306 = vector.load %arg20[%c0_115, %c0_116] : memref<64x1xf32, #tpu.memory_space<vmem>>, vector<64x1xf32>
    %307 = vector.broadcast %306 : vector<64x1xf32> to vector<64x32xf32>
    %308 = arith.addf %305, %307 : vector<64x32xf32>
    %c0_117 = arith.constant 0 : index
    %c0_118 = arith.constant 0 : index
    %309 = vector.load %arg21[%c0_117, %c0_118] : memref<32x64xbf16, #tpu.memory_space<vmem>>, vector<32x64xbf16>
    %cst_119 = arith.constant 5.000000e-01 : f32
    %310 = vector.broadcast %cst_119 : f32 to vector<64x32xf32>
    %311 = arith.mulf %310, %308 : vector<64x32xf32>
    %cst_120 = arith.constant 4.471500e-02 : f32
    %312 = vector.broadcast %cst_120 : f32 to vector<64x32xf32>
    %313 = arith.mulf %312, %308 : vector<64x32xf32>
    %314 = arith.mulf %313, %308 : vector<64x32xf32>
    %315 = arith.mulf %314, %308 : vector<64x32xf32>
    %316 = arith.addf %308, %315 : vector<64x32xf32>
    %cst_121 = arith.constant 0.797884583 : f32
    %317 = vector.broadcast %cst_121 : f32 to vector<64x32xf32>
    %318 = arith.mulf %317, %316 : vector<64x32xf32>
    %319 = math.tanh %318 : vector<64x32xf32>
    %cst_122 = arith.constant 1.000000e+00 : f32
    %320 = vector.broadcast %cst_122 : f32 to vector<64x32xf32>
    %321 = arith.addf %320, %319 : vector<64x32xf32>
    %322 = arith.mulf %311, %321 : vector<64x32xf32>
    %323 = arith.truncf %322 : vector<64x32xf32> to vector<64x32xbf16>
    %cst_123 = arith.constant dense<0.000000e+00> : vector<32x32xf32>
    %324 = tpu.matmul %309, %323, %cst_123 {dimension_numbers = #tpu.dot_dimension_numbers<[1], [0], [0], [1], [0, 0, 1, 1], [], []>} : vector<32x64xbf16>, vector<64x32xbf16>, vector<32x32xf32> -> vector<32x32xf32>
    %c0_124 = arith.constant 0 : index
    %c0_125 = arith.constant 0 : index
    %325 = vector.load %arg22[%c0_124, %c0_125] : memref<32x1xf32, #tpu.memory_space<vmem>>, vector<32x1xf32>
    %326 = vector.broadcast %325 : vector<32x1xf32> to vector<32x32xf32>
    %327 = arith.addf %324, %326 : vector<32x32xf32>
    %328 = arith.addf %302, %327 : vector<32x32xf32>
    %c0_126 = arith.constant 0 : index
    %c0_127 = arith.constant 0 : index
    %c0_128 = arith.constant 0 : index
    %329 = vector.load %arg23[%c0_126, %c0_127, %c0_128] : memref<1x32x32xf32, #tpu.memory_space<vmem>>, vector<1x32x32xf32>
    %330 = vector.shape_cast %329 : vector<1x32x32xf32> to vector<32x32xf32>
    %331 = vector.shape_cast %328 : vector<32x32xf32> to vector<1x32x32xf32>
    tpu.vector_store %arg23[%c0_126, %c0_127, %c0_128], %331 {strides = array<i32>} : memref<1x32x32xf32, #tpu.memory_space<vmem>>, vector<1x32x32xf32>,
    return
  }
  func.func @transform_0(%arg0: i32) -> (i32, i32, i32) {
    %c0_i32 = arith.constant 0 : i32
    %c0_i32_0 = arith.constant 0 : i32
    %c0_i32_1 = arith.constant 0 : i32
    return %arg0, %c0_i32, %c0_i32_0 : i32, i32, i32
  }
  func.func @transform_1(%arg0: i32) -> (i32, i32) {
    %c0_i32 = arith.constant 0 : i32
    %c0_i32_0 = arith.constant 0 : i32
    %c0_i32_1 = arith.constant 0 : i32
    return %c0_i32, %c0_i32_0 : i32, i32
  }
  func.func @transform_2(%arg0: i32) -> (i32, i32) {
    %c0_i32 = arith.constant 0 : i32
    %c0_i32_0 = arith.constant 0 : i32
    %c0_i32_1 = arith.constant 0 : i32
    return %c0_i32, %c0_i32_0 : i32, i32
  }
  func.func @transform_3(%arg0: i32) -> (i32, i32) {
    %c0_i32 = arith.constant 0 : i32
    %c0_i32_0 = arith.constant 0 : i32
    %c0_i32_1 = arith.constant 0 : i32
    return %c0_i32, %c0_i32_0 : i32, i32
  }
  func.func @transform_4(%arg0: i32) -> (i32, i32) {
    %c0_i32 = arith.constant 0 : i32
    %c0_i32_0 = arith.constant 0 : i32
    %c0_i32_1 = arith.constant 0 : i32
    return %c0_i32, %c0_i32_0 : i32, i32
  }
  func.func @transform_5(%arg0: i32) -> (i32, i32) {
    %c0_i32 = arith.constant 0 : i32
    %c0_i32_0 = arith.constant 0 : i32
    %c0_i32_1 = arith.constant 0 : i32
    return %c0_i32, %c0_i32_0 : i32, i32
  }
  func.func @transform_6(%arg0: i32) -> (i32, i32) {
    %c0_i32 = arith.constant 0 : i32
    %c0_i32_0 = arith.constant 0 : i32
    %c0_i32_1 = arith.constant 0 : i32
    return %c0_i32, %c0_i32_0 : i32, i32
  }
  func.func @transform_7(%arg0: i32) -> (i32, i32) {
    %c0_i32 = arith.constant 0 : i32
    %c0_i32_0 = arith.constant 0 : i32
    %c0_i32_1 = arith.constant 0 : i32
    return %c0_i32, %c0_i32_0 : i32, i32
  }
  func.func @transform_8(%arg0: i32) -> (i32, i32, i32) {
    %c0_i32 = arith.constant 0 : i32
    %c0_i32_0 = arith.constant 0 : i32
    %c0_i32_1 = arith.constant 0 : i32
    %c0_i32_2 = arith.constant 0 : i32
    return %c0_i32, %c0_i32_0, %c0_i32_1 : i32, i32, i32
  }
  func.func @transform_9(%arg0: i32) -> (i32, i32) {
    %c0_i32 = arith.constant 0 : i32
    %c0_i32_0 = arith.constant 0 : i32
    %c0_i32_1 = arith.constant 0 : i32
    return %c0_i32, %c0_i32_0 : i32, i32
  }
  func.func @transform_10(%arg0: i32) -> (i32, i32) {
    %c0_i32 = arith.constant 0 : i32
    %c0_i32_0 = arith.constant 0 : i32
    %c0_i32_1 = arith.constant 0 : i32
    return %c0_i32, %c0_i32_0 : i32, i32
  }
  func.func @transform_11(%arg0: i32) -> (i32, i32) {
    %c0_i32 = arith.constant 0 : i32
    %c0_i32_0 = arith.constant 0 : i32
    %c0_i32_1 = arith.constant 0 : i32
    return %c0_i32, %c0_i32_0 : i32, i32
  }
  func.func @transform_12(%arg0: i32) -> (i32, i32) {
    %c0_i32 = arith.constant 0 : i32
    %c0_i32_0 = arith.constant 0 : i32
    %c0_i32_1 = arith.constant 0 : i32
    return %c0_i32, %c0_i32_0 : i32, i32
  }
  func.func @transform_13(%arg0: i32) -> (i32, i32) {
    %c0_i32 = arith.constant 0 : i32
    %c0_i32_0 = arith.constant 0 : i32
    %c0_i32_1 = arith.constant 0 : i32
    return %c0_i32, %c0_i32_0 : i32, i32
  }
  func.func @transform_14(%arg0: i32) -> (i32, i32) {
    %c0_i32 = arith.constant 0 : i32
    %c0_i32_0 = arith.constant 0 : i32
    %c0_i32_1 = arith.constant 0 : i32
    return %c0_i32, %c0_i32_0 : i32, i32
  }
  func.func @transform_15(%arg0: i32) -> (i32, i32) {
    %c0_i32 = arith.constant 0 : i32
    %c0_i32_0 = arith.constant 0 : i32
    %c0_i32_1 = arith.constant 0 : i32
    return %c0_i32, %c0_i32_0 : i32, i32
  }
  func.func @transform_16(%arg0: i32) -> (i32, i32) {
    %c0_i32 = arith.constant 0 : i32
    %c0_i32_0 = arith.constant 0 : i32
    %c0_i32_1 = arith.constant 0 : i32
    return %c0_i32, %c0_i32_0 : i32, i32
  }
  func.func @transform_17(%arg0: i32) -> (i32, i32) {
    %c0_i32 = arith.constant 0 : i32
    %c0_i32_0 = arith.constant 0 : i32
    %c0_i32_1 = arith.constant 0 : i32
    return %c0_i32, %c0_i32_0 : i32, i32
  }
  func.func @transform_18(%arg0: i32) -> (i32, i32) {
    %c0_i32 = arith.constant 0 : i32
    %c0_i32_0 = arith.constant 0 : i32
    %c0_i32_1 = arith.constant 0 : i32
    return %c0_i32, %c0_i32_0 : i32, i32
  }
  func.func @transform_19(%arg0: i32) -> (i32, i32) {
    %c0_i32 = arith.constant 0 : i32
    %c0_i32_0 = arith.constant 0 : i32
    %c0_i32_1 = arith.constant 0 : i32
    return %c0_i32, %c0_i32_0 : i32, i32
  }
  func.func @transform_20(%arg0: i32) -> (i32, i32) {
    %c0_i32 = arith.constant 0 : i32
    %c0_i32_0 = arith.constant 0 : i32
    %c0_i32_1 = arith.constant 0 : i32
    return %c0_i32, %c0_i32_0 : i32, i32
  }
  func.func @transform_21(%arg0: i32) -> (i32, i32) {
    %c0_i32 = arith.constant 0 : i32
    %c0_i32_0 = arith.constant 0 : i32
    %c0_i32_1 = arith.constant 0 : i32
    return %c0_i32, %c0_i32_0 : i32, i32
  }
  func.func @transform_22(%arg0: i32) -> (i32, i32, i32) {
    %c0_i32 = arith.constant 0 : i32
    %c0_i32_0 = arith.constant 0 : i32
    %c0_i32_1 = arith.constant 0 : i32
    return %arg0, %c0_i32, %c0_i32_0 : i32, i32, i32
  }
  func.func @transform_23(%arg0: i32) -> (i32, i32, i32) {
    %c0_i32 = arith.constant 0 : i32
    %c0_i32_0 = arith.constant 0 : i32
    %c0_i32_1 = arith.constant 0 : i32
    return %arg0, %c0_i32, %c0_i32_0 : i32, i32, i32
  }
}

</mosaic_0001>

<bundles_post_ra>
// kernel: tpu_custom_call.1
= control target key start
LH: loop header
LB: loop body
LE: loop exit
PB: predicated region body
PF: predicated region fallthrough
CT: control target
= control target key end

     0   :  { %s5894_s0 = inlined_call_operand.hbm [shape: f32[2,32,32], index: 0, kind: input, shape index: {}, may-alias: {0,22}]   ;;  %s5895_s1 = inlined_call_operand.vmem [shape: f32[32,32], index: 1, kind: input, shape index: {}]   ;;  %s5896_s2 = inlined_call_operand.vmem [shape: bf16[32,32], index: 2, kind: input, shape index: {}]   ;;  %s5897_s3 = inlined_call_operand.vmem [shape: f32[1,32], index: 3, kind: input, shape index: {}]   ;;  %s5898_s4 = inlined_call_operand.vmem [shape: bf16[32,32], index: 4, kind: input, shape index: {}]   ;;  %s5899_s5 = inlined_call_operand.vmem [shape: f32[1,32], index: 5, kind: input, shape index: {}]   ;;  %s5900_s6 = inlined_call_operand.vmem [shape: bf16[32,32], index: 6, kind: input, shape index: {}]   ;;  %s5901_s7 = inlined_call_operand.vmem [shape: f32[1,32], index: 7, kind: input, shape index: {}]   ;;  %s5902_s8 = inlined_call_operand.vmem [shape: bf16[8,4,32], index: 8, kind: input, shape index: {}]   ;;  %s5903_s9 = inlined_call_operand.vmem [shape: f32[1,32], index: 9, kind: input, shape index: {}]   ;;  %s5904_s10 = inlined_call_operand.vmem [shape: f32[1,32], index: 10, kind: input, shape index: {}]   ;;  %s5905_s11 = inlined_call_operand.vmem [shape: f32[1,32], index: 11, kind: input, shape index: {}]   ;;  %s5906_s12 = inlined_call_operand.vmem [shape: bf16[32,32], index: 12, kind: input, shape index: {}]   ;;  %s5907_s13 = inlined_call_operand.vmem [shape: f32[1,32], index: 13, kind: input, shape index: {}]   ;;  %s5908_s14 = inlined_call_operand.vmem [shape: bf16[32,32], index: 14, kind: input, shape index: {}]   ;;  %s5909_s15 = inlined_call_operand.vmem [shape: f32[1,32], index: 15, kind: input, shape index: {}]   ;;  %s5910_s16 = inlined_call_operand.vmem [shape: f32[1,32], index: 16, kind: input, shape index: {}]   ;;  %s5911_s17 = inlined_call_operand.vmem [shape: f32[1,32], index: 17, kind: input, shape index: {}]   ;;  %s5912_s18 = inlined_call_operand.vmem [shape: bf16[64,32], index: 18, kind: input, shape index: {}]   ;;  %s5913_s19 = inlined_call_operand.vmem [shape: f32[64,1], index: 19, kind: input, shape index: {}]   ;;  %s5914_s20 = inlined_call_operand.vmem [shape: bf16[32,64], index: 20, kind: input, shape index: {}]   ;;  %s5915_s21 = inlined_call_operand.vmem [shape: f32[32,1], index: 21, kind: input, shape index: {}]   ;;  %s5916_s22 = inlined_call_operand.hbm [shape: f32[2,32,32], index: 22, kind: output, shape index: {0}, may-alias: {0,22}]   ;;  %s5917_s23 = inlined_call_operand.hbm [shape: f32[2,8,32], index: 23, kind: output, shape index: {1}]  }
   0x1   :  { %5938 = sst [smem:[#allocation17_spill]] %s5894_s0 }
   0x2   :  { %5939 = sst [smem:[#allocation18_spill]] %s5895_s1 }
   0x3   :  { %5940 = sst [smem:[#allocation19_spill]] %s5896_s2 }
   0x4   :  { %5941 = sst [smem:[#allocation20_spill]] %s5897_s3 }
   0x5   :  { %5942 = sst [smem:[#allocation21_spill]] %s5898_s4 }
   0x6   :  { %5943 = sst [smem:[#allocation22_spill]] %s5899_s5 }
   0x7   :  { %5944 = sst [smem:[#allocation23_spill]] %s5900_s6 }
   0x8   :  { %5945 = sst [smem:[#allocation24_spill]] %s5901_s7 }
   0x9   :  { %5946 = sst [smem:[#allocation25_spill]] %s5902_s8 }
   0xa   :  { %5947 = sst [smem:[#allocation26_spill]] %s5903_s9 }
   0xb   :  { %5948 = sst [smem:[#allocation27_spill]] %s5904_s10 }
   0xc   :  { %5949 = sst [smem:[#allocation28_spill]] %s5905_s11 }
   0xd   :  { %5950 = sst [smem:[#allocation29_spill]] %s5906_s12 }
   0xe   :  { %5951 = sst [smem:[#allocation30_spill]] %s5916_s22 }
   0xf   :  { %5952 = sst [smem:[#allocation31_spill]] %s5917_s23 }
  0x10   :  { %29 = vsyncpa [#allocation3], 0 }
  0x11   :  { %31 = vsyncpa [#allocation3 + $0x1], 0 }
  0x12   :  { %32 = vsyncpa [#allocation4], 0 }
  0x13   :  { %34 = vsyncpa [#allocation4 + $0x1], 0 }
  0x14   :  { %35 = vsyncpa [#allocation7], 0 }
  0x15   :  { %37 = vsyncpa [#allocation7 + $0x1], 0  ;;  %s4815_s4 = smov 0   ;;  %s4817_s30 = smov 0  }
  0x16   :  { %s4819_s24 = smov 0   ;;  %s4821_s25 = smov 0  }
  0x17 LB: > { %5953 = sst [smem:[#allocation11_spill]] %s4666_s4  ;;  %s4836_s5 = sadd.s32 4294967295, %s4678_s25   ;;  %s4678_s25 = sphi %s4821_s25, %s5990_s25   ;;  %s4674_s24 = sphi %s4819_s24, %s5992_s24   ;;  %s4670_s30 = sphi %s4817_s30, %s5994_s30   ;;  %s4666_s4 = sphi %s4815_s4, %s5993_s4  }
  0x18   : > { %5954 = sst [smem:[#allocation12_spill]] %s4674_s24  ;;  %s3761_s1 = sadd.s32 4294967294, %s4678_s25  }
  0x19   : > { %5955 = sst [smem:[#allocation13_spill]] %s4836_s5  ;;  %s4840_s26 = sadd.s32 1, %s4678_s25  }
  0x1a   : > { %5956 = sst [smem:[#allocation14_spill]] %s4840_s26  ;;  %s50_s2 = sadd.s32 1, %s4674_s24 }
  0x1b   : > { %s47_s6 = ssub.s32 %s4678_s25, %s4840_s26  ;;  %p57_p0 = scmp.ne.s32.totalorder %s4674_s24, %s4670_s30 }
  0x1c   : > { %p48_p1 = scmp.eq.s32.totalorder %s47_s6, 0  ;;  %p58_p2 = scmp.eq.s32.totalorder %s4678_s25, 0 }
  0x1d   : > { %p63_p3 = scmp.ne.s32.totalorder %s4670_s30, %s4666_s4  ;;  %p64_p4 = scmp.eq.s32.totalorder %s4836_s5, 0 }
  0x1e   : > { %s4852_s27 = scalar_select %p48_p1, %s4674_s24, %s50_s2  }
  0x1f   : > { %p4854_p5 = por %p58_p2, %p57_p0  ;;  %p4858_p6 = por %p64_p4, %p63_p3 }
  0x20   : > { %5957 = sst [smem:[#allocation15_spill]] %s4852_s27  ;;  %p528_p7 = scmp.eq.s32.totalorder %s4836_s5, 1 }
  0x21   : > { %p534_p8 = scmp.eq.s32.totalorder %s3761_s1, 1  ;;  %p4310_p10 = scmp.lt.s32.totalorder %s4678_s25, 2 }
  0x22   : > { %p4865_p11 = por %p528_p7, %p57_p0  ;;  %s643_s0 = sand.u32 1, %s4674_s24  }
  0x23   : > { %p4869_p12 = por %p534_p8, %p63_p3  ;;  %s3875_s2 = sshll.u32 %s4678_s25, 9 }
  0x24   : > { %s5960_s29 = scalar_select %p4865_p11, 1, 0 }
  0x25   : > { %s5962_s3 = scalar_select %p4869_p12, 1, 0 }
  0x26   : > { %5961 = sst [smem:[#allocation16_spill]] %s5960_s29  ;;  %s3764_s6 = sshll.u32 %s643_s0, 5 }
  0x27   : > { %s5963_s4 = sld [smem:[#allocation17_spill]]  ;;  %s647_s1 = scalar_lea.vmem [#allocation2], %s3764_s6 }
  0x28   : > { %s654_s5 = sshll.u32 %s647_s1, 4  ;;  %p4882_p13 = pnand %p4310_p10, %p4854_p5  ;;  %s4886_s5 = int_to_ptr.vmem [resolvable:$true] %s654_s5 }
  0x29   : > { %s4888_s24 = scalar_lea.sflag [#allocation3], %s643_s0 }
  0x2a   : > { %p4552_p1 = pneg %p4882_p13 }
  0x2d   : > { %s5964_s22 = smov %s5963_s4  ;;  %s4878_s23 = scalar_lea.hbm %s5963_s4, %s3875_s2 }
  0x2e   : > { %s4550_s26 = scalar_lea.hbm %s4878_s23, 512  ;;  %s4555_s7 = scalar_lea.hbm %s5964_s22, 1024 }
  0x2f   : > { %p4551_p0 = scmp.ne.s32.totalorder %s4878_s23, %s4550_s26  ;;  %p4556_p4 = scmp.lt.u32.totalorder %s4878_s23, %s5964_s22 }
  0x30   : > { %p4557_p5 = scmp.lt.u32.totalorder %s4555_s7, %s4550_s26  ;;  %p4559_p8 = scmp.lt.u32.totalorder %s4550_s26, %s4878_s23 }
  0x31   : > { %p4553_p2 = pnand %p4552_p1, %p4551_p0 }
  0x32   : > { %p4558_p7 = por %p4557_p5, %p4556_p4 }
  0x33   : > { %p4554_p3 = pneg %p4553_p2 }
  0x34   : > { %p4560_p10 = por %p4559_p8, %p4558_p7 }
  0x36   : > { %p4561_p9 = pnand %p4560_p10, %p4554_p3 }
  0x38   : > { %4564 = shalt.err (!%p4561_p9)
}
  0x39   : > { %s4565_s0 = scalar_lea.vmem %s4886_s5, 512  ;;  %s4680_s1 = smov [#allocation2]  }
  0x3a   : > { %p4566_p0 = scmp.ne.s32.totalorder %s4886_s5, %s4565_s0  ;;  %s4570_s4 = sshll.u32 %s4680_s1, 4  ;;  %s4571_s4 = int_to_ptr.vmem [resolvable:$false] %s4570_s4 }
  0x3b   : > { %s4572_s27 = scalar_lea.vmem %s4571_s4, 1024  ;;  %p4573_p11 = scmp.lt.s32.totalorder %s4886_s5, %s4571_s4 }
  0x3c   : > { %p4568_p2 = pnand %p4566_p0, %p4552_p1  ;;  %p4574_p4 = scmp.lt.s32.totalorder %s4572_s27, %s4565_s0 }
  0x3e   : > { %p4569_p12 = pneg %p4568_p2  ;;  %p4575_p5 = por %p4574_p4, %p4573_p11 }
  0x40   : > { %p4576_p7 = pnand %p4575_p5, %p4569_p12 }
  0x42   : > { %4579 = shalt.err (!%p4576_p7)
}
  0x43   : > { %s4681_s26 = smov 128   ;;  %s4682_s7 = smov 8  }
  0x44   : > { %4302 = dma.hbm_to_vmem [thread:$0]  (!%p4882_p13), %s4878_s23, 512, %s4886_s5, %s4888_s24, %s4681_s26, %s4681_s26, %s4682_s7  }
  0x45   : > { %p3767_p9 = scmp.ge.s32.totalorder %s4678_s25, 1  ;;  %p662_p1 = scmp.lt.s32.totalorder %s4678_s25, 3 }
  0x47   : > { %p663_p3 = pnand %p3767_p9, %p662_p1 }
  0x48   : > { %s4919_s2 = sand.u32 (!%p663_p3), 1, %s4670_s30  }
  0x49   : > { %666 = sbr.rel (%p663_p3) target bundleno = 4067 (0xfe3), region = 108  ;;  %s5934_s6 = sshll.u32 (!%p663_p3), %s4919_s2, 5 }
  0x4a   : > { %s669_s0 = scalar_lea.sflag (!%p663_p3), [#allocation3], %s4919_s2  ;;  %s4925_s1 = scalar_lea.vmem (!%p663_p3), [#allocation2], %s5934_s6 }
  0x50   : > { %4653 = dma.done.wait (%p4858_p6), %s669_s0, 512  }
  0x51   : > { %4655 = vsyncadd (%p4858_p6), %s669_s0, 4294966784  ;;  %s5966_s5 = sld [smem:[#allocation21_spill]]  ;;  %v741_v2 = vld [vmem:[%s4925_s1] sm:$0xff]  ;;  %v742_v3 = vld [vmem:[%s4925_s1 + $0x8] sm:$0xff]  ;;  %vm774_vm0 = vcmask 261120   ;;  %s5967_s26 = sld [smem:[#allocation19_spill]] }
  0x52   : > { %v749_v4 = vpack.c.bf16 %v742_v3, %v741_v2  ;;  %v743_v6 = vld [vmem:[%s4925_s1 + $0x10] sm:$0xff]  ;;  %v744_v7 = vld [vmem:[%s4925_s1 + $0x18] sm:$0xff]  ;;  %s5968_s29 = sld [smem:[#allocation22_spill]]  ;;  %s5969_s27 = sld [smem:[#allocation20_spill]]  ;;  %vm991_vm1 = vcmask 31744   ;;  %vm1163_vm2 = vcmask 1041408  }
  0x53   : > { %v750_v9 = vpack.c.bf16 %v744_v7, %v743_v6  ;;  %s4683_s7 = smov 124   ;;  %s5970_s24 = sld [smem:[#allocation23_spill]]  ;;  %vm3560_vm3 = vcmask 523264  }
  0x54   : > { %4009 = vmatprep.mubr.msk.bf16.mxu1 %vm774_vm0, %v749_v4  ;;  %4001 = vmatprep.mubr.msk.bf16.mxu0 %vm774_vm0, %v749_v4  ;;  %s5972_s23 = sld [smem:[#allocation18_spill]]  ;;  %s5973_s4 = sld [smem:[#allocation24_spill]] }
  0x55   : > { %s4684_s28 = smov 120   ;;  %s5974_s8 = sld [smem:[#allocation25_spill]] }
  0x56   : > { %s4685_s6 = smov 116   ;;  %s5976_s9 = sld [smem:[#allocation26_spill]] }
  0x57   : > { %v4358_v0 = vld [vmem:[%s5966_s5] sm:$0xff]   ;;  %v4359_v1 = vld [vmem:[%s5966_s5 + $0x8] sm:$0xff]   ;;  %s5977_s12 = sld [smem:[#allocation29_spill]]  ;;  %s5978_s10 = sld [smem:[#allocation27_spill]] }
  0x58   : > { %4005 = vmatprep.subr.bf16.mxu1 %v4358_v0  ;;  %v4360_v5 = vld [vmem:[%s5967_s26] sm:$0xff]   ;;  %v4361_v8 = vld [vmem:[%s5967_s26 + $0x8] sm:$0xff]   ;;  %s5979_s11 = sld [smem:[#allocation28_spill]] }
  0x59   : > { %4006 = vmatpush3.bf16.msra.mxu1 %v4358_v0  ;;  %3997 = vmatprep.subr.bf16.mxu0 %v4360_v5  ;;  %v3776_v11 = vld [vmem:[%s5968_s29] ss:$0 sm:$0xff]  ;;  %s5971_s29 = smov %s5970_s24 }
  0x5a   : > { %4007 = vmatprep.subr.bf16.mxu1 %v4359_v1  ;;  %3998 = vmatpush3.bf16.msra.mxu0 %v4360_v5  ;;  %v3771_v14 = vld [vmem:[%s5969_s27] ss:$0 sm:$0xff]  ;;  %v4363_v34 = vld [vmem:[%s5971_s29 + $0x8] sm:$0xff]   ;;  %v5007_v44 = vld [vmem:[%s5972_s23 + $0x10] sm:$0xff] }
  0x5b   : > { %3999 = vmatprep.subr.bf16.mxu0 %v4361_v8  ;;  %v4362_v33 = vld [vmem:[%s5970_s24] sm:$0xff]   ;;  %v5012_v46 = vld [vmem:[%s5972_s23 + $0x8] sm:$0xff]  ;;  %v5021_v53 = vld [vmem:[%s5972_s23 + $0x18] sm:$0xff]  ;;  %s5975_s24 = smov 100  }
  0x5c   : > { %v5002_v42 = vld [vmem:[%s5972_s23] sm:$0xff] }
  0x5d   : > { %4008 = vmatpush3.bf16.msra.mxu1 %v4359_v1  ;;  %v3781_v61 = vld [vmem:[%s5973_s4] ss:$0 sm:$0xff]  ;;  %s4686_s4 = smov 112  }
  0x5e   : > { %4000 = vmatpush3.bf16.msra.mxu0 %v4361_v8 }
  0x5f   : > { %4013 = vmatprep.subr.bf16.mxu0 %v4362_v33 }
  0x60   : > { %4010 = vmatmul.mubr.msk.bf16.vlgmr.msra.gmra.mrb[0].mxu1 %vm774_vm0, %v750_v9 }
  0x61   : > { %4002 = vmatmul.mubr.msk.bf16.vlgmr.msra.gmra.mrb[0].mxu0 %vm774_vm0, %v750_v9 }
  0x62   : > { %4017 = vmatprep.mubr.msk.bf16.mxu0 %vm774_vm0, %v749_v4  ;;  %4014 = vmatpush3.bf16.msra.mxu0 %v4362_v33 }
  0x63   : > { %4015 = vmatprep.subr.bf16.mxu0 %v4363_v34 }
  0x66   : > { %4016 = vmatpush3.bf16.msra.mxu0 %v4363_v34 }
  0x69   : > { %4018 = vmatmul.mubr.msk.bf16.vlgmr.msra.gmra.mrb[4].mxu0 %vm774_vm0, %v750_v9 }
 0x133   : > { %v4011_v10 = vpop.f32.mrb[0].mxu1 }
 0x134   : > { %v887_v12 = vpop.f32.mrb[1].mxu1  ;;  %v896_v15 = vadd.f32 %v4011_v10, %v3776_v11  ;;  %v4003_v18 = vpop.f32.mrb[0].mxu0 }
 0x135   : > { %v4012_v13 = vpop.f32.mrb[2].mxu1  ;;  %v888_v19 = vadd.f32 %v3776_v11, %v887_v12  ;;  %v824_v21 = vadd.f32 %v4003_v18, %v3771_v14  ;;  %v815_v22 = vpop.f32.mrb[1].mxu0 }
 0x136   : > { %v899_v16 = vadd.f32 %v4012_v13, %v3776_v11  ;;  %v890_v17 = vpop.f32.mrb[3].mxu1  ;;  %v816_v24 = vadd.f32 %v3771_v14, %v815_v22  ;;  %v4004_v25 = vpop.f32.mrb[2].mxu0 }
 0x137   : > { %v891_v20 = vadd.f32 %v3776_v11, %v890_v17  ;;  %v827_v27 = vadd.f32 %v4004_v25, %v3771_v14  ;;  %v818_v28 = vpop.f32.mrb[3].mxu0 }
 0x138   : > { %v4958_v23 = vpack.c.bf16 %v899_v16, %v896_v15  ;;  %v819_v29 = vadd.f32 %v3771_v14, %v818_v28 }
 0x139   : > { %v4960_v26 = vpack.c.bf16 %v891_v20, %v888_v19  ;;  %v4968_v31 = vpack.c.bf16 %v827_v27, %v824_v21 }
 0x13a   : > { %v4970_v32 = vpack.c.bf16 %v819_v29, %v816_v24  ;;  %v1002_v35 = vsel %vm991_vm1, %v4958_v23, 0 }
 0x13b   : > { %1228 = vrot.lane.b32.xlu0 %v4960_v26, %s4683_s7  ;;  %4269 = vmatprep.subr.msk.bf16.mxu1 %vm991_vm1, %v4960_v26  ;;  %v999_v30 = vsel %vm991_vm1, %v4960_v26, 0 }
 0x13c   : > { %4022 = vmatpush3.bf16.xpose.msra.mxu1 %v999_v30  ;;  %1222 = vrot.lane.b32.xlu1 %v4970_v32, %s4683_s7  ;;  %v4019_v58 = vpop.f32.mrb[4].mxu0 }
 0x13d   : > { %4270 = vmatprep.subr.msk.bf16.mxu1 %vm991_vm1, %v4958_v23  ;;  %4025 = vmatprep.mubr.msk.bf16.mxu1 %vm991_vm1, %v4970_v32  ;;  %v959_v59 = vpop.f32.mrb[5].mxu0  ;;  %v968_v63 = vadd.f32 %v4019_v58, %v3781_v61 }
 0x13e   : > { %v4020_v60 = vpop.f32.mrb[6].mxu0  ;;  %v960_v0 = vadd.f32 %v3781_v61, %v959_v59 }
 0x13f   : > { %1230 = vrot.lane.b32.xlu0 %v4958_v23, %s4683_s7  ;;  %v962_v62 = vpop.f32.mrb[7].mxu0  ;;  %v971_v2 = vadd.f32 %v4020_v60, %v3781_v61 }
 0x140   : > { %1224 = vrot.lane.b32.xlu1 %v4968_v31, %s4683_s7  ;;  %v963_v1 = vadd.f32 %v3781_v61, %v962_v62 }
 0x141   : > { %v5034_v4 = vpack.c.bf16 %v971_v2, %v968_v63 }
 0x142   : > { %v5032_v3 = vpack.c.bf16 %v963_v1, %v960_v0 }
 0x144   : > { %4024 = vmatpush3.bf16.xpose.msra.mxu1 %v1002_v35  ;;  %4029 = vmatprep.subr.bf16.mxu0 %v5032_v3 }
 0x145   : > { %4030 = vmatpush3.bf16.msra.mxu0 %v5032_v3 }
 0x146   : > { %4031 = vmatprep.subr.bf16.mxu0 %v5034_v4 }
 0x149   : > { %4032 = vmatpush3.bf16.msra.mxu0 %v5034_v4 }
 0x14b   : > { %4026 = vmatmul.mubr.msk.bf16.vlgmr.msra.gmra.mrb[4].mxu1 %vm991_vm1, %v4968_v31 }
 0x1ad   : > { %v1229_v36 = vpop.permute.xlu0 %1228 }
 0x1ae   : > { %4272 = vmatprep.subr.msk.bf16.mxu1 %vm991_vm1, %v1229_v36  ;;  %v1239_v37 = vsel %vm991_vm1, %v1229_v36, 0  ;;  %v1223_v38 = vpop.permute.xlu1 %1222 }
 0x1af   : > { %4044 = vmatpush3.bf16.xpose.msra.mxu1 %v1239_v37  ;;  %4047 = vmatprep.mubr.msk.bf16.mxu1 %vm991_vm1, %v1223_v38 }
 0x1b1   : > { %v1231_v39 = vpop.permute.xlu0 %1230 }
 0x1b2   : > { %4273 = vmatprep.subr.msk.bf16.mxu1 %vm991_vm1, %v1231_v39  ;;  %v1242_v40 = vsel %vm991_vm1, %v1231_v39, 0  ;;  %v1225_v41 = vpop.permute.xlu1 %1224 }
 0x1b7   : > { %4046 = vmatpush3.bf16.xpose.msra.mxu1 %v1242_v40 }
 0x1be   : > { %4048 = vmatmul.mubr.msk.bf16.vlgmr.msra.gmra.mrb[8].mxu1 %vm991_vm1, %v1225_v41 }
 0x21e   : > { %v4027_v43 = vpop.f32.mrb[4].mxu1 }
 0x21f   : > { %v1038_v45 = vpop.f32.mrb[5].mxu1  ;;  %v1047_v50 = vadd.f32 %v4027_v43, %v5007_v44 }
 0x220   : > { %v1039_v47 = vadd.f32 %v1038_v45, %v5002_v42  ;;  %v4028_v48 = vpop.f32.mrb[6].mxu1 }
 0x221   : > { %v1041_v49 = vpop.f32.mrb[7].mxu1  ;;  %v1050_v55 = vadd.f32 %v4028_v48, %v5021_v53  ;;  %v1059_v56 = vsel %vm774_vm0, %v1047_v50, -inf }
 0x222   : > { %v1042_v51 = vadd.f32 %v1041_v49, %v5012_v46  ;;  %v1053_v52 = vsel %vm774_vm0, %v1039_v47, -inf }
 0x223   : > { %1054 = vmax.xlane.f32.xlu0 %v1053_v52  ;;  %v1062_v57 = vsel %vm774_vm0, %v1050_v55, -inf  ;;  %v1156_v52 = vld [vmem:[%s5974_s8] sm:$0x3] }
 0x224   : > { %v1056_v54 = vsel %vm774_vm0, %v1042_v51, -inf  ;;  %4271 = vmatprep.subr.msk.bf16.mxu0 %vm1163_vm2, %v1156_v52 }
 0x225   : > { %1057 = vmax.xlane.f32.xlu1 %v1056_v54  ;;  %v1165_v54 = vsel %vm1163_vm2, %v1156_v52, 0 }
 0x227   : > { %1060 = vmax.xlane.f32.xlu0 %v1059_v56 }
 0x22b   : > { %1063 = vmax.xlane.f32.xlu0 %v1062_v57 }
 0x236   : > { %1472 = vrot.lane.b32.xlu1 %v4960_v26, %s4684_s28 }
 0x23a   : > { %1468 = vrot.lane.b32.xlu1 %v4970_v32, %s4684_s28 }
 0x23e   : > { %1470 = vrot.lane.b32.xlu1 %v4968_v31, %s4684_s28 }
 0x241   : > { %1474 = vrot.lane.b32.xlu0 %v4958_v23, %s4684_s28 }
 0x291   : > { %v4049_v5 = vpop.f32.mrb[8].mxu1 }
 0x292   : > { %v5047_v6 = vadd.f32 %v4049_v5, %v5007_v44  ;;  %v1278_v7 = vpop.f32.mrb[9].mxu1 }
 0x293   : > { %v4050_v8 = vpop.f32.mrb[10].mxu1  ;;  %v5050_v9 = vadd.f32 %v1278_v7, %v5002_v42 }
 0x294   : > { %v1281_v10 = vpop.f32.mrb[11].mxu1  ;;  %v1299_v11 = vsel %vm774_vm0, %v5047_v6, -inf  ;;  %v1290_v49 = vadd.f32 %v4050_v8, %v5021_v53 }
 0x295   : > { %v5055_v12 = vadd.f32 %v1281_v10, %v5012_v46  ;;  %1300 = vmax.xlane.f32.xlu1 %v1299_v11  ;;  %v1293_v14 = vsel %vm774_vm0, %v5050_v9, -inf }
 0x297   : > { %v1296_v13 = vsel %vm774_vm0, %v5055_v12, -inf }
 0x298   : > { %1297 = vmax.xlane.f32.xlu0 %v1296_v13 }
 0x299   : > { %1294 = vmax.xlane.f32.xlu1 %v1293_v14 }
 0x2b0   : > { %v1055_v15 = vpop.xlane.xlu0 %1054 }
 0x2b1   : > { %v1065_v16 = vsub.f32 %v1039_v47, %v1055_v15 }
 0x2b2   : > { %v1058_v17 = vpop.xlane.xlu1 %1057 }
 0x2b3   : > { %v1069_v18 = vmul.f32 1.442695, %v1065_v16  ;;  %v1066_v19 = vsub.f32 %v1042_v51, %v1058_v17  ;;  %v1302_v51 = vsel %vm774_vm0, %v1290_v49, -inf }
 0x2b4   : > { %v1061_v20 = vpop.xlane.xlu0 %1060 }
 0x2b5   : > { %v1071_v21 = vmul.f32 1.442695, %v1066_v19  ;;  %v1067_v22 = vsub.f32 %v1047_v50, %v1061_v20  ;;  %4374 = vpow2.f32 %v1069_v18 }
 0x2b6   : > { %v1473_v24 = vpop.permute.xlu1 %1472 }
 0x2b7   : > { %4376 = vpow2.f32 %v1071_v21  ;;  %v1073_v25 = vmul.f32 1.442695, %v1067_v22  ;;  %4275 = vmatprep.subr.msk.bf16.mxu1 %vm991_vm1, %v1473_v24  ;;  %v1483_v27 = vsel %vm991_vm1, %v1473_v24, 0 }
 0x2b8   : > { %4066 = vmatpush3.bf16.xpose.msra.mxu1 %v1483_v27  ;;  %v1064_v28 = vpop.xlane.xlu0 %1063 }
 0x2b9   : > { %4378 = vpow2.f32 %v1073_v25  ;;  %v1068_v29 = vsub.f32 %v1050_v55, %v1064_v28 }
 0x2ba   : > { %v1469_v30 = vpop.permute.xlu1 %1468 }
 0x2bb   : > { %v1075_v33 = vmul.f32 1.442695, %v1068_v29  ;;  %4069 = vmatprep.mubr.msk.bf16.mxu1 %vm991_vm1, %v1469_v30 }
 0x2bc   : > { %v1475_v34 = vpop.permute.xlu0 %1474 }
 0x2bd   : > { %4380 = vpow2.f32 %v1075_v33  ;;  %4276 = vmatprep.subr.msk.bf16.mxu1 %vm991_vm1, %v1475_v34  ;;  %v1486_v35 = vsel %vm991_vm1, %v1475_v34, 0 }
 0x2be   : > { %v1471_v43 = vpop.permute.xlu1 %1470 }
 0x2bf   : > { %v4375_v36 = vpop.eup %4374 }
 0x2c0   : > { %4068 = vmatpush3.bf16.xpose.msra.mxu1 %v1486_v35  ;;  %v1077_v47 = vsel %vm774_vm0, %v4375_v36, 0.0 }
 0x2c1   : > { %v4377_v37 = vpop.eup %4376 }
 0x2c2   : > { %v1080_v38 = vsel %vm774_vm0, %v4377_v37, 0.0  ;;  %v1093_v39 = vpack.c.bf16 %v4377_v37, %v4375_v36 }
 0x2c3   : > { %v4379_v40 = vpop.eup %4378  ;;  %1081 = vadd.xlane.f32.xlu1 %v1080_v38 }
 0x2c4   : > { %4033 = vmatprep.mubr.msk.bf16.mxu0 %vm774_vm0, %v1093_v39  ;;  %v1083_v41 = vsel %vm774_vm0, %v4379_v40, 0.0 }
 0x2c5   : > { %1084 = vadd.xlane.f32.xlu0 %v1083_v41 }
 0x2c7   : > { %v4381_v45 = vpop.eup %4380  ;;  %4070 = vmatmul.mubr.msk.bf16.vlgmr.msra.gmra.mrb[12].mxu1 %vm991_vm1, %v1471_v43 }
 0x2c8   : > { %v1094_v48 = vpack.c.bf16 %v4381_v45, %v4379_v40  ;;  %v1086_v50 = vsel %vm774_vm0, %v4381_v45, 0.0 }
 0x2c9   : > { %1078 = vadd.xlane.f32.xlu0 %v1077_v47 }
 0x2ca   : > { %4034 = vmatmul.mubr.msk.bf16.vlgmr.msra.gmra.mrb[8].mxu0 %vm774_vm0, %v1094_v48 }
 0x2cb   : > { %4038 = vmatpush3.bf16.msra.mxu0 %v1165_v54 }
 0x2cd   : > { %1087 = vadd.xlane.f32.xlu0 %v1086_v50 }
 0x2d1   : > { %1303 = vmax.xlane.f32.xlu0 %v1302_v51 }
 0x2d4   : > { %1337 = vrot.lane.b32.xlu1 %v5032_v3, %s4683_s7 }
 0x2d8   : > { %1714 = vrot.lane.b32.xlu1 %v4960_v26, %s4685_s6 }
 0x2dc   : > { %1716 = vrot.lane.b32.xlu1 %v4958_v23, %s4685_s6 }
 0x2e0   : > { %1712 = vrot.lane.b32.xlu1 %v4968_v31, %s4685_s6 }
 0x2e7   : > { %1339 = vrot.lane.b32.xlu0 %v5034_v4, %s4683_s7 }
 0x2eb   : > { %1710 = vrot.lane.b32.xlu0 %v4970_v32, %s4685_s6 }
 0x322   : > { %v1301_v55 = vpop.xlane.xlu1 %1300 }
 0x323   : > { %v1307_v11 = vsub.f32 %v5047_v6, %v1301_v55 }
 0x325   : > { %v1298_v57 = vpop.xlane.xlu0 %1297  ;;  %v1313_v15 = vmul.f32 1.442695, %v1307_v11 }
 0x326   : > { %v1295_v56 = vpop.xlane.xlu1 %1294  ;;  %v1306_v13 = vsub.f32 %v5055_v12, %v1298_v57 }
 0x327   : > { %v1305_v14 = vsub.f32 %v5050_v9, %v1295_v56 }
 0x328   : > { %v1311_v16 = vmul.f32 1.442695, %v1306_v13 }
 0x329   : > { %v1309_v17 = vmul.f32 1.442695, %v1305_v14 }
 0x350   : > { %v1082_v58 = vpop.xlane.xlu1 %1081 }
 0x351   : > { %4382 = vrcp.f32 %v1082_v58 }
 0x352   : > { %v1085_v59 = vpop.xlane.xlu0 %1084 }
 0x353   : > { %4384 = vrcp.f32 %v1085_v59 }
 0x354   : > { %v5092_v60 = vpop.permute.xlu1 %1337 }
 0x355   : > { %4051 = vmatprep.subr.bf16.mxu0 %v5092_v60 }
 0x356   : > { %v1079_v61 = vpop.xlane.xlu0 %1078 }
 0x358   : > { %v1715_v62 = vpop.permute.xlu1 %1714 }
 0x359   : > { %4278 = vmatprep.subr.msk.bf16.mxu1 %vm991_vm1, %v1715_v62  ;;  %v1725_v63 = vsel %vm991_vm1, %v1715_v62, 0 }
 0x35a   : > { %4088 = vmatpush3.bf16.xpose.msra.mxu1 %v1725_v63  ;;  %v1088_v0 = vpop.xlane.xlu0 %1087 }
 0x35b   : > { %4386 = vrcp.f32 %v1088_v0  ;;  %v4383_v22 = vpop.eup %4382 }
 0x35c   : > { %v1717_v1 = vpop.permute.xlu1 %1716  ;;  %4388 = vrcp.f32 %v1079_v61  ;;  %v3797_v61 = vld [vmem:[%s5974_s8 + $0x2] sm:$0x3] }
 0x35d   : > { %4279 = vmatprep.subr.msk.bf16.mxu1 %vm991_vm1, %v1717_v1  ;;  %v1728_v5 = vsel %vm991_vm1, %v1717_v1, 0  ;;  %4390 = vpow2.f32 %v1313_v15  ;;  %v4385_v25 = vpop.eup %4384  ;;  %v1413_v62 = vsel %vm1163_vm2, %v3797_v61, 0 }
 0x35e   : > { %v1304_v2 = vpop.xlane.xlu0 %1303  ;;  %4392 = vpow2.f32 %v1311_v16 }
 0x35f   : > { %v1308_v18 = vsub.f32 %v1290_v49, %v1304_v2  ;;  %4394 = vpow2.f32 %v1309_v17 }
 0x360   : > { %v1713_v10 = vpop.permute.xlu1 %1712 }
 0x361   : > { %v1315_v20 = vmul.f32 1.442695, %v1308_v18 }
 0x362   : > { %4090 = vmatpush3.bf16.xpose.msra.mxu1 %v1728_v5  ;;  %v5099_v7 = vpop.permute.xlu0 %1339 }
 0x363   : > { %4396 = vpow2.f32 %v1315_v20 }
 0x365   : > { %v4387_v33 = vpop.eup %4386 }
 0x366   : > { %v1711_v8 = vpop.permute.xlu0 %1710  ;;  %v4389_v35 = vpop.eup %4388 }
 0x367   : > { %4091 = vmatprep.mubr.msk.bf16.mxu1 %vm991_vm1, %v1711_v8  ;;  %v4391_v40 = vpop.eup %4390 }
 0x368   : > { %v4393_v45 = vpop.eup %4392  ;;  %v1323_v51 = vsel %vm774_vm0, %v4391_v40, 0.0 }
 0x369   : > { %4092 = vmatmul.mubr.msk.bf16.vlgmr.msra.gmra.mrb[16].mxu1 %vm991_vm1, %v1713_v10  ;;  %v4395_v49 = vpop.eup %4394  ;;  %v1320_v52 = vsel %vm774_vm0, %v4393_v45, 0.0 }
 0x36a   : > { %v1333_v54 = vpack.c.bf16 %v4393_v45, %v4395_v49  ;;  %v1317_v55 = vsel %vm774_vm0, %v4395_v49, 0.0 }
 0x36d   : > { %v4397_v56 = vpop.eup %4396 }
 0x36e   : > { %v1326_v58 = vsel %vm774_vm0, %v4397_v56, 0.0  ;;  %v1334_v59 = vpack.c.bf16 %v4397_v56, %v4391_v40 }
 0x39a   : > { %v4071_v19 = vpop.f32.mrb[12].mxu1 }
 0x39b   : > { %v1522_v21 = vpop.f32.mrb[13].mxu1  ;;  %v5110_v27 = vadd.f32 %v4071_v19, %v5007_v44 }
 0x39c   : > { %v5107_v6 = vadd.f32 %v1522_v21, %v5002_v42  ;;  %v4072_v12 = vpop.f32.mrb[14].mxu1 }
 0x39d   : > { %v4035_v9 = vpop.f32.mrb[8].mxu0  ;;  %v1525_v24 = vpop.f32.mrb[15].mxu1  ;;  %v1543_v48 = vsel %vm774_vm0, %v5110_v27, -inf  ;;  %v1534_v57 = vadd.f32 %v4072_v12, %v5021_v53 }
 0x39e   : > { %v1526_v28 = vadd.f32 %v1525_v24, %v5012_v46  ;;  %v1135_v29 = vpop.f32.mrb[9].mxu0  ;;  %v1537_v30 = vsel %vm774_vm0, %v5107_v6, -inf  ;;  %v1152_v36 = vmul.f32 %v4385_v25, %v4035_v9 }
 0x39f   : > { %v4036_v34 = vpop.f32.mrb[10].mxu0  ;;  %1538 = vmax.xlane.f32.xlu1 %v1537_v30  ;;  %v1150_v41 = vmul.f32 %v4389_v35, %v1135_v29 }
 0x3a0   : > { %v1153_v37 = vmul.f32 %v4387_v33, %v4036_v34  ;;  %v1138_v38 = vpop.f32.mrb[11].mxu0  ;;  %v1540_v39 = vsel %vm774_vm0, %v1526_v28, -inf }
 0x3a1   : > { %v1151_v43 = vmul.f32 %v4383_v22, %v1138_v38  ;;  %1541 = vmax.xlane.f32.xlu0 %v1540_v39 }
 0x3a2   : > { %v1155_v47 = vpack.c.bf16 %v1153_v37, %v1152_v36 }
 0x3a3   : > { %v1154_v50 = vpack.c.bf16 %v1151_v43, %v1150_v41  ;;  %1544 = vmax.xlane.f32.xlu1 %v1543_v48 }
 0x3a5   : > { %1324 = vadd.xlane.f32.xlu0 %v1323_v51  ;;  %4039 = vmatprep.mubr.msk.bf16.mxu0 %vm991_vm1, %v1154_v50 }
 0x3a6   : > { %4040 = vmatmul.mubr.msk.bf16.vlgmr.msra.gmra.mrb[12].mxu0 %vm991_vm1, %v1155_v47 }
 0x3a7   : > { %4052 = vmatpush3.bf16.msra.mxu0 %v5092_v60  ;;  %1321 = vadd.xlane.f32.xlu1 %v1320_v52  ;;  %v1546_v60 = vsel %vm774_vm0, %v1534_v57, -inf }
 0x3a8   : > { %4053 = vmatprep.subr.bf16.mxu0 %v5099_v7  ;;  %4055 = vmatprep.mubr.msk.bf16.mxu0 %vm774_vm0, %v1333_v54 }
 0x3a9   : > { %1318 = vadd.xlane.f32.xlu0 %v1317_v55 }
 0x3ab   : > { %4054 = vmatpush3.bf16.msra.mxu0 %v5099_v7 }
 0x3ac   : > { %4274 = vmatprep.subr.msk.bf16.mxu0 %vm1163_vm2, %v3797_v61 }
 0x3ad   : > { %1327 = vadd.xlane.f32.xlu0 %v1326_v58 }
 0x3ae   : > { %4056 = vmatmul.mubr.msk.bf16.vlgmr.msra.gmra.mrb[16].mxu0 %vm774_vm0, %v1334_v59 }
 0x3af   : > { %4060 = vmatpush3.bf16.msra.mxu0 %v1413_v62 }
 0x3b1   : > { %1547 = vmax.xlane.f32.xlu0 %v1546_v60 }
 0x3b8   : > { %1579 = vrot.lane.b32.xlu1 %v5032_v3, %s4684_s28 }
 0x3bc   : > { %1956 = vrot.lane.b32.xlu1 %v4960_v26, %s4686_s4 }
 0x3c0   : > { %1958 = vrot.lane.b32.xlu1 %v4958_v23, %s4686_s4 }
 0x3c4   : > { %1954 = vrot.lane.b32.xlu1 %v4968_v31, %s4686_s4 }
 0x3c7   : > { %1581 = vrot.lane.b32.xlu0 %v5034_v4, %s4684_s28  ;;  %s4687_s28 = smov 108  }
 0x3cb   : > { %1952 = vrot.lane.b32.xlu0 %v4970_v32, %s4686_s4 }
 0x42c   : > { %v1539_v63 = vpop.xlane.xlu1 %1538 }
 0x42d   : > { %v1549_v0 = vsub.f32 %v5107_v6, %v1539_v63 }
 0x42e   : > { %v1542_v1 = vpop.xlane.xlu0 %1541 }
 0x42f   : > { %v1553_v2 = vmul.f32 1.442695, %v1549_v0  ;;  %v1550_v5 = vsub.f32 %v1526_v28, %v1542_v1 }
 0x430   : > { %v1545_v7 = vpop.xlane.xlu1 %1544 }
 0x431   : > { %v1555_v8 = vmul.f32 1.442695, %v1550_v5  ;;  %v1551_v10 = vsub.f32 %v5110_v27, %v1545_v7  ;;  %4398 = vpow2.f32 %v1553_v2 }
 0x432   : > { %v1325_v11 = vpop.xlane.xlu0 %1324 }
 0x433   : > { %4400 = vpow2.f32 %v1555_v8  ;;  %v1557_v14 = vmul.f32 1.442695, %v1551_v10  ;;  %v3804_v8 = vld [vmem:[%s5974_s8 + $0x4] sm:$0x3] }
 0x434   : > { %v5150_v13 = vpop.xlane.xlu1 %1321  ;;  %v1655_v10 = vsel %vm1163_vm2, %v3804_v8, 0 }
 0x435   : > { %4402 = vpow2.f32 %v1557_v14 }
 0x436   : > { %v1319_v15 = vpop.xlane.xlu0 %1318 }
 0x438   : > { %v5152_v16 = vpop.permute.xlu1 %1579 }
 0x439   : > { %4073 = vmatprep.subr.bf16.mxu0 %v5152_v16 }
 0x43a   : > { %v1328_v17 = vpop.xlane.xlu0 %1327 }
 0x43b   : > { %v5155_v18 = vpop.eup %4398 }
 0x43c   : > { %v1957_v19 = vpop.permute.xlu1 %1956  ;;  %v4093_v20 = vpop.f32.mrb[16].mxu1  ;;  %v1561_v47 = vsel %vm774_vm0, %v5155_v18, 0.0 }
 0x43d   : > { %v5157_v21 = vpop.eup %4400  ;;  %v1764_v6 = vpop.f32.mrb[17].mxu1  ;;  %4281 = vmatprep.subr.msk.bf16.mxu1 %vm991_vm1, %v1957_v19  ;;  %v1967_v12 = vsel %vm991_vm1, %v1957_v19, 0  ;;  %v5167_v29 = vadd.f32 %v4093_v20, %v5007_v44 }
 0x43e   : > { %v5162_v22 = vadd.f32 %v1764_v6, %v5002_v42  ;;  %v4094_v9 = vpop.f32.mrb[18].mxu1  ;;  %4110 = vmatpush3.bf16.xpose.msra.mxu1 %v1967_v12  ;;  %v1548_v24 = vpop.xlane.xlu0 %1547  ;;  %v1577_v25 = vpack.c.bf16 %v5157_v21, %v5155_v18  ;;  %v1564_v45 = vsel %vm774_vm0, %v5157_v21, 0.0 }
 0x43f   : > { %v1552_v27 = vsub.f32 %v1534_v57, %v1548_v24  ;;  %v1767_v28 = vpop.f32.mrb[19].mxu1  ;;  %v4403_v38 = vpop.eup %4402  ;;  %v1785_v39 = vsel %vm774_vm0, %v5167_v29, -inf  ;;  %v5188_v50 = vadd.f32 %v4094_v9, %v5021_v53 }
 0x440   : > { %v5170_v30 = vadd.f32 %v1767_v28, %v5012_v46  ;;  %v1959_v33 = vpop.permute.xlu1 %1958  ;;  %v1779_v34 = vsel %vm774_vm0, %v5162_v22, -inf  ;;  %v1567_v43 = vsel %vm774_vm0, %v4403_v38, 0.0 }
 0x441   : > { %v1559_v35 = vmul.f32 1.442695, %v1552_v27  ;;  %4282 = vmatprep.subr.msk.bf16.mxu1 %vm991_vm1, %v1959_v33  ;;  %1780 = vmax.xlane.f32.xlu1 %v1779_v34  ;;  %v1970_v40 = vsel %vm991_vm1, %v1959_v33, 0  ;;  %v1788_v54 = vsel %vm774_vm0, %v5188_v50, -inf }
 0x442   : > { %v1582_v36 = vpop.permute.xlu0 %1581  ;;  %v1782_v37 = vsel %vm774_vm0, %v5170_v30, -inf }
 0x443   : > { %4404 = vpow2.f32 %v1559_v35  ;;  %1783 = vmax.xlane.f32.xlu0 %v1782_v37 }
 0x444   : > { %v1955_v48 = vpop.permute.xlu1 %1954  ;;  %4406 = vrcp.f32 %v1325_v11 }
 0x445   : > { %1786 = vmax.xlane.f32.xlu1 %v1785_v39  ;;  %4408 = vrcp.f32 %v1319_v15 }
 0x446   : > { %4112 = vmatpush3.bf16.xpose.msra.mxu1 %v1970_v40  ;;  %v1953_v41 = vpop.permute.xlu0 %1952  ;;  %4410 = vrcp.f32 %v1328_v17 }
 0x447   : > { %1568 = vadd.xlane.f32.xlu0 %v1567_v43  ;;  %4113 = vmatprep.mubr.msk.bf16.mxu1 %vm991_vm1, %v1953_v41  ;;  %4412 = vrcp.f32 %v5150_v13 }
 0x449   : > { %1565 = vadd.xlane.f32.xlu1 %v1564_v45 }
 0x44b   : > { %1562 = vadd.xlane.f32.xlu0 %v1561_v47 }
 0x44d   : > { %v4405_v49 = vpop.eup %4404  ;;  %4114 = vmatmul.mubr.msk.bf16.vlgmr.msra.gmra.mrb[20].mxu1 %vm991_vm1, %v1955_v48 }
 0x44e   : > { %v1570_v51 = vsel %vm774_vm0, %v4405_v49, 0.0  ;;  %v1578_v52 = vpack.c.bf16 %v4405_v49, %v4403_v38  ;;  %v4407_v55 = vpop.eup %4406 }
 0x44f   : > { %1571 = vadd.xlane.f32.xlu0 %v1570_v51  ;;  %v4409_v57 = vpop.eup %4408 }
 0x450   : > { %v4411_v59 = vpop.eup %4410 }
 0x451   : > { %v4413_v62 = vpop.eup %4412 }
 0x453   : > { %1789 = vmax.xlane.f32.xlu0 %v1788_v54 }
 0x45a   : > { %1821 = vrot.lane.b32.xlu1 %v5032_v3, %s4685_s6 }
 0x45e   : > { %2198 = vrot.lane.b32.xlu1 %v4960_v26, %s4687_s28 }
 0x462   : > { %2200 = vrot.lane.b32.xlu1 %v4958_v23, %s4687_s28 }
 0x466   : > { %2196 = vrot.lane.b32.xlu1 %v4968_v31, %s4687_s28 }
 0x469   : > { %1823 = vrot.lane.b32.xlu0 %v5034_v4, %s4685_s6  ;;  %s4688_s6 = smov 104  }
 0x46d   : > { %2194 = vrot.lane.b32.xlu0 %v4970_v32, %s4687_s28 }
 0x481   : > { %v4057_v56 = vpop.f32.mrb[16].mxu0 }
 0x482   : > { %v1383_v58 = vpop.f32.mrb[17].mxu0  ;;  %v1400_v63 = vmul.f32 %v4407_v55, %v4057_v56 }
 0x483   : > { %v1398_v60 = vmul.f32 %v4409_v57, %v1383_v58  ;;  %v4058_v61 = vpop.f32.mrb[18].mxu0 }
 0x484   : > { %v1401_v0 = vmul.f32 %v4411_v59, %v4058_v61  ;;  %v1386_v1 = vpop.f32.mrb[19].mxu0 }
 0x485   : > { %v1399_v2 = vmul.f32 %v4413_v62, %v1386_v1 }
 0x486   : > { %v1403_v5 = vpack.c.bf16 %v1401_v0, %v1400_v63 }
 0x487   : > { %v1402_v7 = vpack.c.bf16 %v1399_v2, %v1398_v60 }
 0x489   : > { %4061 = vmatprep.mubr.msk.bf16.mxu0 %vm991_vm1, %v1402_v7 }
 0x48a   : > { %4062 = vmatmul.mubr.msk.bf16.vlgmr.msra.gmra.mrb[12].mxu0 %vm991_vm1, %v1403_v5 }
 0x48b   : > { %4074 = vmatpush3.bf16.msra.mxu0 %v5152_v16  ;;  %4077 = vmatprep.mubr.msk.bf16.mxu0 %vm774_vm0, %v1577_v25 }
 0x48c   : > { %4075 = vmatprep.subr.bf16.mxu0 %v1582_v36 }
 0x48f   : > { %4076 = vmatpush3.bf16.msra.mxu0 %v1582_v36 }
 0x490   : > { %4277 = vmatprep.subr.msk.bf16.mxu0 %vm1163_vm2, %v3804_v8 }
 0x492   : > { %4078 = vmatmul.mubr.msk.bf16.vlgmr.msra.gmra.mrb[20].mxu0 %vm774_vm0, %v1578_v52 }
 0x493   : > { %4082 = vmatpush3.bf16.msra.mxu0 %v1655_v10 }
 0x4ce   : > { %v1781_v11 = vpop.xlane.xlu1 %1780 }
 0x4cf   : > { %v1791_v13 = vsub.f32 %v5162_v22, %v1781_v11 }
 0x4d0   : > { %v1784_v14 = vpop.xlane.xlu0 %1783 }
 0x4d1   : > { %v1795_v15 = vmul.f32 1.442695, %v1791_v13  ;;  %v1792_v16 = vsub.f32 %v5170_v30, %v1784_v14 }
 0x4d2   : > { %v1787_v17 = vpop.xlane.xlu1 %1786 }
 0x4d3   : > { %v1797_v18 = vmul.f32 1.442695, %v1792_v16  ;;  %4414 = vpow2.f32 %v1795_v15  ;;  %v1793_v12 = vsub.f32 %v5167_v29, %v1787_v17 }
 0x4d4   : > { %v5221_v19 = vpop.xlane.xlu0 %1568 }
 0x4d5   : > { %4416 = vpow2.f32 %v1797_v18  ;;  %v1799_v28 = vmul.f32 1.442695, %v1793_v12  ;;  %v3811_v18 = vld [vmem:[%s5974_s8 + $0x6] sm:$0x3] }
 0x4d6   : > { %v5223_v20 = vpop.xlane.xlu1 %1565 }
 0x4d7   : > { %4418 = vpow2.f32 %v1799_v28 }
 0x4d8   : > { %v1563_v21 = vpop.xlane.xlu0 %1562 }
 0x4da   : > { %v5225_v6 = vpop.permute.xlu1 %1821 }
 0x4db   : > { %4095 = vmatprep.subr.bf16.mxu0 %v5225_v6 }
 0x4dc   : > { %v1572_v22 = vpop.xlane.xlu0 %1571 }
 0x4dd   : > { %v5229_v9 = vpop.eup %4414 }
 0x4de   : > { %v2199_v24 = vpop.permute.xlu1 %2198  ;;  %v1803_v59 = vsel %vm774_vm0, %v5229_v9, 0.0 }
 0x4df   : > { %v5231_v25 = vpop.eup %4416  ;;  %v2209_v27 = vsel %vm991_vm1, %v2199_v24, 0  ;;  %4284 = vmatprep.subr.msk.bf16.mxu1 %vm991_vm1, %v2199_v24 }
 0x4e0   : > { %4132 = vmatpush3.bf16.xpose.msra.mxu1 %v2209_v27  ;;  %v1790_v30 = vpop.xlane.xlu0 %1789  ;;  %v1819_v33 = vpack.c.bf16 %v5231_v25, %v5229_v9  ;;  %v1806_v58 = vsel %vm774_vm0, %v5231_v25, 0.0 }
 0x4e1   : > { %v1794_v34 = vsub.f32 %v5188_v50, %v1790_v30  ;;  %v5243_v39 = vpop.eup %4418 }
 0x4e2   : > { %v2201_v35 = vpop.permute.xlu1 %2200  ;;  %v1809_v57 = vsel %vm774_vm0, %v5243_v39, 0.0 }
 0x4e3   : > { %v1801_v29 = vmul.f32 1.442695, %v1794_v34  ;;  %4285 = vmatprep.subr.msk.bf16.mxu1 %vm991_vm1, %v2201_v35  ;;  %v2212_v37 = vsel %vm991_vm1, %v2201_v35, 0 }
 0x4e4   : > { %v5239_v36 = vpop.permute.xlu0 %1823 }
 0x4e5   : > { %4420 = vpow2.f32 %v1801_v29 }
 0x4e6   : > { %v2197_v40 = vpop.permute.xlu1 %2196  ;;  %4422 = vrcp.f32 %v5221_v19  ;;  %v1897_v19 = vsel %vm1163_vm2, %v3811_v18, 0 }
 0x4e7   : > { %4424 = vrcp.f32 %v1563_v21 }
 0x4e8   : > { %4134 = vmatpush3.bf16.xpose.msra.mxu1 %v2212_v37  ;;  %v2195_v38 = vpop.permute.xlu0 %2194  ;;  %4426 = vrcp.f32 %v1572_v22 }
 0x4e9   : > { %4135 = vmatprep.mubr.msk.bf16.mxu1 %vm991_vm1, %v2195_v38  ;;  %4428 = vrcp.f32 %v5223_v20 }
 0x4ef   : > { %v4421_v41 = vpop.eup %4420  ;;  %4136 = vmatmul.mubr.msk.bf16.vlgmr.msra.gmra.mrb[24].mxu1 %vm991_vm1, %v2197_v40 }
 0x4f0   : > { %v1820_v43 = vpack.c.bf16 %v4421_v41, %v5243_v39  ;;  %v1812_v61 = vsel %vm774_vm0, %v4421_v41, 0.0  ;;  %v4423_v63 = vpop.eup %4422 }
 0x4f1   : > { %v4425_v1 = vpop.eup %4424 }
 0x4f2   : > { %v4427_v7 = vpop.eup %4426 }
 0x4f3   : > { %v4429_v11 = vpop.eup %4428 }
 0x520   : > { %v4115_v45 = vpop.f32.mrb[20].mxu1 }
 0x521   : > { %v2006_v47 = vpop.f32.mrb[21].mxu1  ;;  %v5249_v51 = vadd.f32 %v4115_v45, %v5007_v44 }
 0x522   : > { %v2007_v48 = vadd.f32 %v2006_v47, %v5002_v42  ;;  %v4116_v49 = vpop.f32.mrb[22].mxu1 }
 0x523   : > { %v2009_v50 = vpop.f32.mrb[23].mxu1  ;;  %v2027_v56 = vsel %vm774_vm0, %v5249_v51, -inf  ;;  %v5263_v60 = vadd.f32 %v4116_v49, %v5021_v53 }
 0x524   : > { %v2010_v52 = vadd.f32 %v2009_v50, %v5012_v46  ;;  %v2021_v54 = vsel %vm774_vm0, %v2007_v48, -inf }
 0x525   : > { %2022 = vmax.xlane.f32.xlu1 %v2021_v54  ;;  %v2030_v62 = vsel %vm774_vm0, %v5263_v60, -inf }
 0x526   : > { %v2024_v55 = vsel %vm774_vm0, %v2010_v52, -inf }
 0x527   : > { %2025 = vmax.xlane.f32.xlu0 %v2024_v55 }
 0x529   : > { %2028 = vmax.xlane.f32.xlu1 %v2027_v56 }
 0x52b   : > { %1810 = vadd.xlane.f32.xlu0 %v1809_v57 }
 0x52d   : > { %1807 = vadd.xlane.f32.xlu1 %v1806_v58 }
 0x52f   : > { %1804 = vadd.xlane.f32.xlu0 %v1803_v59 }
 0x533   : > { %1813 = vadd.xlane.f32.xlu0 %v1812_v61 }
 0x537   : > { %2031 = vmax.xlane.f32.xlu0 %v2030_v62 }
 0x53e   : > { %2063 = vrot.lane.b32.xlu1 %v5032_v3, %s4686_s4 }
 0x542   : > { %2440 = vrot.lane.b32.xlu1 %v4960_v26, %s4688_s6 }
 0x546   : > { %2442 = vrot.lane.b32.xlu1 %v4958_v23, %s4688_s6 }
 0x54a   : > { %2438 = vrot.lane.b32.xlu1 %v4968_v31, %s4688_s6 }
 0x54d   : > { %2065 = vrot.lane.b32.xlu0 %v5034_v4, %s4686_s4  ;;  %s5935_s4 = smov 100  }
 0x551   : > { %2436 = vrot.lane.b32.xlu0 %v4970_v32, %s4688_s6 }
 0x565   : > { %v4079_v0 = vpop.f32.mrb[20].mxu0 }
 0x566   : > { %v1642_v2 = vmul.f32 %v4423_v63, %v4079_v0  ;;  %v1625_v5 = vpop.f32.mrb[21].mxu0 }
 0x567   : > { %v1640_v8 = vmul.f32 %v4425_v1, %v1625_v5  ;;  %v4080_v10 = vpop.f32.mrb[22].mxu0 }
 0x568   : > { %v1643_v13 = vmul.f32 %v4427_v7, %v4080_v10  ;;  %v1628_v14 = vpop.f32.mrb[23].mxu0 }
 0x569   : > { %v1641_v15 = vmul.f32 %v4429_v11, %v1628_v14 }
 0x56a   : > { %v1645_v16 = vpack.c.bf16 %v1643_v13, %v1642_v2 }
 0x56b   : > { %v1644_v17 = vpack.c.bf16 %v1641_v15, %v1640_v8 }
 0x56d   : > { %4083 = vmatprep.mubr.msk.bf16.mxu0 %vm991_vm1, %v1644_v17 }
 0x56e   : > { %4084 = vmatmul.mubr.msk.bf16.vlgmr.msra.gmra.mrb[12].mxu0 %vm991_vm1, %v1645_v16 }
 0x56f   : > { %4096 = vmatpush3.bf16.msra.mxu0 %v5225_v6  ;;  %4099 = vmatprep.mubr.msk.bf16.mxu0 %vm774_vm0, %v1819_v33 }
 0x570   : > { %4097 = vmatprep.subr.bf16.mxu0 %v5239_v36 }
 0x573   : > { %4098 = vmatpush3.bf16.msra.mxu0 %v5239_v36 }
 0x574   : > { %4280 = vmatprep.subr.msk.bf16.mxu0 %vm1163_vm2, %v3811_v18 }
 0x576   : > { %4100 = vmatmul.mubr.msk.bf16.vlgmr.msra.gmra.mrb[24].mxu0 %vm774_vm0, %v1820_v43 }
 0x577   : > { %4104 = vmatpush3.bf16.msra.mxu0 %v1897_v19 }
 0x5b2   : > { %v2023_v20 = vpop.xlane.xlu1 %2022 }
 0x5b3   : > { %v2033_v21 = vsub.f32 %v2007_v48, %v2023_v20  ;;  %v3818_v20 = vld [vmem:[%s5974_s8 + $0x8] sm:$0x3] }
 0x5b4   : > { %v2026_v6 = vpop.xlane.xlu0 %2025 }
 0x5b5   : > { %v2037_v12 = vmul.f32 1.442695, %v2033_v21  ;;  %v2034_v22 = vsub.f32 %v2010_v52, %v2026_v6 }
 0x5b6   : > { %v2029_v9 = vpop.xlane.xlu1 %2028 }
 0x5b7   : > { %v2039_v24 = vmul.f32 1.442695, %v2034_v22  ;;  %v2035_v25 = vsub.f32 %v5249_v51, %v2029_v9  ;;  %4430 = vpow2.f32 %v2037_v12  ;;  %v2139_v9 = vsel %vm1163_vm2, %v3818_v20, 0 }
 0x5b8   : > { %v1811_v27 = vpop.xlane.xlu0 %1810 }
 0x5b9   : > { %4432 = vpow2.f32 %v2039_v24  ;;  %v2041_v30 = vmul.f32 1.442695, %v2035_v25 }
 0x5ba   : > { %v5298_v28 = vpop.xlane.xlu1 %1807 }
 0x5bb   : > { %4434 = vpow2.f32 %v2041_v30 }
 0x5bc   : > { %v1805_v33 = vpop.xlane.xlu0 %1804 }
 0x5be   : > { %v5300_v34 = vpop.permute.xlu1 %2063 }
 0x5bf   : > { %4117 = vmatprep.subr.bf16.mxu0 %v5300_v34 }
 0x5c0   : > { %v1814_v35 = vpop.xlane.xlu0 %1813 }
 0x5c1   : > { %v5303_v29 = vpop.eup %4430 }
 0x5c2   : > { %v2441_v36 = vpop.permute.xlu1 %2440  ;;  %v4137_v37 = vpop.f32.mrb[24].mxu1  ;;  %v2045_v61 = vsel %vm774_vm0, %v5303_v29, 0.0 }
 0x5c3   : > { %v5305_v38 = vpop.eup %4432  ;;  %v2451_v39 = vsel %vm991_vm1, %v2441_v36, 0  ;;  %v2248_v40 = vpop.f32.mrb[25].mxu1  ;;  %4287 = vmatprep.subr.msk.bf16.mxu1 %vm991_vm1, %v2441_v36  ;;  %v5316_v50 = vadd.f32 %v4137_v37, %v5007_v44 }
 0x5c4   : > { %v5310_v41 = vadd.f32 %v2248_v40, %v5002_v42  ;;  %v4138_v43 = vpop.f32.mrb[26].mxu1  ;;  %4154 = vmatpush3.bf16.xpose.msra.mxu1 %v2451_v39  ;;  %v2032_v45 = vpop.xlane.xlu0 %2031  ;;  %v2061_v47 = vpack.c.bf16 %v5305_v38, %v5303_v29 }
 0x5c5   : > { %v2036_v48 = vsub.f32 %v5263_v60, %v2032_v45  ;;  %v2251_v49 = vpop.f32.mrb[27].mxu1  ;;  %v5326_v57 = vpop.eup %4434  ;;  %v2269_v44 = vsel %vm774_vm0, %v5316_v50, -inf  ;;  %v2048_v60 = vsel %vm774_vm0, %v5305_v38, 0.0  ;;  %v5340_v0 = vadd.f32 %v4138_v43, %v5021_v53 }
 0x5c6   : > { %v5319_v51 = vadd.f32 %v2251_v49, %v5012_v46  ;;  %v2443_v52 = vpop.permute.xlu1 %2442  ;;  %v2263_v42 = vsel %vm774_vm0, %v5310_v41, -inf  ;;  %v2051_v59 = vsel %vm774_vm0, %v5326_v57, 0.0 }
 0x5c7   : > { %v2043_v54 = vmul.f32 1.442695, %v2036_v48  ;;  %4288 = vmatprep.subr.msk.bf16.mxu1 %vm991_vm1, %v2443_v52  ;;  %2264 = vmax.xlane.f32.xlu1 %v2263_v42  ;;  %v2454_v46 = vsel %vm991_vm1, %v2443_v52, 0  ;;  %v2272_v5 = vsel %vm774_vm0, %v5340_v0, -inf }
 0x5c8   : > { %v2066_v55 = vpop.permute.xlu0 %2065  ;;  %v2266_v56 = vsel %vm774_vm0, %v5319_v51, -inf }
 0x5c9   : > { %4436 = vpow2.f32 %v2043_v54  ;;  %2267 = vmax.xlane.f32.xlu0 %v2266_v56  ;;  %v5406_v56 = vld [vmem:[%s5972_s23] sm:$0xff] }
 0x5ca   : > { %v2439_v62 = vpop.permute.xlu1 %2438  ;;  %4438 = vrcp.f32 %v1811_v27 }
 0x5cb   : > { %2270 = vmax.xlane.f32.xlu1 %v2269_v44  ;;  %4440 = vrcp.f32 %v1805_v33 }
 0x5cc   : > { %4156 = vmatpush3.bf16.xpose.msra.mxu1 %v2454_v46  ;;  %v2437_v58 = vpop.permute.xlu0 %2436  ;;  %4442 = vrcp.f32 %v1814_v35 }
 0x5cd   : > { %2052 = vadd.xlane.f32.xlu0 %v2051_v59  ;;  %4157 = vmatprep.mubr.msk.bf16.mxu1 %vm991_vm1, %v2437_v58  ;;  %4444 = vrcp.f32 %v5298_v28  ;;  %v5412_v58 = vld [vmem:[%s5972_s23 + $0x10] sm:$0xff] }
 0x5cf   : > { %2049 = vadd.xlane.f32.xlu1 %v2048_v60  ;;  %v5420_v60 = vld [vmem:[%s5972_s23 + $0x8] sm:$0xff] }
 0x5d1   : > { %2046 = vadd.xlane.f32.xlu0 %v2045_v61 }
 0x5d3   : > { %v4437_v63 = vpop.eup %4436  ;;  %4158 = vmatmul.mubr.msk.bf16.vlgmr.msra.gmra.mrb[28].mxu1 %vm991_vm1, %v2439_v62 }
 0x5d4   : > { %v2054_v1 = vsel %vm774_vm0, %v4437_v63, 0.0  ;;  %v2062_v2 = vpack.c.bf16 %v4437_v63, %v5326_v57  ;;  %v4439_v53 = vpop.eup %4438 }
 0x5d5   : > { %2055 = vadd.xlane.f32.xlu0 %v2054_v1 }
 0x5d9   : > { %2273 = vmax.xlane.f32.xlu0 %v2272_v5 }
 0x5e0   : > { %2305 = vrot.lane.b32.xlu1 %v5032_v3, %s4687_s28 }
 0x5e4   : > { %2682 = vrot.lane.b32.xlu1 %v4960_v26, %s5935_s4  ;;  %v4441_v26 = vpop.eup %4440 }
 0x5e8   : > { %2684 = vrot.lane.b32.xlu1 %v4958_v23, %s5935_s4  ;;  %v4443_v23 = vpop.eup %4442 }
 0x5ec   : > { %2680 = vrot.lane.b32.xlu1 %v4968_v31, %s5935_s4  ;;  %v4445_v31 = vpop.eup %4444 }
 0x5ef   : > { %2307 = vrot.lane.b32.xlu0 %v5034_v4, %s4687_s28 }
 0x5f3   : > { %2678 = vrot.lane.b32.xlu0 %v4970_v32, %s5935_s4  ;;  %s3770_s4 = sshll.u32 %s4919_s2, 3 }
 0x5f4   : > { %s5554_s0 = scalar_lea.vmem [#allocation6], %s3770_s4  ;;  %s5980_s4 = sld [smem:[#allocation13_spill]] }
 0x649   : > { %v4101_v7 = vpop.f32.mrb[24].mxu0 }
 0x64a   : > { %v1884_v8 = vmul.f32 %v4439_v53, %v4101_v7  ;;  %v1867_v10 = vpop.f32.mrb[25].mxu0  ;;  %v5436_v53 = vld [vmem:[%s5972_s23 + $0x18] sm:$0xff] }
 0x64b   : > { %v1882_v11 = vmul.f32 %v4441_v26, %v1867_v10  ;;  %v4102_v13 = vpop.f32.mrb[26].mxu0 }
 0x64c   : > { %v1885_v14 = vmul.f32 %v4443_v23, %v4102_v13  ;;  %v1870_v15 = vpop.f32.mrb[27].mxu0 }
 0x64d   : > { %v1883_v16 = vmul.f32 %v4445_v31, %v1870_v15 }
 0x64e   : > { %v1887_v17 = vpack.c.bf16 %v1885_v14, %v1884_v8 }
 0x64f   : > { %v1886_v18 = vpack.c.bf16 %v1883_v16, %v1882_v11 }
 0x651   : > { %4105 = vmatprep.mubr.msk.bf16.mxu0 %vm991_vm1, %v1886_v18 }
 0x652   : > { %4106 = vmatmul.mubr.msk.bf16.vlgmr.msra.gmra.mrb[12].mxu0 %vm991_vm1, %v1887_v17 }
 0x653   : > { %4118 = vmatpush3.bf16.msra.mxu0 %v5300_v34  ;;  %4121 = vmatprep.mubr.msk.bf16.mxu0 %vm774_vm0, %v2061_v47 }
 0x654   : > { %4119 = vmatprep.subr.bf16.mxu0 %v2066_v55  ;;  %v2265_v32 = vpop.xlane.xlu1 %2264 }
 0x655   : > { %v2275_v19 = vsub.f32 %v5310_v41, %v2265_v32 }
 0x656   : > { %v2268_v21 = vpop.xlane.xlu0 %2267 }
 0x657   : > { %v2279_v6 = vmul.f32 1.442695, %v2275_v19  ;;  %4120 = vmatpush3.bf16.msra.mxu0 %v2066_v55  ;;  %v2276_v12 = vsub.f32 %v5319_v51, %v2268_v21 }
 0x658   : > { %v2271_v22 = vpop.xlane.xlu1 %2270  ;;  %4283 = vmatprep.subr.msk.bf16.mxu0 %vm1163_vm2, %v3818_v20 }
 0x659   : > { %v2281_v24 = vmul.f32 1.442695, %v2276_v12  ;;  %4446 = vpow2.f32 %v2279_v6  ;;  %v2277_v33 = vsub.f32 %v5316_v50, %v2271_v22  ;;  %v3825_v22 = vld [vmem:[%s5974_s8 + $0xa] sm:$0x3] }
 0x65a   : > { %4122 = vmatmul.mubr.msk.bf16.vlgmr.msra.gmra.mrb[28].mxu0 %vm774_vm0, %v2062_v2  ;;  %v5374_v25 = vpop.xlane.xlu0 %2052 }
 0x65b   : > { %4448 = vpow2.f32 %v2281_v24  ;;  %4126 = vmatpush3.bf16.msra.mxu0 %v2139_v9  ;;  %v2283_v38 = vmul.f32 1.442695, %v2277_v33 }
 0x65c   : > { %v5376_v27 = vpop.xlane.xlu1 %2049 }
 0x65d   : > { %4450 = vpow2.f32 %v2283_v38 }
 0x65e   : > { %v2047_v28 = vpop.xlane.xlu0 %2046 }
 0x660   : > { %v5378_v30 = vpop.permute.xlu1 %2305 }
 0x661   : > { %4139 = vmatprep.subr.bf16.mxu0 %v5378_v30 }
 0x662   : > { %v2056_v34 = vpop.xlane.xlu0 %2055 }
 0x663   : > { %v5382_v35 = vpop.eup %4446 }
 0x664   : > { %v2683_v29 = vpop.permute.xlu1 %2682  ;;  %v2287_v5 = vsel %vm774_vm0, %v5382_v35, 0.0 }
 0x665   : > { %v5384_v36 = vpop.eup %4448  ;;  %v2693_v37 = vsel %vm991_vm1, %v2683_v29, 0  ;;  %4290 = vmatprep.subr.msk.bf16.mxu1 %vm991_vm1, %v2683_v29 }
 0x666   : > { %4176 = vmatpush3.bf16.xpose.msra.mxu1 %v2693_v37  ;;  %v2274_v39 = vpop.xlane.xlu0 %2273  ;;  %v2303_v40 = vpack.c.bf16 %v5384_v36, %v5382_v35  ;;  %v2290_v2 = vsel %vm774_vm0, %v5384_v36, 0.0 }
 0x667   : > { %v2278_v41 = vsub.f32 %v5340_v0, %v2274_v39  ;;  %v5396_v50 = vpop.eup %4450 }
 0x668   : > { %v2685_v43 = vpop.permute.xlu1 %2684  ;;  %v2293_v1 = vsel %vm774_vm0, %v5396_v50, 0.0 }
 0x669   : > { %v2285_v45 = vmul.f32 1.442695, %v2278_v41  ;;  %4291 = vmatprep.subr.msk.bf16.mxu1 %vm991_vm1, %v2685_v43  ;;  %v2696_v48 = vsel %vm991_vm1, %v2685_v43, 0 }
 0x66a   : > { %v5392_v47 = vpop.permute.xlu0 %2307 }
 0x66b   : > { %4452 = vpow2.f32 %v2285_v45 }
 0x66c   : > { %v2681_v51 = vpop.permute.xlu1 %2680  ;;  %4454 = vrcp.f32 %v5374_v25 }
 0x66d   : > { %4456 = vrcp.f32 %v2047_v28  ;;  %v2381_v28 = vsel %vm1163_vm2, %v3825_v22, 0 }
 0x66e   : > { %4178 = vmatpush3.bf16.xpose.msra.mxu1 %v2696_v48  ;;  %v2679_v49 = vpop.permute.xlu0 %2678  ;;  %4458 = vrcp.f32 %v2056_v34 }
 0x66f   : > { %4179 = vmatprep.mubr.msk.bf16.mxu1 %vm991_vm1, %v2679_v49  ;;  %4460 = vrcp.f32 %v5376_v27 }
 0x675   : > { %v5398_v52 = vpop.eup %4452  ;;  %4180 = vmatmul.mubr.msk.bf16.vlgmr.msra.gmra.mrb[32].mxu1 %vm991_vm1, %v2681_v51 }
 0x676   : > { %v2304_v42 = vpack.c.bf16 %v5398_v52, %v5396_v50  ;;  %v2296_v26 = vsel %vm774_vm0, %v5398_v52, 0.0  ;;  %v4455_v10 = vpop.eup %4454 }
 0x677   : > { %v4457_v11 = vpop.eup %4456 }
 0x678   : > { %v4459_v14 = vpop.eup %4458 }
 0x679   : > { %v4461_v17 = vpop.eup %4460 }
 0x6a6   : > { %v4159_v54 = vpop.f32.mrb[28].mxu1 }
 0x6a7   : > { %v2490_v55 = vpop.f32.mrb[29].mxu1  ;;  %v5415_v59 = vadd.f32 %v5412_v58, %v4159_v54 }
 0x6a8   : > { %v2491_v57 = vadd.f32 %v5406_v56, %v2490_v55  ;;  %v4160_v44 = vpop.f32.mrb[30].mxu1 }
 0x6a9   : > { %v2493_v46 = vpop.f32.mrb[31].mxu1  ;;  %v2511_v0 = vsel %vm774_vm0, %v5415_v59, -inf  ;;  %v5439_v7 = vadd.f32 %v5436_v53, %v4160_v44 }
 0x6aa   : > { %v2494_v61 = vadd.f32 %v5420_v60, %v2493_v46  ;;  %v2505_v62 = vsel %vm774_vm0, %v2491_v57, -inf }
 0x6ab   : > { %2506 = vmax.xlane.f32.xlu1 %v2505_v62  ;;  %v2514_v8 = vsel %vm774_vm0, %v5439_v7, -inf }
 0x6ac   : > { %v2508_v63 = vsel %vm774_vm0, %v2494_v61, -inf }
 0x6ad   : > { %2509 = vmax.xlane.f32.xlu0 %v2508_v63 }
 0x6af   : > { %2512 = vmax.xlane.f32.xlu1 %v2511_v0 }
 0x6b1   : > { %2294 = vadd.xlane.f32.xlu0 %v2293_v1 }
 0x6b3   : > { %2291 = vadd.xlane.f32.xlu1 %v2290_v2 }
 0x6b5   : > { %2288 = vadd.xlane.f32.xlu0 %v2287_v5 }
 0x6b9   : > { %2297 = vadd.xlane.f32.xlu0 %v2296_v26 }
 0x6bd   : > { %2515 = vmax.xlane.f32.xlu0 %v2514_v8 }
 0x6c4   : > { %2547 = vrot.lane.b32.xlu1 %v5032_v3, %s4688_s6 }
 0x6d3   : > { %2549 = vrot.lane.b32.xlu0 %v5034_v4, %s4688_s6  ;;  %s5981_s6 = sld [smem:[#allocation16_spill]] }
 0x6d9   : > { %p5983_p11 = scmp.ne.s32.totalorder %s5981_s6, 0 }
 0x72d   : > { %v4123_v23 = vpop.f32.mrb[28].mxu0 }
 0x72e   : > { %v2126_v13 = vmul.f32 %v4455_v10, %v4123_v23  ;;  %v2109_v31 = vpop.f32.mrb[29].mxu0 }
 0x72f   : > { %v2124_v15 = vmul.f32 %v4457_v11, %v2109_v31  ;;  %v4124_v16 = vpop.f32.mrb[30].mxu0 }
 0x730   : > { %v2127_v18 = vmul.f32 %v4459_v14, %v4124_v16  ;;  %v2112_v32 = vpop.f32.mrb[31].mxu0 }
 0x731   : > { %v2125_v19 = vmul.f32 %v4461_v17, %v2112_v32 }
 0x732   : > { %v2129_v20 = vpack.c.bf16 %v2127_v18, %v2126_v13 }
 0x733   : > { %v2128_v21 = vpack.c.bf16 %v2125_v19, %v2124_v15 }
 0x735   : > { %4127 = vmatprep.mubr.msk.bf16.mxu0 %vm991_vm1, %v2128_v21 }
 0x736   : > { %4128 = vmatmul.mubr.msk.bf16.vlgmr.msra.gmra.mrb[12].mxu0 %vm991_vm1, %v2129_v20 }
 0x737   : > { %4140 = vmatpush3.bf16.msra.mxu0 %v5378_v30  ;;  %4143 = vmatprep.mubr.msk.bf16.mxu0 %vm774_vm0, %v2303_v40 }
 0x738   : > { %4141 = vmatprep.subr.bf16.mxu0 %v5392_v47  ;;  %v2507_v6 = vpop.xlane.xlu1 %2506 }
 0x739   : > { %v2517_v12 = vsub.f32 %v2491_v57, %v2507_v6 }
 0x73a   : > { %v2510_v9 = vpop.xlane.xlu0 %2509 }
 0x73b   : > { %v2521_v24 = vmul.f32 1.442695, %v2517_v12  ;;  %4142 = vmatpush3.bf16.msra.mxu0 %v5392_v47  ;;  %v2518_v25 = vsub.f32 %v2494_v61, %v2510_v9 }
 0x73c   : > { %v2513_v27 = vpop.xlane.xlu1 %2512  ;;  %4286 = vmatprep.subr.msk.bf16.mxu0 %vm1163_vm2, %v3825_v22 }
 0x73d   : > { %v2523_v30 = vmul.f32 1.442695, %v2518_v25  ;;  %4462 = vpow2.f32 %v2521_v24  ;;  %v2519_v34 = vsub.f32 %v5415_v59, %v2513_v27 }
 0x73e   : > { %4144 = vmatmul.mubr.msk.bf16.vlgmr.msra.gmra.mrb[32].mxu0 %vm774_vm0, %v2304_v42  ;;  %v5469_v33 = vpop.xlane.xlu0 %2294 }
 0x73f   : > { %4464 = vpow2.f32 %v2523_v30  ;;  %4148 = vmatpush3.bf16.msra.mxu0 %v2381_v28  ;;  %v2525_v36 = vmul.f32 1.442695, %v2519_v34 }
 0x740   : > { %v5472_v35 = vpop.xlane.xlu1 %2291 }
 0x741   : > { %4466 = vpow2.f32 %v2525_v36 }
 0x742   : > { %v5474_v29 = vpop.xlane.xlu0 %2288 }
 0x744   : > { %v5476_v37 = vpop.permute.xlu1 %2547 }
 0x745   : > { %4161 = vmatprep.subr.bf16.mxu0 %v5476_v37 }
 0x746   : > { %v5479_v38 = vpop.xlane.xlu0 %2297 }
 0x747   : > { %v5481_v39 = vpop.eup %4462 }
 0x748   : > { %v4181_v40 = vpop.f32.mrb[32].mxu1 }
 0x749   : > { %v5483_v41 = vpop.eup %4464  ;;  %v2732_v43 = vpop.f32.mrb[33].mxu1  ;;  %v2741_v52 = vadd.f32 %v5412_v58, %v4181_v40  ;;  %v2529_v58 = vsel %vm774_vm0, %v5481_v39, 0.0 }
 0x74a   : > { %v2733_v45 = vadd.f32 %v5406_v56, %v2732_v43  ;;  %v4182_v47 = vpop.f32.mrb[34].mxu1  ;;  %v2516_v48 = vpop.xlane.xlu0 %2515  ;;  %v2545_v49 = vpack.c.bf16 %v5483_v41, %v5481_v39  ;;  %v2532_v63 = vsel %vm774_vm0, %v5483_v41, 0.0 }
 0x74b   : > { %v2520_v50 = vsub.f32 %v5439_v7, %v2516_v48  ;;  %v2735_v51 = vpop.f32.mrb[35].mxu1  ;;  %v2753_v56 = vsel %vm774_vm0, %v2741_v52, -inf  ;;  %v5494_v44 = vpop.eup %4466  ;;  %v2744_v62 = vadd.f32 %v5436_v53, %v4182_v47 }
 0x74c   : > { %v2736_v42 = vadd.f32 %v5420_v60, %v2735_v51  ;;  %v2747_v54 = vsel %vm774_vm0, %v2733_v45, -inf  ;;  %v2535_v46 = vsel %vm774_vm0, %v5494_v44, 0.0 }
 0x74d   : > { %v2527_v55 = vmul.f32 1.442695, %v2520_v50  ;;  %2748 = vmax.xlane.f32.xlu1 %v2747_v54  ;;  %v2756_v0 = vsel %vm774_vm0, %v2744_v62, -inf }
 0x74e   : > { %v2750_v57 = vsel %vm774_vm0, %v2736_v42, -inf  ;;  %v2550_v1 = vpop.permute.xlu0 %2549 }
 0x74f   : > { %4468 = vpow2.f32 %v2527_v55  ;;  %2751 = vmax.xlane.f32.xlu0 %v2750_v57 }
 0x751   : > { %2754 = vmax.xlane.f32.xlu1 %v2753_v56 }
 0x755   : > { %2536 = vadd.xlane.f32.xlu1 %v2535_v46 }
 0x759   : > { %v5500_v59 = vpop.eup %4468  ;;  %2530 = vadd.xlane.f32.xlu1 %v2529_v58 }
 0x75a   : > { %v2538_v60 = vsel %vm774_vm0, %v5500_v59, 0.0  ;;  %v2546_v61 = vpack.c.bf16 %v5500_v59, %v5494_v44 }
 0x75b   : > { %2539 = vadd.xlane.f32.xlu0 %v2538_v60 }
 0x75f   : > { %2533 = vadd.xlane.f32.xlu0 %v2532_v63  ;;  %v3839_v63 = vld [vmem:[%s5974_s8 + $0xe] sm:$0x3] }
 0x763   : > { %2757 = vmax.xlane.f32.xlu0 %v2756_v0  ;;  %v2867_v0 = vsel %vm1163_vm2, %v3839_v63, 0 }
 0x76a   : > { %2791 = vrot.lane.b32.xlu1 %v5032_v3, %s5975_s24 }
 0x779   : > { %2793 = vrot.lane.b32.xlu0 %v5034_v4, %s5975_s24 }
 0x7da   : > { %v2749_v2 = vpop.xlane.xlu1 %2748 }
 0x7db   : > { %v2759_v5 = vsub.f32 %v2733_v45, %v2749_v2 }
 0x7dc   : > { %v2752_v7 = vpop.xlane.xlu0 %2751 }
 0x7dd   : > { %v2763_v26 = vmul.f32 1.442695, %v2759_v5  ;;  %v2760_v8 = vsub.f32 %v2736_v42, %v2752_v7 }
 0x7de   : > { %v2755_v53 = vpop.xlane.xlu1 %2754 }
 0x7df   : > { %4470 = vpow2.f32 %v2763_v26  ;;  %v2765_v10 = vmul.f32 1.442695, %v2760_v8  ;;  %v2761_v23 = vsub.f32 %v2741_v52, %v2755_v53 }
 0x7e1   : > { %4472 = vpow2.f32 %v2765_v10  ;;  %v2767_v11 = vmul.f32 1.442695, %v2761_v23 }
 0x7e3   : > { %4474 = vpow2.f32 %v2767_v11 }
 0x7e8   : > { %v2540_v13 = vpop.xlane.xlu0 %2539 }
 0x7e9   : > { %v5514_v31 = vpop.eup %4470 }
 0x7ea   : > { %v2771_v3 = vsel %vm774_vm0, %v5514_v31, 0.0 }
 0x7eb   : > { %v5518_v4 = vpop.eup %4472  ;;  %2772 = vadd.xlane.f32.xlu1 %v2771_v3 }
 0x7ec   : > { %v2534_v14 = vpop.xlane.xlu0 %2533  ;;  %v2774_v15 = vsel %vm774_vm0, %v5518_v4, 0.0 }
 0x7ed   : > { %v5522_v16 = vpop.eup %4474  ;;  %2775 = vadd.xlane.f32.xlu0 %v2774_v15 }
 0x7ee   : > { %v2777_v17 = vsel %vm774_vm0, %v5522_v16, 0.0 }
 0x7ef   : > { %2778 = vadd.xlane.f32.xlu1 %v2777_v17  ;;  %v4546_v17 = vld [vmem:[%s4925_s1 + $0x10] sm:$0xff] }
 0x7f0   : > { %v2758_v18 = vpop.xlane.xlu0 %2757 }
 0x7f1   : > { %v2762_v32 = vsub.f32 %v2744_v62, %v2758_v18 }
 0x7f3   : > { %v2769_v19 = vmul.f32 1.442695, %v2762_v32  ;;  %v4547_v32 = vld [vmem:[%s4925_s1] sm:$0xff] }
 0x7f4   : > { %v2794_v62 = vpop.permute.xlu0 %2793 }
 0x7f5   : > { %4476 = vpow2.f32 %v2769_v19 }
 0x7f6   : > { %4478 = vrcp.f32 %v5469_v33  ;;  %v2537_v33 = vpop.xlane.xlu1 %2536 }
 0x7f7   : > { %4480 = vrcp.f32 %v5474_v29  ;;  %v3832_v29 = vld [vmem:[%s5974_s8 + $0xc] sm:$0x3]  ;;  %s3872_s8 = sshll.u32 %s5980_s4, 7 }
 0x7f8   : > { %4482 = vrcp.f32 %v5479_v38  ;;  %v2623_v38 = vsel %vm1163_vm2, %v3832_v29, 0 }
 0x7f9   : > { %4484 = vrcp.f32 %v5472_v35 }
 0x7fa   : > { %v2531_v35 = vpop.xlane.xlu1 %2530 }
 0x7ff   : > { %v5526_v20 = vpop.eup %4476 }
 0x800   : > { %v2780_v21 = vsel %vm774_vm0, %v5526_v20, 0.0  ;;  %v2790_v6 = vpack.c.bf16 %v5526_v20, %v5522_v16  ;;  %v4479_v12 = vpop.eup %4478  ;;  %v3786_v16 = vld [vmem:[%s5976_s9] ss:$0 sm:$0xff]  ;;  %v4548_v20 = vld [vmem:[%s4925_s1 + $0x18] sm:$0xff]  ;;  %s3659_s9 = sshll.u32 %s5554_s0, 4  ;;  %s3660_s9 = int_to_ptr.vmem [resolvable:$true] %s3659_s9 }
 0x801   : > { %2781 = vadd.xlane.f32.xlu0 %v2780_v21  ;;  %v4481_v9 = vpop.eup %4480  ;;  %v983_v18 = vadd.f32 %v4546_v17, %v3786_v16  ;;  %v981_v19 = vadd.f32 %v4547_v32, %v3786_v16  ;;  %v984_v21 = vadd.f32 %v4548_v20, %v3786_v16  ;;  %v3843_v20 = vld [vmem:[%s5979_s11] ss:$0 sm:$0xff]  ;;  %s4580_s11 = scalar_lea.vmem %s3660_s9, 128 }
 0x802   : > { %v4483_v27 = vpop.eup %4482  ;;  %p4581_p6 = scmp.ne.s32.totalorder %s3660_s9, %s4580_s11 }
 0x803   : > { %v4485_v34 = vpop.eup %4484 }
 0x804   : > { %p4582_p12 = pnand %p4581_p6, %p5983_p11 }
 0x806   : > { %p4583_p13 = pneg %p4582_p12 }
 0x811   : > { %v4145_v22 = vpop.f32.mrb[32].mxu0 }
 0x812   : > { %v2368_v24 = vmul.f32 %v4479_v12, %v4145_v22  ;;  %v2351_v25 = vpop.f32.mrb[33].mxu0 }
 0x813   : > { %v2366_v28 = vmul.f32 %v4481_v9, %v2351_v25  ;;  %v4146_v30 = vpop.f32.mrb[34].mxu0  ;;  %v4549_v9 = vld [vmem:[%s4925_s1 + $0x8] sm:$0xff]  ;;  %s5982_s1 = sld [smem:[#allocation31_spill]] }
 0x814   : > { %v2369_v36 = vmul.f32 %v4483_v27, %v4146_v30  ;;  %v2354_v40 = vpop.f32.mrb[35].mxu0 }
 0x815   : > { %v2367_v43 = vmul.f32 %v4485_v34, %v2354_v40 }
 0x816   : > { %v2371_v45 = vpack.c.bf16 %v2369_v36, %v2368_v24  ;;  %v982_v24 = vadd.f32 %v4549_v9, %v3786_v16 }
 0x817   : > { %v2370_v47 = vpack.c.bf16 %v2367_v43, %v2366_v28 }
 0x819   : > { %4149 = vmatprep.mubr.msk.bf16.mxu0 %vm991_vm1, %v2370_v47  ;;  %s5814_s27 = scalar_lea.hbm %s5982_s1, %s3872_s8 }
 0x81a   : > { %4150 = vmatmul.mubr.msk.bf16.vlgmr.msra.gmra.mrb[12].mxu0 %vm991_vm1, %v2371_v45 }
 0x81b   : > { %4162 = vmatpush3.bf16.msra.mxu0 %v5476_v37  ;;  %4165 = vmatprep.mubr.msk.bf16.mxu0 %vm774_vm0, %v2545_v49  ;;  %v2792_v37 = vpop.permute.xlu1 %2791 }
 0x81c   : > { %4163 = vmatprep.subr.bf16.mxu0 %v2550_v1 }
 0x81f   : > { %4164 = vmatpush3.bf16.msra.mxu0 %v2550_v1 }
 0x820   : > { %4289 = vmatprep.subr.msk.bf16.mxu0 %vm1163_vm2, %v3832_v29 }
 0x822   : > { %4166 = vmatmul.mubr.msk.bf16.vlgmr.msra.gmra.mrb[36].mxu0 %vm774_vm0, %v2546_v61  ;;  %v2789_v61 = vpack.c.bf16 %v5518_v4, %v5514_v31 }
 0x823   : > { %4170 = vmatpush3.bf16.msra.mxu0 %v2623_v38 }
 0x824   : > { %4183 = vmatprep.subr.bf16.mxu0 %v2792_v37 }
 0x878   : > { %v2773_v39 = vpop.xlane.xlu1 %2772 }
 0x879   : > { %4486 = vrcp.f32 %v2773_v39 }
 0x87a   : > { %4488 = vrcp.f32 %v2537_v33  ;;  %v2776_v1 = vpop.xlane.xlu0 %2775 }
 0x87b   : > { %4490 = vrcp.f32 %v2531_v35 }
 0x87c   : > { %4492 = vrcp.f32 %v2540_v13  ;;  %v2779_v2 = vpop.xlane.xlu1 %2778 }
 0x87d   : > { %4494 = vrcp.f32 %v2534_v14 }
 0x87e   : > { %4496 = vrcp.f32 %v2779_v2 }
 0x883   : > { %v4487_v41 = vpop.eup %4486 }
 0x884   : > { %v2787_v48 = vmul.f32 %v4487_v41, %v5514_v31  ;;  %v4489_v49 = vpop.eup %4488 }
 0x885   : > { %v4491_v51 = vpop.eup %4490 }
 0x886   : > { %2788 = vst.msk [vmem:[%s5554_s0] sm:$0xff] %vm774_vm0, %v2787_v48  ;;  %v4493_v54 = vpop.eup %4492  ;;  %v4364_v48 = vld [vmem:[%s5977_s12] sm:$0xff]  }
 0x887   : > { %v4495_v56 = vpop.eup %4494  ;;  %4197 = vmatprep.subr.bf16.mxu1 %v4364_v48 }
 0x888   : > { %v4497_v26 = vpop.eup %4496  ;;  %4198 = vmatpush3.bf16.msra.mxu1 %v4364_v48 }
 0x88e   : > { %v2782_v5 = vpop.xlane.xlu0 %2781 }
 0x88f   : > { %4498 = vrcp.f32 %v2782_v5 }
 0x890   : > { %4500 = vrcp.f32 %v2776_v1 }
 0x899   : > { %v4499_v53 = vpop.eup %4498 }
 0x89a   : > { %v4501_v23 = vpop.eup %4500 }
 0x8f5   : > { %v4167_v50 = vpop.f32.mrb[36].mxu0 }
 0x8f6   : > { %v2610_v52 = vmul.f32 %v4489_v49, %v4167_v50  ;;  %v2593_v42 = vpop.f32.mrb[37].mxu0  ;;  %v4365_v49 = vld [vmem:[%s5977_s12 + $0x8] sm:$0xff]   ;;  %s4691_s12 = smov [#allocation6]  }
 0x8f7   : > { %v2608_v55 = vmul.f32 %v4491_v51, %v2593_v42  ;;  %v4168_v57 = vpop.f32.mrb[38].mxu0  ;;  %4199 = vmatprep.subr.bf16.mxu1 %v4365_v49  ;;  %s4584_s7 = sshll.u32 %s4691_s12, 4  ;;  %s4585_s7 = int_to_ptr.vmem [resolvable:$false] %s4584_s7 }
 0x8f8   : > { %v2611_v44 = vmul.f32 %v4493_v54, %v4168_v57  ;;  %v2596_v46 = vpop.f32.mrb[39].mxu0  ;;  %4200 = vmatpush3.bf16.msra.mxu1 %v4365_v49  ;;  %s4586_s24 = scalar_lea.vmem %s4585_s7, 256  ;;  %p4587_p8 = scmp.lt.s32.totalorder %s3660_s9, %s4585_s7 }
 0x8f9   : > { %v2609_v58 = vmul.f32 %v4495_v56, %v2596_v46  ;;  %p4588_p10 = scmp.lt.s32.totalorder %s4586_s24, %s4580_s11 }
 0x8fa   : > { %v2613_v59 = vpack.c.bf16 %v2611_v44, %v2610_v52 }
 0x8fb   : > { %v2612_v60 = vpack.c.bf16 %v2609_v58, %v2608_v55  ;;  %p4589_p0 = por %p4588_p10, %p4587_p8 }
 0x8fd   : > { %4171 = vmatprep.mubr.msk.bf16.mxu0 %vm991_vm1, %v2612_v60  ;;  %p4590_p2 = pnand %p4589_p0, %p4583_p13 }
 0x8fe   : > { %4172 = vmatmul.mubr.msk.bf16.vlgmr.msra.gmra.mrb[12].mxu0 %vm991_vm1, %v2613_v59 }
 0x8ff   : > { %4184 = vmatpush3.bf16.msra.mxu0 %v2792_v37  ;;  %4187 = vmatprep.mubr.msk.bf16.mxu0 %vm774_vm0, %v2789_v61 }
 0x900   : > { %4185 = vmatprep.subr.bf16.mxu0 %v2794_v62 }
 0x903   : > { %4186 = vmatpush3.bf16.msra.mxu0 %v2794_v62 }
 0x904   : > { %4292 = vmatprep.subr.msk.bf16.mxu0 %vm1163_vm2, %v3839_v63 }
 0x906   : > { %4188 = vmatmul.mubr.msk.bf16.vlgmr.msra.gmra.mrb[40].mxu0 %vm774_vm0, %v2790_v6 }
 0x907   : > { %4192 = vmatpush3.bf16.msra.mxu0 %v2867_v0 }
 0x9d9   : > { %v4189_v7 = vpop.f32.mrb[40].mxu0 }
 0x9da   : > { %v2837_v8 = vpop.f32.mrb[41].mxu0  ;;  %v2854_v11 = vmul.f32 %v4497_v26, %v4189_v7 }
 0x9db   : > { %v4190_v10 = vpop.f32.mrb[42].mxu0  ;;  %v2852_v3 = vmul.f32 %v4487_v41, %v2837_v8 }
 0x9dc   : > { %v2855_v13 = vmul.f32 %v4499_v53, %v4190_v10  ;;  %v2840_v31 = vpop.f32.mrb[43].mxu0 }
 0x9dd   : > { %v2853_v4 = vmul.f32 %v4501_v23, %v2840_v31 }
 0x9de   : > { %v2857_v14 = vpack.c.bf16 %v2855_v13, %v2854_v11 }
 0x9df   : > { %v2856_v15 = vpack.c.bf16 %v2853_v4, %v2852_v3  ;;  %v3842_v4 = vld [vmem:[%s5978_s10] ss:$0 sm:$0xff]  ;;  %s3630_s10 = scalar_lea.sflag [#allocation7], %s4919_s2 }
 0x9e1   : > { %4193 = vmatprep.mubr.msk.bf16.mxu0 %vm991_vm1, %v2856_v15 }
 0x9e2   : > { %4194 = vmatmul.mubr.msk.bf16.vlgmr.msra.gmra.mrb[12].mxu0 %vm991_vm1, %v2857_v14 }
 0xab5   : > { %v4195_v6 = vpop.f32.mrb[12].mxu0 }
 0xab6   : > { %v5580_v12 = vadd.f32 %v4195_v6, %v983_v18  ;;  %v2903_v22 = vpop.f32.mrb[13].mxu0 }
 0xab7   : > { %v4196_v25 = vpop.f32.mrb[14].mxu0  ;;  %v5583_v27 = vadd.f32 %v2903_v22, %v981_v19 }
 0xab8   : > { %v5585_v28 = vadd.f32 %v4196_v25, %v984_v21  ;;  %v2906_v30 = vpop.f32.mrb[15].mxu0  ;;  %v2930_v34 = vsel %vm774_vm0, %v5580_v12, 0.0  ;;  %v2943_v29 = vmul.f32 %v5580_v12, %v5580_v12 }
 0xab9   : > { %2931 = vadd.xlane.f32.xlu1 %v2930_v34  ;;  %v5589_v36 = vadd.f32 %v2906_v30, %v982_v24  ;;  %v2924_v43 = vsel %vm774_vm0, %v5583_v27, 0.0  ;;  %v2941_v45 = vmul.f32 %v5583_v27, %v5583_v27 }
 0xaba   : > { %v2933_v40 = vsel %vm774_vm0, %v5585_v28, 0.0  ;;  %v2944_v37 = vmul.f32 %v5585_v28, %v5585_v28  ;;  %v2951_v39 = vsel %vm774_vm0, %v2943_v29, 0.0 }
 0xabb   : > { %2934 = vadd.xlane.f32.xlu0 %v2933_v40  ;;  %v2927_v33 = vsel %vm774_vm0, %v5589_v36, 0.0  ;;  %v2942_v47 = vmul.f32 %v5589_v36, %v5589_v36  ;;  %v2945_v35 = vsel %vm774_vm0, %v2941_v45, 0.0  ;;  %v4367_v45 = vld [vmem:[%s5908_s14 + $0x8] sm:$0xff]  }
 0xabc   : > { %v2954_v41 = vsel %vm774_vm0, %v2944_v37, 0.0 }
 0xabd   : > { %2925 = vadd.xlane.f32.xlu1 %v2924_v43  ;;  %v2948_v38 = vsel %vm774_vm0, %v2942_v47, 0.0  ;;  %v4366_v43 = vld [vmem:[%s5908_s14] sm:$0xff]  }
 0xabe   : > { %4205 = vmatprep.subr.bf16.mxu0 %v4366_v43 }
 0xabf   : > { %2928 = vadd.xlane.f32.xlu0 %v2927_v33  ;;  %4206 = vmatpush3.bf16.msra.mxu0 %v4366_v43  ;;  %v3844_v33 = vld [vmem:[%s5907_s13] ss:$0 sm:$0xff] }
 0xac0   : > { %4207 = vmatprep.subr.bf16.mxu0 %v4367_v45 }
 0xac1   : > { %2946 = vadd.xlane.f32.xlu1 %v2945_v35 }
 0xac3   : > { %2949 = vadd.xlane.f32.xlu0 %v2948_v38  ;;  %4208 = vmatpush3.bf16.msra.mxu0 %v4367_v45 }
 0xac5   : > { %2952 = vadd.xlane.f32.xlu1 %v2951_v39 }
 0xac7   : > { %2955 = vadd.xlane.f32.xlu0 %v2954_v41 }
 0xb46   : > { %v2932_v50 = vpop.xlane.xlu1 %2931 }
 0xb47   : > { %v2939_v56 = vmul.f32 0.03125, %v2932_v50 }
 0xb48   : > { %v2935_v51 = vpop.xlane.xlu0 %2934 }
 0xb49   : > { %v2940_v58 = vmul.f32 0.03125, %v2935_v51  ;;  %v2963_v0 = vmul.f32 %v2939_v56, %v2939_v56  ;;  %v2971_v17 = vsub.f32 %v5580_v12, %v2939_v56 }
 0xb4a   : > { %v2926_v52 = vpop.xlane.xlu1 %2925 }
 0xb4b   : > { %v2937_v42 = vmul.f32 0.03125, %v2926_v52  ;;  %v2964_v7 = vmul.f32 %v2940_v58, %v2940_v58  ;;  %v2972_v21 = vsub.f32 %v5585_v28, %v2940_v58 }
 0xb4c   : > { %v2929_v54 = vpop.xlane.xlu0 %2928 }
 0xb4d   : > { %v2938_v55 = vmul.f32 0.03125, %v2929_v54  ;;  %v2961_v44 = vmul.f32 %v2937_v42, %v2937_v42  ;;  %v2969_v31 = vsub.f32 %v5583_v27, %v2937_v42 }
 0xb4e   : > { %v2947_v57 = vpop.xlane.xlu1 %2946 }
 0xb4f   : > { %v2957_v46 = vmul.f32 0.03125, %v2947_v57  ;;  %v2962_v60 = vmul.f32 %v2938_v55, %v2938_v55  ;;  %v2970_v14 = vsub.f32 %v5589_v36, %v2938_v55 }
 0xb50   : > { %v2950_v59 = vpop.xlane.xlu0 %2949 }
 0xb51   : > { %v2965_v61 = vsub.f32 %v2957_v46, %v2961_v44  ;;  %v2958_v62 = vmul.f32 0.03125, %v2950_v59 }
 0xb52   : > { %v2953_v63 = vpop.xlane.xlu1 %2952 }
 0xb53   : > { %v2973_v1 = vadd.f32 1e-05, %v2965_v61  ;;  %v2966_v2 = vsub.f32 %v2958_v62, %v2962_v60  ;;  %v2959_v5 = vmul.f32 0.03125, %v2953_v63 }
 0xb54   : > { %v2956_v26 = vpop.xlane.xlu0 %2955 }
 0xb55   : > { %4502 = vrsqrt.f32 %v2973_v1  ;;  %v2974_v8 = vadd.f32 1e-05, %v2966_v2  ;;  %v2967_v53 = vsub.f32 %v2959_v5, %v2963_v0  ;;  %v2960_v10 = vmul.f32 0.03125, %v2956_v26 }
 0xb57   : > { %4504 = vrsqrt.f32 %v2974_v8  ;;  %v2975_v23 = vadd.f32 1e-05, %v2967_v53  ;;  %v2968_v11 = vsub.f32 %v2960_v10, %v2964_v7 }
 0xb59   : > { %4506 = vrsqrt.f32 %v2975_v23  ;;  %v2976_v13 = vadd.f32 1e-05, %v2968_v11 }
 0xb5b   : > { %4508 = vrsqrt.f32 %v2976_v13 }
 0xb5f   : > { %v4503_v3 = vpop.eup %4502 }
 0xb60   : > { %v2981_v15 = vmul.f32 %v4503_v3, %v2969_v31 }
 0xb61   : > { %v4505_v16 = vpop.eup %4504 }
 0xb62   : > { %v2982_v18 = vmul.f32 %v4505_v16, %v2970_v14  ;;  %v2991_v32 = vmul.f32 %v3842_v4, %v2981_v15 }
 0xb63   : > { %v4507_v19 = vpop.eup %4506 }
 0xb64   : > { %v2983_v6 = vmul.f32 %v4507_v19, %v2971_v17  ;;  %v2992_v22 = vmul.f32 %v3842_v4, %v2982_v18  ;;  %v5625_v25 = vadd.f32 %v3843_v20, %v2991_v32 }
 0xb65   : > { %v4509_v9 = vpop.eup %4508 }
 0xb66   : > { %v2984_v24 = vmul.f32 %v4509_v9, %v2972_v21  ;;  %v5627_v27 = vadd.f32 %v3843_v20, %v2992_v22  ;;  %v2993_v30 = vmul.f32 %v3842_v4, %v2983_v6 }
 0xb68   : > { %v3005_v12 = vpack.c.bf16 %v5627_v27, %v5625_v25  ;;  %v2994_v34 = vmul.f32 %v3842_v4, %v2984_v24  ;;  %v5632_v36 = vadd.f32 %v3843_v20, %v2993_v30 }
 0xb6a   : > { %4201 = vmatprep.mubr.msk.bf16.mxu1 %vm774_vm0, %v3005_v12  ;;  %v5634_v40 = vadd.f32 %v3843_v20, %v2994_v34  ;;  %v3853_v20 = vld [vmem:[%s5909_s15] ss:$0 sm:$0xff] }
 0xb6c   : > { %v3006_v28 = vpack.c.bf16 %v5634_v40, %v5632_v36 }
 0xb6e   : > { %4202 = vmatmul.mubr.msk.bf16.vlgmr.msra.gmra.mrb[36].mxu1 %vm774_vm0, %v3006_v28 }
 0xc41   : > { %v4203_v47 = vpop.f32.mrb[36].mxu1 }
 0xc42   : > { %v3079_v35 = vadd.f32 %v4203_v47, %v3844_v33  ;;  %v3070_v29 = vpop.f32.mrb[37].mxu1 }
 0xc43   : > { %v3071_v38 = vadd.f32 %v3844_v33, %v3070_v29  ;;  %v4204_v37 = vpop.f32.mrb[38].mxu1 }
 0xc44   : > { %v3091_v39 = vmul.f32 0.044715, %v3079_v35  ;;  %v3082_v41 = vadd.f32 %v4204_v37, %v3844_v33  ;;  %v3073_v48 = vpop.f32.mrb[39].mxu1  ;;  %v3087_v23 = vmul.f32 0.5, %v3079_v35 }
 0xc45   : > { %v3089_v49 = vmul.f32 0.044715, %v3071_v38  ;;  %v3074_v50 = vadd.f32 %v3844_v33, %v3073_v48  ;;  %v3085_v31 = vmul.f32 0.5, %v3071_v38  ;;  %v4368_v48 = vld [vmem:[%s5912_s18] sm:$0xff]  }
 0xc46   : > { %v3095_v51 = vmul.f32 %v3091_v39, %v3079_v35  ;;  %v3092_v52 = vmul.f32 0.044715, %v3082_v41  ;;  %v3088_v11 = vmul.f32 0.5, %v3082_v41  ;;  %4217 = vmatprep.mubr.msk.bf16.mxu1 %vm774_vm0, %v4368_v48 }
 0xc47   : > { %v3093_v42 = vmul.f32 %v3089_v49, %v3071_v38  ;;  %v3090_v54 = vmul.f32 0.044715, %v3074_v50  ;;  %v3086_v3 = vmul.f32 0.5, %v3074_v50  ;;  %v3301_v49 = vld [vmem:[%s5913_s19] sm:$0xff] }
 0xc48   : > { %v3099_v55 = vmul.f32 %v3095_v51, %v3079_v35  ;;  %v3096_v57 = vmul.f32 %v3092_v52, %v3082_v41  ;;  %v3303_v51 = vld [vmem:[%s5913_s19 + $0x10] sm:$0xff]  ;;  %v3302_v52 = vld [vmem:[%s5913_s19 + $0x8] sm:$0xff] }
 0xc49   : > { %v3097_v56 = vmul.f32 %v3093_v42, %v3071_v38  ;;  %v3094_v44 = vmul.f32 %v3090_v54, %v3074_v50  ;;  %v3528_v42 = vld [vmem:[%s5915_s21 + $0x10] sm:$0xff]  ;;  %v3304_v54 = vld [vmem:[%s5913_s19 + $0x18] sm:$0xff] }
 0xc4a   : > { %v3103_v46 = vadd.f32 %v3099_v55, %v3079_v35  ;;  %v3100_v58 = vmul.f32 %v3096_v57, %v3082_v41  ;;  %v3305_v55 = vld [vmem:[%s5913_s19 + $0x20] sm:$0xff]  ;;  %v3306_v57 = vld [vmem:[%s5913_s19 + $0x28] sm:$0xff] }
 0xc4b   : > { %v3101_v59 = vadd.f32 %v3097_v56, %v3071_v38  ;;  %v3098_v60 = vmul.f32 %v3094_v44, %v3074_v50  ;;  %v3307_v56 = vld [vmem:[%s5913_s19 + $0x30] sm:$0xff]  ;;  %v3308_v44 = vld [vmem:[%s5913_s19 + $0x38] sm:$0xff] }
 0xc4c   : > { %v3107_v61 = vmul.f32 0.7978846, %v3103_v46  ;;  %v3104_v62 = vadd.f32 %v3100_v58, %v3082_v41  ;;  %v3526_v46 = vld [vmem:[%s5915_s21] sm:$0xff]  ;;  %v3527_v58 = vld [vmem:[%s5915_s21 + $0x8] sm:$0xff] }
 0xc4d   : > { %v3105_v63 = vmul.f32 0.7978846, %v3101_v59  ;;  %v3102_v0 = vadd.f32 %v3098_v60, %v3074_v50  ;;  %v4690_v50 = vmov 0   ;;  %v3529_v59 = vld [vmem:[%s5915_s21 + $0x18] sm:$0xff] }
 0xc4e   : > { %4510 = vtanh.f32 %v3107_v61  ;;  %v3108_v1 = vmul.f32 0.7978846, %v3104_v62  ;;  %4356 = vset.pattern.permute.xlu1 %v4690_v50  ;;  %4357 = vset.pattern.permute.xlu0 %v4690_v50  ;;  %v4369_v50 = vld [vmem:[%s5912_s18 + $0x8] sm:$0xff]  }
 0xc4f   : > { %4512 = vtanh.f32 %v3105_v63  ;;  %v3106_v2 = vmul.f32 0.7978846, %v3102_v0 }
 0xc50   : > { %4514 = vtanh.f32 %v3108_v1 }
 0xc51   : > { %4516 = vtanh.f32 %v3106_v2 }
 0xc58   : > { %v4511_v5 = vpop.eup %4510 }
 0xc59   : > { %v4513_v7 = vpop.eup %4512  ;;  %v3115_v26 = vadd.f32 1.0, %v4511_v5 }
 0xc5a   : > { %v4515_v8 = vpop.eup %4514  ;;  %v3113_v53 = vadd.f32 1.0, %v4513_v7 }
 0xc5b   : > { %v4517_v10 = vpop.eup %4516  ;;  %v3116_v13 = vadd.f32 1.0, %v4515_v8  ;;  %v3119_v14 = vmul.f32 %v3115_v26, %v3087_v23 }
 0xc5c   : > { %v3114_v4 = vadd.f32 1.0, %v4517_v10  ;;  %v3117_v16 = vmul.f32 %v3113_v53, %v3085_v31 }
 0xc5d   : > { %v3120_v15 = vmul.f32 %v3116_v13, %v3088_v11 }
 0xc5e   : > { %v3118_v17 = vmul.f32 %v3114_v4, %v3086_v3 }
 0xc5f   : > { %v3122_v18 = vpack.c.bf16 %v3120_v15, %v3119_v14 }
 0xc60   : > { %v3121_v32 = vpack.c.bf16 %v3118_v17, %v3117_v16 }
 0xc62   : > { %4209 = vmatprep.mubr.msk.bf16.mxu0 %vm774_vm0, %v3121_v32 }
 0xc63   : > { %4210 = vmatmul.mubr.msk.bf16.vlgmr.msra.gmra.mrb[44].mxu0 %vm774_vm0, %v3122_v18 }
 0xd36   : > { %v4211_v19 = vpop.f32.mrb[44].mxu0 }
 0xd37   : > { %v3196_v21 = vadd.f32 %v4211_v19, %v5632_v36  ;;  %v3179_v6 = vpop.f32.mrb[45].mxu0 }
 0xd38   : > { %v3194_v22 = vadd.f32 %v3179_v6, %v5625_v25  ;;  %v4212_v9 = vpop.f32.mrb[46].mxu0 }
 0xd39   : > { %v5655_v24 = vadd.f32 %v3853_v20, %v3196_v21  ;;  %v3197_v30 = vadd.f32 %v4212_v9, %v5634_v40  ;;  %v3182_v12 = vpop.f32.mrb[47].mxu0  ;;  %v3854_v9 = vld [vmem:[%s5910_s16] ss:$0 sm:$0xff] }
 0xd3a   : > { %v3195_v34 = vadd.f32 %v3182_v12, %v5627_v27  ;;  %v5659_v28 = vadd.f32 %v3853_v20, %v3194_v22 }
 0xd3b   : > { %v5661_v43 = vadd.f32 %v3853_v20, %v3197_v30  ;;  %v3217_v45 = vsel %vm774_vm0, %v5655_v24, 0.0  ;;  %v3229_v29 = vmul.f32 %v5655_v24, %v5655_v24 }
 0xd3c   : > { %3218 = vadd.xlane.f32.xlu1 %v3217_v45  ;;  %v5665_v36 = vadd.f32 %v3853_v20, %v3195_v34  ;;  %v3211_v40 = vsel %vm774_vm0, %v5659_v28, 0.0  ;;  %v3227_v27 = vmul.f32 %v5659_v28, %v5659_v28 }
 0xd3d   : > { %v3220_v25 = vsel %vm774_vm0, %v5661_v43, 0.0  ;;  %v3230_v37 = vmul.f32 %v5661_v43, %v5661_v43  ;;  %v3237_v39 = vsel %vm774_vm0, %v3229_v29, 0.0 }
 0xd3e   : > { %3221 = vadd.xlane.f32.xlu0 %v3220_v25  ;;  %v3214_v33 = vsel %vm774_vm0, %v5665_v36, 0.0  ;;  %v3228_v47 = vmul.f32 %v5665_v36, %v5665_v36  ;;  %v3231_v35 = vsel %vm774_vm0, %v3227_v27, 0.0 }
 0xd3f   : > { %v3240_v41 = vsel %vm774_vm0, %v3230_v37, 0.0 }
 0xd40   : > { %3212 = vadd.xlane.f32.xlu1 %v3211_v40  ;;  %v3234_v38 = vsel %vm774_vm0, %v3228_v47, 0.0 }
 0xd42   : > { %3215 = vadd.xlane.f32.xlu0 %v3214_v33  ;;  %v3855_v33 = vld [vmem:[%s5911_s17] ss:$0 sm:$0xff] }
 0xd44   : > { %3232 = vadd.xlane.f32.xlu1 %v3231_v35 }
 0xd46   : > { %3235 = vadd.xlane.f32.xlu0 %v3234_v38 }
 0xd48   : > { %3238 = vadd.xlane.f32.xlu1 %v3237_v39 }
 0xd4a   : > { %3241 = vadd.xlane.f32.xlu0 %v3240_v41 }
 0xd59   : > { %3311 = vperm.xlu1 %4356, %v3301_v49  }
 0xd5d   : > { %3321 = vperm.xlu1 %4356, %v3303_v51   ;;  %v4370_v51 = vld [vmem:[%s5912_s18 + $0x10] sm:$0xff]  }
 0xd60   : > { %3316 = vperm.xlu0 %4357, %v3302_v52   ;;  %v4371_v52 = vld [vmem:[%s5912_s18 + $0x18] sm:$0xff]  }
 0xd61   : > { %3326 = vperm.xlu1 %4356, %v3304_v54  }
 0xd64   : > { %3542 = vperm.xlu0 %4357, %v3528_v42   ;;  %v4372_v42 = vld [vmem:[%s5914_s20] sm:$0xff]  }
 0xd65   : > { %3331 = vperm.xlu1 %4356, %v3305_v55   ;;  %4233 = vmatprep.mubr.msk.bf16.mxu0 %vm3560_vm3, %v4372_v42 }
 0xd69   : > { %3336 = vperm.xlu1 %4356, %v3306_v57  }
 0xd6d   : > { %3341 = vperm.xlu1 %4356, %v3307_v56  }
 0xd71   : > { %3346 = vperm.xlu1 %4356, %v3308_v44  }
 0xd75   : > { %3532 = vperm.xlu1 %4356, %v3526_v46  }
 0xd79   : > { %3537 = vperm.xlu1 %4356, %v3527_v58  }
 0xd7d   : > { %3547 = vperm.xlu1 %4356, %v3529_v59  }
 0xdc9   : > { %v3219_v60 = vpop.xlane.xlu1 %3218 }
 0xdca   : > { %v3225_v5 = vmul.f32 0.03125, %v3219_v60 }
 0xdcb   : > { %v3222_v61 = vpop.xlane.xlu0 %3221 }
 0xdcc   : > { %v3226_v8 = vmul.f32 0.03125, %v3222_v61  ;;  %v3249_v31 = vmul.f32 %v3225_v5, %v3225_v5  ;;  %v3257_v45 = vsub.f32 %v5655_v24, %v3225_v5 }
 0xdcd   : > { %v3213_v62 = vpop.xlane.xlu1 %3212 }
 0xdce   : > { %v3223_v63 = vmul.f32 0.03125, %v3213_v62  ;;  %v3250_v15 = vmul.f32 %v3226_v8, %v3226_v8 }
 0xdcf   : > { %v3216_v0 = vpop.xlane.xlu0 %3215 }
 0xdd0   : > { %v3224_v1 = vmul.f32 0.03125, %v3216_v0  ;;  %v3247_v7 = vmul.f32 %v3223_v63, %v3223_v63  ;;  %v3255_v6 = vsub.f32 %v5659_v28, %v3223_v63  ;;  %v3258_v28 = vsub.f32 %v5661_v43, %v3226_v8 }
 0xdd1   : > { %v3233_v2 = vpop.xlane.xlu1 %3232 }
 0xdd2   : > { %v3243_v26 = vmul.f32 0.03125, %v3233_v2  ;;  %v3248_v10 = vmul.f32 %v3224_v1, %v3224_v1  ;;  %v3256_v30 = vsub.f32 %v5665_v36, %v3224_v1 }
 0xdd3   : > { %v3236_v53 = vpop.xlane.xlu0 %3235 }
 0xdd4   : > { %v3251_v23 = vsub.f32 %v3243_v26, %v3247_v7  ;;  %v3244_v11 = vmul.f32 0.03125, %v3236_v53 }
 0xdd5   : > { %v3239_v13 = vpop.xlane.xlu1 %3238 }
 0xdd6   : > { %v3259_v3 = vadd.f32 1e-05, %v3251_v23  ;;  %v3252_v4 = vsub.f32 %v3244_v11, %v3248_v10  ;;  %v3245_v14 = vmul.f32 0.03125, %v3239_v13 }
 0xdd7   : > { %v3242_v16 = vpop.xlane.xlu0 %3241 }
 0xdd8   : > { %4518 = vrsqrt.f32 %v3259_v3  ;;  %v3260_v17 = vadd.f32 1e-05, %v3252_v4  ;;  %v3253_v18 = vsub.f32 %v3245_v14, %v3249_v31  ;;  %v3246_v32 = vmul.f32 0.03125, %v3242_v16 }
 0xdd9   : > { %v3312_v54 = vpop.permute.xlu1 %3311 }
 0xdda   : > { %4520 = vrsqrt.f32 %v3260_v17  ;;  %v3261_v19 = vadd.f32 1e-05, %v3253_v18  ;;  %v3254_v20 = vsub.f32 %v3246_v32, %v3250_v15 }
 0xddc   : > { %4522 = vrsqrt.f32 %v3261_v19  ;;  %v3262_v21 = vadd.f32 1e-05, %v3254_v20 }
 0xddd   : > { %v3322_v55 = vpop.permute.xlu1 %3321 }
 0xdde   : > { %4524 = vrsqrt.f32 %v3262_v21 }
 0xddf   : > { %v3317_v63 = vpop.permute.xlu0 %3316 }
 0xde1   : > { %v3327_v57 = vpop.permute.xlu1 %3326 }
 0xde2   : > { %v4519_v22 = vpop.eup %4518 }
 0xde3   : > { %v3267_v12 = vmul.f32 %v4519_v22, %v3255_v6 }
 0xde4   : > { %v4521_v34 = vpop.eup %4520 }
 0xde5   : > { %v3268_v25 = vmul.f32 %v4521_v34, %v3256_v30  ;;  %v3277_v40 = vmul.f32 %v3854_v9, %v3267_v12  ;;  %v3332_v56 = vpop.permute.xlu1 %3331 }
 0xde6   : > { %v4523_v27 = vpop.eup %4522 }
 0xde7   : > { %v3278_v47 = vmul.f32 %v3854_v9, %v3268_v25  ;;  %v3269_v35 = vmul.f32 %v4523_v27, %v3257_v45  ;;  %v5735_v38 = vadd.f32 %v3855_v33, %v3277_v40 }
 0xde8   : > { %v4525_v29 = vpop.eup %4524 }
 0xde9   : > { %v5737_v37 = vadd.f32 %v3855_v33, %v3278_v47  ;;  %v3270_v36 = vmul.f32 %v4525_v29, %v3258_v28  ;;  %v3279_v39 = vmul.f32 %v3854_v9, %v3269_v35  ;;  %v3337_v44 = vpop.permute.xlu1 %3336 }
 0xdeb   : > { %v3299_v24 = vpack.c.bf16 %v5737_v37, %v5735_v38  ;;  %v3280_v41 = vmul.f32 %v3854_v9, %v3270_v36  ;;  %v5741_v48 = vadd.f32 %v3855_v33, %v3279_v39 }
 0xded   : > { %4213 = vmatprep.subr.bf16.mxu1 %v3299_v24  ;;  %v5743_v49 = vadd.f32 %v3855_v33, %v3280_v41  ;;  %v3342_v2 = vpop.permute.xlu1 %3341 }
 0xdee   : > { %4214 = vmatpush3.bf16.msra.mxu1 %v3299_v24 }
 0xdef   : > { %v3300_v43 = vpack.c.bf16 %v5743_v49, %v5741_v48 }
 0xdf1   : > { %4215 = vmatprep.subr.bf16.mxu1 %v3300_v43  ;;  %v3347_v17 = vpop.permute.xlu1 %3346 }
 0xdf2   : > { %4216 = vmatpush3.bf16.msra.mxu1 %v3300_v43 }
 0xdf5   : > { %4218 = vmatmul.mubr.msk.bf16.vlgmr.msra.gmra.mrb[40].mxu1 %vm774_vm0, %v4369_v50 }
 0xdf6   : > { %4221 = vmatprep.mubr.msk.bf16.mxu1 %vm774_vm0, %v4370_v51 }
 0xdfd   : > { %4222 = vmatmul.mubr.msk.bf16.gmra.mrb[44].mxu1 %vm774_vm0, %v4371_v52 }
 0xec8   : > { %v4219_v46 = vpop.f32.mrb[40].mxu1 }
 0xec9   : > { %v5763_v58 = vadd.f32 %v4219_v46, %v3322_v55  ;;  %v3415_v59 = vpop.f32.mrb[41].mxu1 }
 0xeca   : > { %v5765_v60 = vadd.f32 %v3415_v59, %v3312_v54  ;;  %v4220_v61 = vpop.f32.mrb[42].mxu1 }
 0xecb   : > { %v3460_v62 = vmul.f32 0.044715, %v5763_v58  ;;  %v5768_v0 = vadd.f32 %v4220_v61, %v3327_v57  ;;  %v3418_v1 = vpop.f32.mrb[43].mxu1 }
 0xecc   : > { %v3458_v5 = vmul.f32 0.044715, %v5765_v60  ;;  %v5771_v7 = vadd.f32 %v3418_v1, %v3317_v63  ;;  %v3452_v1 = vmul.f32 0.5, %v5763_v58 }
 0xecd   : > { %v3468_v26 = vmul.f32 %v3460_v62, %v5763_v58  ;;  %v3461_v8 = vmul.f32 0.044715, %v5768_v0 }
 0xece   : > { %v3466_v53 = vmul.f32 %v3458_v5, %v5765_v60  ;;  %v3459_v10 = vmul.f32 0.044715, %v5771_v7 }
 0xecf   : > { %v3476_v23 = vmul.f32 %v3468_v26, %v5763_v58  ;;  %v3469_v11 = vmul.f32 %v3461_v8, %v5768_v0  ;;  %v3450_v26 = vmul.f32 0.5, %v5765_v60  ;;  %v3451_v8 = vmul.f32 0.5, %v5771_v7 }
 0xed0   : > { %v3474_v13 = vmul.f32 %v3466_v53, %v5765_v60  ;;  %v3467_v31 = vmul.f32 %v3459_v10, %v5771_v7  ;;  %v4223_v3 = vpop.f32.mrb[44].mxu1 }
 0xed1   : > { %v3477_v4 = vmul.f32 %v3469_v11, %v5768_v0  ;;  %v5782_v14 = vadd.f32 %v4223_v3, %v3342_v2  ;;  %v3431_v15 = vpop.f32.mrb[45].mxu1  ;;  %v3484_v16 = vadd.f32 %v3476_v23, %v5763_v58  ;;  %v3453_v2 = vmul.f32 0.5, %v5768_v0 }
 0xed2   : > { %v3475_v18 = vmul.f32 %v3467_v31, %v5771_v7  ;;  %v5786_v32 = vadd.f32 %v3431_v15, %v3332_v56  ;;  %v4224_v19 = vpop.f32.mrb[46].mxu1  ;;  %v3482_v20 = vadd.f32 %v3474_v13, %v5765_v60 }
 0xed3   : > { %v3464_v21 = vmul.f32 0.044715, %v5782_v14  ;;  %v3443_v6 = vadd.f32 %v4224_v19, %v3347_v17  ;;  %v3434_v22 = vpop.f32.mrb[47].mxu1  ;;  %v3485_v9 = vadd.f32 %v3477_v4, %v5768_v0  ;;  %v3492_v30 = vmul.f32 0.7978846, %v3484_v16 }
 0xed4   : > { %v3462_v12 = vmul.f32 0.044715, %v5786_v32  ;;  %v3435_v34 = vadd.f32 %v3434_v22, %v3337_v44  ;;  %v3483_v45 = vadd.f32 %v3475_v18, %v5771_v7  ;;  %v3490_v25 = vmul.f32 0.7978846, %v3482_v20 }
 0xed5   : > { %v3472_v40 = vmul.f32 %v3464_v21, %v5782_v14  ;;  %v3465_v27 = vmul.f32 0.044715, %v3443_v6  ;;  %v3493_v33 = vmul.f32 0.7978846, %v3485_v9  ;;  %4526 = vtanh.f32 %v3492_v30 }
 0xed6   : > { %v3470_v28 = vmul.f32 %v3462_v12, %v5786_v32  ;;  %v3463_v47 = vmul.f32 0.044715, %v3435_v34  ;;  %v3491_v35 = vmul.f32 0.7978846, %v3483_v45  ;;  %4528 = vtanh.f32 %v3490_v25 }
 0xed7   : > { %v3480_v29 = vmul.f32 %v3472_v40, %v5782_v14  ;;  %v3473_v36 = vmul.f32 %v3465_v27, %v3443_v6  ;;  %4530 = vtanh.f32 %v3493_v33  ;;  %v3456_v0 = vmul.f32 0.5, %v5782_v14 }
 0xed8   : > { %v3478_v39 = vmul.f32 %v3470_v28, %v5786_v32  ;;  %v3471_v24 = vmul.f32 %v3463_v47, %v3435_v34  ;;  %4532 = vtanh.f32 %v3491_v35  ;;  %v3457_v60 = vmul.f32 0.5, %v3443_v6 }
 0xed9   : > { %v3481_v41 = vmul.f32 %v3473_v36, %v3443_v6  ;;  %v3488_v43 = vadd.f32 %v3480_v29, %v5782_v14  ;;  %v3454_v7 = vmul.f32 0.5, %v5786_v32  ;;  %v3455_v20 = vmul.f32 0.5, %v3435_v34  ;;  %v4373_v14 = vld [vmem:[%s5914_s20 + $0x8] sm:$0xff]  }
 0xeda   : > { %v3479_v50 = vmul.f32 %v3471_v24, %v3435_v34  ;;  %v3486_v51 = vadd.f32 %v3478_v39, %v5786_v32 }
 0xedb   : > { %v3489_v52 = vadd.f32 %v3481_v41, %v3443_v6  ;;  %v3496_v42 = vmul.f32 0.7978846, %v3488_v43 }
 0xedc   : > { %v3487_v54 = vadd.f32 %v3479_v50, %v3435_v34  ;;  %v3494_v55 = vmul.f32 0.7978846, %v3486_v51 }
 0xedd   : > { %v3497_v57 = vmul.f32 0.7978846, %v3489_v52  ;;  %4534 = vtanh.f32 %v3496_v42 }
 0xede   : > { %v3495_v56 = vmul.f32 0.7978846, %v3487_v54  ;;  %4536 = vtanh.f32 %v3494_v55 }
 0xedf   : > { %v4527_v44 = vpop.eup %4526  ;;  %4538 = vtanh.f32 %v3497_v57 }
 0xee0   : > { %v4529_v46 = vpop.eup %4528  ;;  %v3508_v59 = vadd.f32 1.0, %v4527_v44  ;;  %4540 = vtanh.f32 %v3495_v56 }
 0xee1   : > { %v4531_v61 = vpop.eup %4530  ;;  %v3506_v62 = vadd.f32 1.0, %v4529_v46 }
 0xee2   : > { %v4533_v63 = vpop.eup %4532  ;;  %v3509_v5 = vadd.f32 1.0, %v4531_v61  ;;  %v3516_v10 = vmul.f32 %v3508_v59, %v3452_v1 }
 0xee3   : > { %v3507_v53 = vadd.f32 1.0, %v4533_v63  ;;  %v3514_v11 = vmul.f32 %v3506_v62, %v3450_v26 }
 0xee4   : > { %v3517_v23 = vmul.f32 %v3509_v5, %v3453_v2 }
 0xee5   : > { %v3515_v13 = vmul.f32 %v3507_v53, %v3451_v8 }
 0xee6   : > { %v3523_v31 = vpack.c.bf16 %v3517_v23, %v3516_v10 }
 0xee7   : > { %v4535_v3 = vpop.eup %4534  ;;  %v3522_v4 = vpack.c.bf16 %v3515_v13, %v3514_v11 }
 0xee8   : > { %v4537_v15 = vpop.eup %4536  ;;  %v3512_v16 = vadd.f32 1.0, %v4535_v3 }
 0xee9   : > { %v4539_v17 = vpop.eup %4538  ;;  %4225 = vmatprep.subr.bf16.mxu0 %v3522_v4  ;;  %v3510_v58 = vadd.f32 1.0, %v4537_v15 }
 0xeea   : > { %v4541_v18 = vpop.eup %4540  ;;  %4226 = vmatpush3.bf16.msra.mxu0 %v3522_v4  ;;  %v3513_v19 = vadd.f32 1.0, %v4539_v17  ;;  %v3520_v22 = vmul.f32 %v3512_v16, %v3456_v0 }
 0xeeb   : > { %4227 = vmatprep.subr.bf16.mxu0 %v3523_v31  ;;  %v3511_v21 = vadd.f32 1.0, %v4541_v18  ;;  %v3518_v30 = vmul.f32 %v3510_v58, %v3454_v7 }
 0xeec   : > { %v3521_v9 = vmul.f32 %v3513_v19, %v3457_v60 }
 0xeed   : > { %v3519_v12 = vmul.f32 %v3511_v21, %v3455_v20 }
 0xeee   : > { %4228 = vmatpush3.bf16.msra.mxu0 %v3523_v31  ;;  %v3525_v45 = vpack.c.bf16 %v3521_v9, %v3520_v22 }
 0xeef   : > { %v3524_v25 = vpack.c.bf16 %v3519_v12, %v3518_v30 }
 0xef1   : > { %4229 = vmatprep.subr.bf16.mxu0 %v3524_v25 }
 0xef2   : > { %4230 = vmatpush3.bf16.msra.mxu0 %v3524_v25 }
 0xef3   : > { %4231 = vmatprep.subr.bf16.mxu0 %v3525_v45 }
 0xef6   : > { %4232 = vmatpush3.bf16.msra.mxu0 %v3525_v45 }
 0xef9   : > { %4234 = vmatmul.mubr.msk.bf16.vlgmr.msra.gmra.mrb[48].mxu0 %vm3560_vm3, %v4373_v14 }
 0xefa   : > { %4593 = shalt.err (!%p4590_p2)
}
 0xefb   : > { %s4594_s0 = scalar_lea.hbm %s5814_s27, 128  ;;  %s4598_s12 = scalar_lea.hbm %s5982_s1, 256 }
 0xefc   : > { %p4595_p4 = scmp.ne.s32.totalorder %s5814_s27, %s4594_s0  ;;  %p4599_p9 = scmp.lt.u32.totalorder %s5814_s27, %s5982_s1 }
 0xefd   : > { %p4600_p1 = scmp.lt.u32.totalorder %s4598_s12, %s4594_s0  ;;  %p4602_p6 = scmp.lt.u32.totalorder %s4594_s0, %s5814_s27 }
 0xefe   : > { %p4596_p5 = pnand %p4595_p4, %p5983_p11 }
 0xeff   : > { %p4601_p3 = por %p4600_p1, %p4599_p9 }
 0xf00   : > { %p4597_p7 = pneg %p4596_p5 }
 0xf01   : > { %p4603_p12 = por %p4602_p6, %p4601_p3 }
 0xf03   : > { %p4604_p13 = pnand %p4603_p12, %p4597_p7 }
 0xf05   : > { %4607 = shalt.err (!%p4604_p13)
}
 0xf06   : > { %4296 = dma.vmem_to_hbm [thread:$0]  (%p5983_p11), %s3660_s9, 128, %s5814_s27, %s3630_s10   ;;  %v3533_v32 = vpop.permute.xlu1 %3532  ;;  %v3543_v34 = vpop.permute.xlu0 %3542 }
 0xf07   : > { %s5984_s11 = sshll.u32 %s4919_s2, 5  ;;  %s3876_s0 = sshll.u32 %s5980_s4, 9 }
 0xf08   : > { %s732_s24 = scalar_lea.vmem [#allocation5], %s5984_s11  ;;  %s5985_s4 = sld [smem:[#allocation30_spill]] }
 0xf09   : > { %s3643_s8 = sshll.u32 %s732_s24, 4  ;;  %s3625_s12 = scalar_lea.sflag [#allocation4], %s4919_s2  ;;  %s5838_s8 = int_to_ptr.vmem [resolvable:$true] %s3643_s8 }
 0xf0a   : > { %v3538_v6 = vpop.permute.xlu1 %3537  ;;  %s4608_s5 = scalar_lea.vmem %s5838_s8, 512  ;;  %s4692_s7 = smov [#allocation5]  }
 0xf0b   : > { %p4609_p8 = scmp.ne.s32.totalorder %s5838_s8, %s4608_s5  ;;  %s4612_s11 = sshll.u32 %s4692_s7, 4  ;;  %s4613_s11 = int_to_ptr.vmem [resolvable:$false] %s4612_s11 }
 0xf0c   : > { %s4614_s10 = scalar_lea.vmem %s4613_s11, 1024  ;;  %p4615_p2 = scmp.lt.s32.totalorder %s5838_s8, %s4613_s11 }
 0xf0d   : > { %p4610_p10 = pnand %p4609_p8, %p5983_p11  ;;  %p4616_p4 = scmp.lt.s32.totalorder %s4614_s10, %s4608_s5 }
 0xf0e   : > { %v3548_v28 = vpop.permute.xlu1 %3547  ;;  %s5986_s27 = smov %s5985_s4  ;;  %s5846_s28 = scalar_lea.hbm %s5985_s4, %s3876_s0 }
 0xf0f   : > { %p4611_p0 = pneg %p4610_p10  ;;  %p4617_p5 = por %p4616_p4, %p4615_p2 }
 0xf11   : > { %p4618_p7 = pnand %p4617_p5, %p4611_p0 }
 0xfcc   : > { %v4235_v40 = vpop.f32.mrb[48].mxu0 }
 0xfcd   : > { %v3610_v27 = vadd.f32 %v4235_v40, %v3543_v34  ;;  %v3601_v33 = vpop.f32.mrb[49].mxu0 }
 0xfce   : > { %v3602_v47 = vadd.f32 %v3601_v33, %v3533_v32  ;;  %v4236_v35 = vpop.f32.mrb[50].mxu0 }
 0xfcf   : > { %v3618_v29 = vadd.f32 %v3610_v27, %v5741_v48  ;;  %v3613_v36 = vadd.f32 %v4236_v35, %v3548_v28  ;;  %v3604_v39 = vpop.f32.mrb[51].mxu0 }
 0xfd0   : > { %v3616_v24 = vadd.f32 %v3602_v47, %v5735_v38  ;;  %v3605_v41 = vadd.f32 %v3604_v39, %v3538_v6 }
 0xfd1   : > { %3622 = vst.msk [vmem:[%s732_s24 + $0x10] sm:$0xff] %vm774_vm0, %v3618_v29  ;;  %v3619_v43 = vadd.f32 %v3613_v36, %v5743_v49 }
 0xfd2   : > { %3620 = vst.msk [vmem:[%s732_s24] sm:$0xff] %vm774_vm0, %v3616_v24  ;;  %v3617_v48 = vadd.f32 %v3605_v41, %v5737_v37 }
 0xfd3   : > { %3623 = vst.msk [vmem:[%s732_s24 + $0x18] sm:$0xff] %vm774_vm0, %v3619_v43 }
 0xfd4   : > { %3621 = vst.msk [vmem:[%s732_s24 + $0x8] sm:$0xff] %vm774_vm0, %v3617_v48 }
 0xfd5   : > { %4621 = shalt.err (!%p4618_p7)
}
 0xfd6   : > { %s4622_s24 = scalar_lea.hbm %s5846_s28, 512  ;;  %s4626_s4 = scalar_lea.hbm %s5986_s27, 1024 }
 0xfd7   : > { %p4623_p9 = scmp.ne.s32.totalorder %s5846_s28, %s4622_s24  ;;  %p4627_p6 = scmp.lt.u32.totalorder %s5846_s28, %s5986_s27 }
 0xfd8   : > { %p4628_p12 = scmp.lt.u32.totalorder %s4626_s4, %s4622_s24  ;;  %p4630_p8 = scmp.lt.u32.totalorder %s4622_s24, %s5846_s28 }
 0xfd9   : > { %p4624_p1 = pnand %p4623_p9, %p5983_p11 }
 0xfda   : > { %p4629_p13 = por %p4628_p12, %p4627_p6 }
 0xfdb   : > { %p4625_p3 = pneg %p4624_p1 }
 0xfdc   : > { %p4631_p10 = por %p4630_p8, %p4629_p13 }
 0xfde   : > { %p4632_p0 = pnand %p4631_p10, %p4625_p3 }
 0xfe0   : > { %4635 = shalt.err (!%p4632_p0)
}
 0xfe1   : > { %s4693_s5 = smov 128   ;;  %s4694_s10 = smov 8  }
 0xfe2   : > { %4295 = dma.vmem_to_hbm [thread:$0]  (%p5983_p11), %s5838_s8, 512, %s5846_s28, %s3625_s12, %s4693_s5, %s4693_s5, %s4694_s10  }
 0xfe3 PF: > { %s5987_s0 = sld [smem:[#allocation11_spill]]  ;;  %p5988_p2 = scmp.ne.s32.totalorder %s5962_s3, 0 }
 0xfe4   : > { %p5989_p4 = scmp.ge.s32.totalorder %s4678_s25, 2 }
 0xfe6   : > { %p4304_p5 = pnand %p5989_p4, %p5988_p2 }
 0xfe9   : > { %s3671_s9 = sand.u32 1, %s5987_s0  }
 0xfea   : > { %s3672_s24 = scalar_lea.sflag [#allocation4], %s3671_s9 }
 0xfeb   : > { %4657 = dma.done.wait (!%p4304_p5), %s3672_s24, 512  }
 0xfec   : > { %4659 = vsyncadd (!%p4304_p5), %s3672_s24, 4294966784  ;;  %s3681_s4 = scalar_lea.sflag [#allocation7], %s3671_s9 }
 0xfed   : > { %4661 = dma.done.wait (!%p4304_p5), %s3681_s4, 128  }
 0xfee   : > { %4663 = vsyncadd (!%p4304_p5), %s3681_s4, 4294967168  ;;  %s5990_s25 = sld [smem:[#allocation14_spill]]  ;;  %s5991_s7 = sld [smem:[#allocation12_spill]] }
 0xfef   : > { %s5992_s24 = sld [smem:[#allocation15_spill]]  ;;  %s5993_s4 = smov %s4670_s30 }
 0xff4   : > { %p40_p11 = scmp.ge.s32.totalorder %s5990_s25, 4   ;;  %s5994_s30 = smov %s5991_s7 }
 0xff6   :  { %42 = sbr.rel (!%p40_p11) target bundleno = 23 (0x17), region = 177 }
 0xffd   :  { %3686 = vsyncpa [#allocation3], 1 }
 0xffe   :  { %3688 = vsyncpa [#allocation3 + $0x1], 1 }
 0xfff   :  { %3689 = vsyncpa [#allocation4], 1 }
0x1000   :  { %3691 = vsyncpa [#allocation4 + $0x1], 1 }
0x1001   :  { %3692 = vsyncpa [#allocation7], 1 }
0x1002   :  { %3694 = vsyncpa [#allocation7 + $0x1], 1 }

</bundles_post_ra>
